<compile_context>
chip_gen: v5e
topology: v5e:2x2
jax: 0.10.0
libtpu: 0.0.40
codegen_flags: <defaults>
</compile_context>

<pallas_src>
import functools
import math

import jax
import jax.numpy as jnp
import numpy as np
from jax import lax
from jax.experimental import pallas as pl
from jax.experimental.pallas import tpu as pltpu


# ---------------------------------------------------------------------------
# Fused kernel: masked conv + bias + residual + ReLU + channel LayerNorm
# ---------------------------------------------------------------------------
def _conv_res_norm_kernel(x_ref, w_ref, b_ref, g_ref, bt_ref, out_ref,
                          xpad_ref, shift_ref, acc_ref,
                          *, ks, n_kh, dil, pad, H, W, eps):
    C = x_ref.shape[3]
    Hp = H + 2 * pad
    HW = H * W

    # ---- in-kernel "same" padding into a bf16 VMEM scratch ----------------
    if pad > 0:
        xpad_ref[...] = jnp.zeros_like(xpad_ref)
    xpad_ref[pad:pad + H, pad:pad + W, :] = x_ref[0].astype(xpad_ref.dtype)

    # ---- ks column-shifted copies, flattened to (Hp*W, C) -----------------
    # Only the kw (source-time) offset needs a sublane relayout; do it once
    # per kw and reuse across every kh tap below (cheap, aligned slices).
    for kw in range(ks):
        shift_ref[kw] = xpad_ref[:, kw * dil:kw * dil + W, :].reshape(Hp * W, C)

    # ---- masked-conv tap loop on the MXU (bf16 x bf16 -> f32 acc) ---------
    tap = 0
    for kh in range(n_kh):                 # kh > ks//2 are masked out (causal)
        row_off = kh * dil * W
        for kw in range(ks):
            patch = shift_ref[kw, row_off:row_off + HW, :]
            contrib = jnp.dot(patch, w_ref[tap],
                              preferred_element_type=jnp.float32)
            if tap == 0:
                acc_ref[...] = contrib
            else:
                acc_ref[...] += contrib
            tap += 1

    # ---- fused bias + residual + ReLU + LayerNorm (over channels) ---------
    conv = acc_ref[...] + b_ref[...]                          # (HW, C)
    y = jnp.maximum(x_ref[...].reshape(HW, C) + conv, 0.0)    # residual + ReLU
    mu = jnp.mean(y, axis=-1, keepdims=True)
    d = y - mu
    var = jnp.mean(d * d, axis=-1, keepdims=True)
    y_n = d * lax.rsqrt(var + eps)
    out = y_n * g_ref[...] + bt_ref[...]
    out_ref[...] = out.reshape(1, H, W, C).astype(out_ref.dtype)


def conv_res_norm_forward(x_nchw, params, *, kernel_size, dilation, groups=1,
                          eps=1e-5):
    # TODO(synk): grouped conv (block-diagonal weights) not wired up; groups==1.
    assert groups == 1
    N, C, H, W = x_nchw.shape
    ks = kernel_size
    w = params["w"]                               # HWIO: (kH, kW, Cin, Cout)
    assert w.shape == (ks, ks, C, C), "residual add needs Cin == Cout"
    n_kh = ks // 2 + 1                            # causal mask over target axis
    pad = dilation * (ks - 1) // 2

    # Drop masked taps and pack the rest as (n_taps, Cin, Cout) in bf16.
    w_taps = w[:n_kh].reshape(n_kh * ks, C, C).astype(jnp.bfloat16)
    b = params["b"].reshape(1, C).astype(jnp.float32)
    gamma = params["gamma"].reshape(1, C).astype(jnp.float32)
    beta = params["beta"].reshape(1, C).astype(jnp.float32)

    x = jnp.transpose(x_nchw, (0, 2, 3, 1))       # NCHW -> NHWC (channels=lanes)
    Hp, Wp = H + 2 * pad, W + 2 * pad

    kernel = functools.partial(_conv_res_norm_kernel, ks=ks, n_kh=n_kh,
                               dil=dilation, pad=pad, H=H, W=W, eps=eps)
    # TODO(synk): at production H/W/C add a spatial (halo-tiled) grid axis and
    # set vmem_limit_bytes so v7x's 64 MiB VMEM keeps double-buffering alive.
    y = pl.pallas_call(
        kernel,
        out_shape=jax.ShapeDtypeStruct((N, H, W, C), x.dtype),
        grid_spec=pltpu.PrefetchScalarGridSpec(
            num_scalar_prefetch=0,
            grid=(N,),
            in_specs=[
                pl.BlockSpec((1, H, W, C), lambda n: (n, 0, 0, 0)),
                pl.BlockSpec((n_kh * ks, C, C), lambda n: (0, 0, 0)),
                pl.BlockSpec((1, C), lambda n: (0, 0)),
                pl.BlockSpec((1, C), lambda n: (0, 0)),
                pl.BlockSpec((1, C), lambda n: (0, 0)),
            ],
            out_specs=pl.BlockSpec((1, H, W, C), lambda n: (n, 0, 0, 0)),
            scratch_shapes=[
                pltpu.VMEM((Hp, Wp, C), jnp.bfloat16),      # padded input tile
                pltpu.VMEM((ks, Hp * W, C), jnp.bfloat16),  # kw-shifted copies
                pltpu.VMEM((H * W, C), jnp.float32),        # conv accumulator
            ],
        ),
        compiler_params=pltpu.CompilerParams(
            dimension_semantics=("parallel",)),
    )(x, w_taps, b, gamma, beta)
    return jnp.transpose(y, (0, 3, 1, 2))         # back to NCHW


# ---------------------------------------------------------------------------
# Pure-JAX reference (for correctness check only)
# ---------------------------------------------------------------------------
def _ref_forward(x_nchw, params, *, kernel_size, dilation, eps=1e-5):
    x = jnp.transpose(x_nchw, (0, 2, 3, 1))
    ks = kernel_size
    n_kh = ks // 2 + 1
    mask = (jnp.arange(ks) < n_kh).astype(params["w"].dtype)[:, None, None, None]
    wm = params["w"] * mask                       # MaskedConv2d weight mask
    pad = dilation * (ks - 1) // 2
    dn = lax.conv_dimension_numbers(x.shape, wm.shape, ("NHWC", "HWIO", "NHWC"))
    c = lax.conv_general_dilated(
        x, wm, window_strides=(1, 1),
        padding=[(pad, pad), (pad, pad)],
        rhs_dilation=(dilation, dilation),
        dimension_numbers=dn) + params["b"].reshape(1, 1, 1, -1)
    y = jax.nn.relu(x + c)
    mu = jnp.mean(y, axis=-1, keepdims=True)
    var = jnp.mean((y - mu) ** 2, axis=-1, keepdims=True)
    y_n = (y - mu) * lax.rsqrt(var + eps)
    out = (y_n * params["gamma"].reshape(1, 1, 1, -1)
           + params["beta"].reshape(1, 1, 1, -1))
    return jnp.transpose(out, (0, 3, 1, 2))


# ---------------------------------------------------------------------------
if __name__ == "__main__":
    # Small but lane-friendly shapes: (N, C, Tt, Ts) with C a multiple of 128
    # so channels fill the lane axis; H*W = 256 rows per MXU matmul.
    N, C, H, W = 2, 128, 16, 16
    kernel_size, dilation, groups, bias = 3, 1, 1, True

    key = jax.random.PRNGKey(0)
    k_w, k_b, k_g, k_bt, k_x = jax.random.split(key, 5)
    fan_in = C * kernel_size * kernel_size
    s = 1.0 / math.sqrt(fan_in)

    params = {
        "w": jax.random.uniform(k_w, (kernel_size, kernel_size, C, C),
                                minval=-s, maxval=s, dtype=jnp.float32),
        "b": (jax.random.uniform(k_b, (C,), minval=-s, maxval=s,
                                 dtype=jnp.float32)
              if bias else jnp.zeros((C,), jnp.float32)),
        "gamma": 1.0 + 0.1 * jax.random.normal(k_g, (C,), dtype=jnp.float32),
        "beta": 0.1 * jax.random.normal(k_bt, (C,), dtype=jnp.float32),
    }
    x = jax.random.normal(k_x, (N, C, H, W), dtype=jnp.float32)

    fwd = jax.jit(functools.partial(conv_res_norm_forward,
                                    kernel_size=kernel_size,
                                    dilation=dilation, groups=groups))
    out = jax.block_until_ready(fwd(x, params))

    ref = _ref_forward(x, params, kernel_size=kernel_size, dilation=dilation)
    # bf16 MXU path vs f32 reference -> loosened tolerance.
    np.testing.assert_allclose(np.asarray(out), np.asarray(ref),
                               rtol=2e-2, atol=2e-2)
    print("KERNEL_OK")
</pallas_src>

<mosaic_0001>
module attributes {stable_mosaic.version = 11 : i64} {
  func.func @_conv_res_norm_kernel(%arg0: i32, %arg1: memref<1x16x16x128xf32, #tpu.memory_space<vmem>>, %arg2: memref<6x128x128xbf16, #tpu.memory_space<vmem>>, %arg3: memref<1x128xf32, #tpu.memory_space<vmem>>, %arg4: memref<1x128xf32, #tpu.memory_space<vmem>>, %arg5: memref<1x128xf32, #tpu.memory_space<vmem>>, %arg6: memref<1x16x16x128xf32, #tpu.memory_space<vmem>>, %arg7: memref<18x18x128xbf16, #tpu.memory_space<vmem>>, %arg8: memref<3x288x128xbf16, #tpu.memory_space<vmem>>, %arg9: memref<256x128xf32, #tpu.memory_space<vmem>>) attributes {dimension_semantics = [#tpu.dimension_semantics<parallel>], iteration_bounds = array<i64: 2>, scalar_prefetch = 0 : i64, scratch_operands = 3 : i64, tpu.core_type = #tpu.core_type<tc>, window_params = [{transform_indices = @transform_0, window_bounds = array<i64: 1, 16, 16, 128>}, {pipeline_mode = #tpu.pipeline_mode<synchronous>, transform_indices = @transform_1, window_bounds = array<i64: 6, 128, 128>}, {pipeline_mode = #tpu.pipeline_mode<synchronous>, transform_indices = @transform_2, window_bounds = array<i64: 1, 128>}, {pipeline_mode = #tpu.pipeline_mode<synchronous>, transform_indices = @transform_3, window_bounds = array<i64: 1, 128>}, {pipeline_mode = #tpu.pipeline_mode<synchronous>, transform_indices = @transform_4, window_bounds = array<i64: 1, 128>}, {transform_indices = @transform_5, window_bounds = array<i64: 1, 16, 16, 128>}]} {
    %cst = arith.constant 0.000000e+00 : bf16
    %0 = vector.broadcast %cst : bf16 to vector<18x18x128xbf16>
    %c0 = arith.constant 0 : index
    %c0_0 = arith.constant 0 : index
    %c0_1 = arith.constant 0 : index
    %1 = vector.load %arg7[%c0, %c0_0, %c0_1] : memref<18x18x128xbf16, #tpu.memory_space<vmem>>, vector<18x18x128xbf16>
    tpu.vector_store %arg7[%c0, %c0_0, %c0_1], %0 {strides = array<i32>} : memref<18x18x128xbf16, #tpu.memory_space<vmem>>, vector<18x18x128xbf16>,
    %c0_2 = arith.constant 0 : index
    %c0_3 = arith.constant 0 : index
    %c0_4 = arith.constant 0 : index
    %c0_5 = arith.constant 0 : index
    %2 = vector.load %arg1[%c0_2, %c0_3, %c0_4, %c0_5] : memref<1x16x16x128xf32, #tpu.memory_space<vmem>>, vector<1x16x16x128xf32>
    %3 = vector.shape_cast %2 : vector<1x16x16x128xf32> to vector<16x16x128xf32>
    %4 = arith.truncf %3 : vector<16x16x128xf32> to vector<16x16x128xbf16>
    %c1 = arith.constant 1 : index
    %c1_6 = arith.constant 1 : index
    %c0_7 = arith.constant 0 : index
    %5 = vector.load %arg7[%c1, %c1_6, %c0_7] : memref<18x18x128xbf16, #tpu.memory_space<vmem>>, vector<16x16x128xbf16>
    tpu.vector_store %arg7[%c1, %c1_6, %c0_7], %4 {strides = array<i32>} : memref<18x18x128xbf16, #tpu.memory_space<vmem>>, vector<16x16x128xbf16>,
    %c0_8 = arith.constant 0 : index
    %c0_9 = arith.constant 0 : index
    %c0_10 = arith.constant 0 : index
    %6 = vector.load %arg7[%c0_8, %c0_9, %c0_10] : memref<18x18x128xbf16, #tpu.memory_space<vmem>>, vector<18x16x128xbf16>
    %7 = vector.shape_cast %6 : vector<18x16x128xbf16> to vector<288x128xbf16>
    %c0_11 = arith.constant 0 : index
    %c0_12 = arith.constant 0 : index
    %c0_13 = arith.constant 0 : index
    %8 = vector.load %arg8[%c0_11, %c0_12, %c0_13] : memref<3x288x128xbf16, #tpu.memory_space<vmem>>, vector<1x288x128xbf16>
    %9 = vector.shape_cast %8 : vector<1x288x128xbf16> to vector<288x128xbf16>
    %10 = vector.shape_cast %7 : vector<288x128xbf16> to vector<1x288x128xbf16>
    tpu.vector_store %arg8[%c0_11, %c0_12, %c0_13], %10 {strides = array<i32>} : memref<3x288x128xbf16, #tpu.memory_space<vmem>>, vector<1x288x128xbf16>,
    %c0_14 = arith.constant 0 : index
    %c1_15 = arith.constant 1 : index
    %c0_16 = arith.constant 0 : index
    %11 = vector.load %arg7[%c0_14, %c1_15, %c0_16] : memref<18x18x128xbf16, #tpu.memory_space<vmem>>, vector<18x16x128xbf16>
    %12 = vector.shape_cast %11 : vector<18x16x128xbf16> to vector<288x128xbf16>
    %c1_17 = arith.constant 1 : index
    %c0_18 = arith.constant 0 : index
    %c0_19 = arith.constant 0 : index
    %13 = vector.load %arg8[%c1_17, %c0_18, %c0_19] : memref<3x288x128xbf16, #tpu.memory_space<vmem>>, vector<1x288x128xbf16>
    %14 = vector.shape_cast %13 : vector<1x288x128xbf16> to vector<288x128xbf16>
    %15 = vector.shape_cast %12 : vector<288x128xbf16> to vector<1x288x128xbf16>
    tpu.vector_store %arg8[%c1_17, %c0_18, %c0_19], %15 {strides = array<i32>} : memref<3x288x128xbf16, #tpu.memory_space<vmem>>, vector<1x288x128xbf16>,
    %c0_20 = arith.constant 0 : index
    %c2 = arith.constant 2 : index
    %c0_21 = arith.constant 0 : index
    %16 = vector.load %arg7[%c0_20, %c2, %c0_21] : memref<18x18x128xbf16, #tpu.memory_space<vmem>>, vector<18x16x128xbf16>
    %17 = vector.shape_cast %16 : vector<18x16x128xbf16> to vector<288x128xbf16>
    %c2_22 = arith.constant 2 : index
    %c0_23 = arith.constant 0 : index
    %c0_24 = arith.constant 0 : index
    %18 = vector.load %arg8[%c2_22, %c0_23, %c0_24] : memref<3x288x128xbf16, #tpu.memory_space<vmem>>, vector<1x288x128xbf16>
    %19 = vector.shape_cast %18 : vector<1x288x128xbf16> to vector<288x128xbf16>
    %20 = vector.shape_cast %17 : vector<288x128xbf16> to vector<1x288x128xbf16>
    tpu.vector_store %arg8[%c2_22, %c0_23, %c0_24], %20 {strides = array<i32>} : memref<3x288x128xbf16, #tpu.memory_space<vmem>>, vector<1x288x128xbf16>,
    %c0_25 = arith.constant 0 : index
    %c0_26 = arith.constant 0 : index
    %c0_27 = arith.constant 0 : index
    %21 = vector.load %arg8[%c0_25, %c0_26, %c0_27] : memref<3x288x128xbf16, #tpu.memory_space<vmem>>, vector<1x256x128xbf16>
    %22 = vector.shape_cast %21 : vector<1x256x128xbf16> to vector<256x128xbf16>
    %c0_28 = arith.constant 0 : index
    %c0_29 = arith.constant 0 : index
    %c0_30 = arith.constant 0 : index
    %23 = vector.load %arg2[%c0_28, %c0_29, %c0_30] : memref<6x128x128xbf16, #tpu.memory_space<vmem>>, vector<1x128x128xbf16>
    %24 = vector.shape_cast %23 : vector<1x128x128xbf16> to vector<128x128xbf16>
    %cst_31 = arith.constant dense<0.000000e+00> : vector<256x128xf32>
    %25 = tpu.matmul %22, %24, %cst_31 {dimension_numbers = #tpu.dot_dimension_numbers<[1], [0], [0], [1], [0, 0, 1, 1], [], []>} : vector<256x128xbf16>, vector<128x128xbf16>, vector<256x128xf32> -> vector<256x128xf32>
    %c0_32 = arith.constant 0 : index
    %c0_33 = arith.constant 0 : index
    %26 = vector.load %arg9[%c0_32, %c0_33] : memref<256x128xf32, #tpu.memory_space<vmem>>, vector<256x128xf32>
    tpu.vector_store %arg9[%c0_32, %c0_33], %25 {strides = array<i32>} : memref<256x128xf32, #tpu.memory_space<vmem>>, vector<256x128xf32>,
    %c1_34 = arith.constant 1 : index
    %c0_35 = arith.constant 0 : index
    %c0_36 = arith.constant 0 : index
    %27 = vector.load %arg8[%c1_34, %c0_35, %c0_36] : memref<3x288x128xbf16, #tpu.memory_space<vmem>>, vector<1x256x128xbf16>
    %28 = vector.shape_cast %27 : vector<1x256x128xbf16> to vector<256x128xbf16>
    %c1_37 = arith.constant 1 : index
    %c0_38 = arith.constant 0 : index
    %c0_39 = arith.constant 0 : index
    %29 = vector.load %arg2[%c1_37, %c0_38, %c0_39] : memref<6x128x128xbf16, #tpu.memory_space<vmem>>, vector<1x128x128xbf16>
    %30 = vector.shape_cast %29 : vector<1x128x128xbf16> to vector<128x128xbf16>
    %cst_40 = arith.constant dense<0.000000e+00> : vector<256x128xf32>
    %31 = tpu.matmul %28, %30, %cst_40 {dimension_numbers = #tpu.dot_dimension_numbers<[1], [0], [0], [1], [0, 0, 1, 1], [], []>} : vector<256x128xbf16>, vector<128x128xbf16>, vector<256x128xf32> -> vector<256x128xf32>
    %c0_41 = arith.constant 0 : index
    %c0_42 = arith.constant 0 : index
    %32 = vector.load %arg9[%c0_41, %c0_42] : memref<256x128xf32, #tpu.memory_space<vmem>>, vector<256x128xf32>
    %33 = arith.addf %32, %31 : vector<256x128xf32>
    %c0_43 = arith.constant 0 : index
    %c0_44 = arith.constant 0 : index
    %34 = vector.load %arg9[%c0_43, %c0_44] : memref<256x128xf32, #tpu.memory_space<vmem>>, vector<256x128xf32>
    tpu.vector_store %arg9[%c0_43, %c0_44], %33 {strides = array<i32>} : memref<256x128xf32, #tpu.memory_space<vmem>>, vector<256x128xf32>,
    %c2_45 = arith.constant 2 : index
    %c0_46 = arith.constant 0 : index
    %c0_47 = arith.constant 0 : index
    %35 = vector.load %arg8[%c2_45, %c0_46, %c0_47] : memref<3x288x128xbf16, #tpu.memory_space<vmem>>, vector<1x256x128xbf16>
    %36 = vector.shape_cast %35 : vector<1x256x128xbf16> to vector<256x128xbf16>
    %c2_48 = arith.constant 2 : index
    %c0_49 = arith.constant 0 : index
    %c0_50 = arith.constant 0 : index
    %37 = vector.load %arg2[%c2_48, %c0_49, %c0_50] : memref<6x128x128xbf16, #tpu.memory_space<vmem>>, vector<1x128x128xbf16>
    %38 = vector.shape_cast %37 : vector<1x128x128xbf16> to vector<128x128xbf16>
    %cst_51 = arith.constant dense<0.000000e+00> : vector<256x128xf32>
    %39 = tpu.matmul %36, %38, %cst_51 {dimension_numbers = #tpu.dot_dimension_numbers<[1], [0], [0], [1], [0, 0, 1, 1], [], []>} : vector<256x128xbf16>, vector<128x128xbf16>, vector<256x128xf32> -> vector<256x128xf32>
    %c0_52 = arith.constant 0 : index
    %c0_53 = arith.constant 0 : index
    %40 = vector.load %arg9[%c0_52, %c0_53] : memref<256x128xf32, #tpu.memory_space<vmem>>, vector<256x128xf32>
    %41 = arith.addf %40, %39 : vector<256x128xf32>
    %c0_54 = arith.constant 0 : index
    %c0_55 = arith.constant 0 : index
    %42 = vector.load %arg9[%c0_54, %c0_55] : memref<256x128xf32, #tpu.memory_space<vmem>>, vector<256x128xf32>
    tpu.vector_store %arg9[%c0_54, %c0_55], %41 {strides = array<i32>} : memref<256x128xf32, #tpu.memory_space<vmem>>, vector<256x128xf32>,
    %c0_56 = arith.constant 0 : index
    %c16 = arith.constant 16 : index
    %c0_57 = arith.constant 0 : index
    %43 = vector.load %arg8[%c0_56, %c16, %c0_57] : memref<3x288x128xbf16, #tpu.memory_space<vmem>>, vector<1x256x128xbf16>
    %44 = vector.shape_cast %43 : vector<1x256x128xbf16> to vector<256x128xbf16>
    %c3 = arith.constant 3 : index
    %c0_58 = arith.constant 0 : index
    %c0_59 = arith.constant 0 : index
    %45 = vector.load %arg2[%c3, %c0_58, %c0_59] : memref<6x128x128xbf16, #tpu.memory_space<vmem>>, vector<1x128x128xbf16>
    %46 = vector.shape_cast %45 : vector<1x128x128xbf16> to vector<128x128xbf16>
    %cst_60 = arith.constant dense<0.000000e+00> : vector<256x128xf32>
    %47 = tpu.matmul %44, %46, %cst_60 {dimension_numbers = #tpu.dot_dimension_numbers<[1], [0], [0], [1], [0, 0, 1, 1], [], []>} : vector<256x128xbf16>, vector<128x128xbf16>, vector<256x128xf32> -> vector<256x128xf32>
    %c0_61 = arith.constant 0 : index
    %c0_62 = arith.constant 0 : index
    %48 = vector.load %arg9[%c0_61, %c0_62] : memref<256x128xf32, #tpu.memory_space<vmem>>, vector<256x128xf32>
    %49 = arith.addf %48, %47 : vector<256x128xf32>
    %c0_63 = arith.constant 0 : index
    %c0_64 = arith.constant 0 : index
    %50 = vector.load %arg9[%c0_63, %c0_64] : memref<256x128xf32, #tpu.memory_space<vmem>>, vector<256x128xf32>
    tpu.vector_store %arg9[%c0_63, %c0_64], %49 {strides = array<i32>} : memref<256x128xf32, #tpu.memory_space<vmem>>, vector<256x128xf32>,
    %c1_65 = arith.constant 1 : index
    %c16_66 = arith.constant 16 : index
    %c0_67 = arith.constant 0 : index
    %51 = vector.load %arg8[%c1_65, %c16_66, %c0_67] : memref<3x288x128xbf16, #tpu.memory_space<vmem>>, vector<1x256x128xbf16>
    %52 = vector.shape_cast %51 : vector<1x256x128xbf16> to vector<256x128xbf16>
    %c4 = arith.constant 4 : index
    %c0_68 = arith.constant 0 : index
    %c0_69 = arith.constant 0 : index
    %53 = vector.load %arg2[%c4, %c0_68, %c0_69] : memref<6x128x128xbf16, #tpu.memory_space<vmem>>, vector<1x128x128xbf16>
    %54 = vector.shape_cast %53 : vector<1x128x128xbf16> to vector<128x128xbf16>
    %cst_70 = arith.constant dense<0.000000e+00> : vector<256x128xf32>
    %55 = tpu.matmul %52, %54, %cst_70 {dimension_numbers = #tpu.dot_dimension_numbers<[1], [0], [0], [1], [0, 0, 1, 1], [], []>} : vector<256x128xbf16>, vector<128x128xbf16>, vector<256x128xf32> -> vector<256x128xf32>
    %c0_71 = arith.constant 0 : index
    %c0_72 = arith.constant 0 : index
    %56 = vector.load %arg9[%c0_71, %c0_72] : memref<256x128xf32, #tpu.memory_space<vmem>>, vector<256x128xf32>
    %57 = arith.addf %56, %55 : vector<256x128xf32>
    %c0_73 = arith.constant 0 : index
    %c0_74 = arith.constant 0 : index
    %58 = vector.load %arg9[%c0_73, %c0_74] : memref<256x128xf32, #tpu.memory_space<vmem>>, vector<256x128xf32>
    tpu.vector_store %arg9[%c0_73, %c0_74], %57 {strides = array<i32>} : memref<256x128xf32, #tpu.memory_space<vmem>>, vector<256x128xf32>,
    %c2_75 = arith.constant 2 : index
    %c16_76 = arith.constant 16 : index
    %c0_77 = arith.constant 0 : index
    %59 = vector.load %arg8[%c2_75, %c16_76, %c0_77] : memref<3x288x128xbf16, #tpu.memory_space<vmem>>, vector<1x256x128xbf16>
    %60 = vector.shape_cast %59 : vector<1x256x128xbf16> to vector<256x128xbf16>
    %c5 = arith.constant 5 : index
    %c0_78 = arith.constant 0 : index
    %c0_79 = arith.constant 0 : index
    %61 = vector.load %arg2[%c5, %c0_78, %c0_79] : memref<6x128x128xbf16, #tpu.memory_space<vmem>>, vector<1x128x128xbf16>
    %62 = vector.shape_cast %61 : vector<1x128x128xbf16> to vector<128x128xbf16>
    %cst_80 = arith.constant dense<0.000000e+00> : vector<256x128xf32>
    %63 = tpu.matmul %60, %62, %cst_80 {dimension_numbers = #tpu.dot_dimension_numbers<[1], [0], [0], [1], [0, 0, 1, 1], [], []>} : vector<256x128xbf16>, vector<128x128xbf16>, vector<256x128xf32> -> vector<256x128xf32>
    %c0_81 = arith.constant 0 : index
    %c0_82 = arith.constant 0 : index
    %64 = vector.load %arg9[%c0_81, %c0_82] : memref<256x128xf32, #tpu.memory_space<vmem>>, vector<256x128xf32>
    %65 = arith.addf %64, %63 : vector<256x128xf32>
    %c0_83 = arith.constant 0 : index
    %c0_84 = arith.constant 0 : index
    %66 = vector.load %arg9[%c0_83, %c0_84] : memref<256x128xf32, #tpu.memory_space<vmem>>, vector<256x128xf32>
    tpu.vector_store %arg9[%c0_83, %c0_84], %65 {strides = array<i32>} : memref<256x128xf32, #tpu.memory_space<vmem>>, vector<256x128xf32>,
    %c0_85 = arith.constant 0 : index
    %c0_86 = arith.constant 0 : index
    %67 = vector.load %arg9[%c0_85, %c0_86] : memref<256x128xf32, #tpu.memory_space<vmem>>, vector<256x128xf32>
    %c0_87 = arith.constant 0 : index
    %c0_88 = arith.constant 0 : index
    %68 = vector.load %arg3[%c0_87, %c0_88] : memref<1x128xf32, #tpu.memory_space<vmem>>, vector<1x128xf32>
    %69 = vector.broadcast %68 : vector<1x128xf32> to vector<256x128xf32>
    %70 = arith.addf %67, %69 : vector<256x128xf32>
    %c0_89 = arith.constant 0 : index
    %c0_90 = arith.constant 0 : index
    %c0_91 = arith.constant 0 : index
    %c0_92 = arith.constant 0 : index
    %71 = vector.load %arg1[%c0_89, %c0_90, %c0_91, %c0_92] : memref<1x16x16x128xf32, #tpu.memory_space<vmem>>, vector<1x16x16x128xf32>
    %72 = vector.shape_cast %71 : vector<1x16x16x128xf32> to vector<256x128xf32>
    %73 = arith.addf %72, %70 : vector<256x128xf32>
    %cst_93 = arith.constant 0.000000e+00 : f32
    %74 = vector.broadcast %cst_93 : f32 to vector<256x128xf32>
    %75 = arith.maximumf %73, %74 : vector<256x128xf32>
    %cst_94 = arith.constant dense<0.000000e+00> : vector<256xf32>
    %76 = vector.multi_reduction <add>, %75, %cst_94 [1] : vector<256x128xf32> to vector<256xf32>
    %77 = vector.shape_cast %76 : vector<256xf32> to vector<256x1xf32>
    %cst_95 = arith.constant 1.280000e+02 : f32
    %78 = vector.broadcast %cst_95 : f32 to vector<256x1xf32>
    %79 = arith.divf %77, %78 : vector<256x1xf32>
    %80 = vector.broadcast %79 : vector<256x1xf32> to vector<256x128xf32>
    %81 = arith.subf %75, %80 : vector<256x128xf32>
    %82 = arith.mulf %81, %81 : vector<256x128xf32>
    %cst_96 = arith.constant dense<0.000000e+00> : vector<256xf32>
    %83 = vector.multi_reduction <add>, %82, %cst_96 [1] : vector<256x128xf32> to vector<256xf32>
    %84 = vector.shape_cast %83 : vector<256xf32> to vector<256x1xf32>
    %cst_97 = arith.constant 1.280000e+02 : f32
    %85 = vector.broadcast %cst_97 : f32 to vector<256x1xf32>
    %86 = arith.divf %84, %85 : vector<256x1xf32>
    %cst_98 = arith.constant 9.99999974E-6 : f32
    %87 = vector.broadcast %cst_98 : f32 to vector<256x1xf32>
    %88 = arith.addf %86, %87 : vector<256x1xf32>
    %89 = math.rsqrt %88 : vector<256x1xf32>
    %90 = vector.broadcast %89 : vector<256x1xf32> to vector<256x128xf32>
    %91 = arith.mulf %81, %90 : vector<256x128xf32>
    %c0_99 = arith.constant 0 : index
    %c0_100 = arith.constant 0 : index
    %92 = vector.load %arg4[%c0_99, %c0_100] : memref<1x128xf32, #tpu.memory_space<vmem>>, vector<1x128xf32>
    %93 = vector.broadcast %92 : vector<1x128xf32> to vector<256x128xf32>
    %94 = arith.mulf %91, %93 : vector<256x128xf32>
    %c0_101 = arith.constant 0 : index
    %c0_102 = arith.constant 0 : index
    %95 = vector.load %arg5[%c0_101, %c0_102] : memref<1x128xf32, #tpu.memory_space<vmem>>, vector<1x128xf32>
    %96 = vector.broadcast %95 : vector<1x128xf32> to vector<256x128xf32>
    %97 = arith.addf %94, %96 : vector<256x128xf32>
    %98 = vector.shape_cast %97 : vector<256x128xf32> to vector<1x16x16x128xf32>
    %c0_103 = arith.constant 0 : index
    %c0_104 = arith.constant 0 : index
    %c0_105 = arith.constant 0 : index
    %c0_106 = arith.constant 0 : index
    %99 = vector.load %arg6[%c0_103, %c0_104, %c0_105, %c0_106] : memref<1x16x16x128xf32, #tpu.memory_space<vmem>>, vector<1x16x16x128xf32>
    tpu.vector_store %arg6[%c0_103, %c0_104, %c0_105, %c0_106], %98 {strides = array<i32>} : memref<1x16x16x128xf32, #tpu.memory_space<vmem>>, vector<1x16x16x128xf32>,
    return
  }
  func.func @transform_0(%arg0: i32) -> (i32, i32, i32, i32) {
    %c0_i32 = arith.constant 0 : i32
    %c0_i32_0 = arith.constant 0 : i32
    %c0_i32_1 = arith.constant 0 : i32
    %c0_i32_2 = arith.constant 0 : i32
    return %arg0, %c0_i32, %c0_i32_0, %c0_i32_1 : i32, i32, i32, i32
  }
  func.func @transform_1(%arg0: i32) -> (i32, i32, i32) {
    %c0_i32 = arith.constant 0 : i32
    %c0_i32_0 = arith.constant 0 : i32
    %c0_i32_1 = arith.constant 0 : i32
    %c0_i32_2 = arith.constant 0 : i32
    return %c0_i32, %c0_i32_0, %c0_i32_1 : i32, i32, i32
  }
  func.func @transform_2(%arg0: i32) -> (i32, i32) {
    %c0_i32 = arith.constant 0 : i32
    %c0_i32_0 = arith.constant 0 : i32
    %c0_i32_1 = arith.constant 0 : i32
    return %c0_i32, %c0_i32_0 : i32, i32
  }
  func.func @transform_3(%arg0: i32) -> (i32, i32) {
    %c0_i32 = arith.constant 0 : i32
    %c0_i32_0 = arith.constant 0 : i32
    %c0_i32_1 = arith.constant 0 : i32
    return %c0_i32, %c0_i32_0 : i32, i32
  }
  func.func @transform_4(%arg0: i32) -> (i32, i32) {
    %c0_i32 = arith.constant 0 : i32
    %c0_i32_0 = arith.constant 0 : i32
    %c0_i32_1 = arith.constant 0 : i32
    return %c0_i32, %c0_i32_0 : i32, i32
  }
  func.func @transform_5(%arg0: i32) -> (i32, i32, i32, i32) {
    %c0_i32 = arith.constant 0 : i32
    %c0_i32_0 = arith.constant 0 : i32
    %c0_i32_1 = arith.constant 0 : i32
    %c0_i32_2 = arith.constant 0 : i32
    return %arg0, %c0_i32, %c0_i32_0, %c0_i32_1 : i32, i32, i32, i32
  }
}

</mosaic_0001>

<bundles_post_ra>
// kernel: conv_res_norm_forward.1
= control target key start
LH: loop header
LB: loop body
LE: loop exit
PB: predicated region body
PF: predicated region fallthrough
CT: control target
= control target key end

     0   :  { %10 = vsyncpa [#allocation6], 0  ;;  %s7485_s0 = inlined_call_operand.vmem [shape: f32[2,16,16,128], index: 0, kind: input, shape index: {}]   ;;  %s7486_s1 = inlined_call_operand.vmem [shape: bf16[6,128,128], index: 1, kind: input, shape index: {}]   ;;  %s7487_s2 = inlined_call_operand.vmem [shape: f32[1,128], index: 2, kind: input, shape index: {}]   ;;  %s7488_s3 = inlined_call_operand.vmem [shape: f32[1,128], index: 3, kind: input, shape index: {}]   ;;  %s7489_s4 = inlined_call_operand.vmem [shape: f32[1,128], index: 4, kind: input, shape index: {}]   ;;  %s7490_s5 = inlined_call_operand.hbm [shape: f32[2,16,16,128], index: 5, kind: output, shape index: {}]  }
   0x1   :  { %12 = vsyncpa [#allocation6 + $0x1], 0  ;;  %s5986_s18 = smov 0   ;;  %s5988_s19 = smov 0  }
   0x2   :  { %s5990_s20 = smov 0   ;;  %s5992_s21 = smov 0  }
   0x3 LB: > { %s6007_s22 = sadd.s32 4294967295, %s5950_s21   ;;  %s4923_s23 = sadd.s32 4294967294, %s5950_s21   ;;  %s5950_s21 = sphi %s5992_s21, %s7526_s21   ;;  %s5946_s20 = sphi %s5990_s20, %s7525_s20   ;;  %s5942_s19 = sphi %s5988_s19, %s7524_s19   ;;  %s5938_s18 = sphi %s5986_s18, %s7523_s18  }
   0x4   : > { %s6011_s24 = sadd.s32 1, %s5950_s21   ;;  %s135_s25 = sadd.s32 1, %s5946_s20 }
   0x5   : > { %s132_s26 = ssub.s32 %s5950_s21, %s6011_s24  ;;  %p145_p0 = scmp.ne.s32.totalorder %s5946_s20, %s5942_s19 }
   0x6   : > { %p133_p1 = scmp.eq.s32.totalorder %s132_s26, 0  ;;  %p146_p2 = scmp.eq.s32.totalorder %s6007_s22, 1 }
   0x7   : > { %p151_p3 = scmp.ne.s32.totalorder %s5942_s19, %s5938_s18  ;;  %p152_p4 = scmp.eq.s32.totalorder %s4923_s23, 1 }
   0x8   : > { %s6022_s27 = scalar_select %p133_p1, %s5946_s20, %s135_s25  }
   0x9   : > { %p6024_p5 = por %p146_p2, %p145_p0  ;;  %p6028_p6 = por %p152_p4, %p151_p3 }
   0xa   : > { %p4926_p7 = scmp.ge.s32.totalorder %s5950_s21, 1  ;;  %p190_p8 = scmp.lt.s32.totalorder %s5950_s21, 3 }
   0xc   : > { %p191_p9 = pnand %p4926_p7, %p190_p8 }
   0xe   : > { %194 = sbr.rel (%p191_p9) target bundleno = 891 (0x37b), region = 40 }
  0x13   : > { %v5633_v0 = vld [vmem:[%s7486_s1 + $0x38] sm:$0xff]  ;;  %p218_p10 = scmp.lt.s32.totalorder %s6007_s22, 1  ;;  %v5952_v2 = vmov 0   ;;  %v5632_v3 = vld [vmem:[%s7486_s1 + $0x30] sm:$0xff]  ;;  %v5631_v5 = vld [vmem:[%s7486_s1 + $0x28] sm:$0xff]  ;;  %vm666_vm0 = vcmask 1043456  }
  0x14   : > { %v5657_v1 = vld [vmem:[%s7486_s1 + $0x78] sm:$0xff]  ;;  %248 = vst [vmem:[#allocation2 + $0x60] sm:$0xf] %v5952_v2  ;;  %5755 = vmatpush.bf16.msra.mxu2 %v5633_v0  ;;  %1919 = vmatpush.bf16.msra.mxu0 %v5633_v0  ;;  %v5656_v4 = vld [vmem:[%s7486_s1 + $0x70] sm:$0xff]  ;;  %v5655_v6 = vld [vmem:[%s7486_s1 + $0x68] sm:$0xff]  ;;  %vm673_vm6 = vcmask 1040384  }
  0x15   : > { %s219_s11 = scalar_select %p218_p10, %s6007_s22, 1  ;;  %249 = vst [vmem:[#allocation2 + $0x64] sm:$0xf] %v5952_v2  ;;  %2233 = vmatpush.bf16.msra.mxu1 %v5657_v1  ;;  %5763 = vmatpush.bf16.msra.mxu3 %v5657_v1  ;;  %vm342_vm1 = vsmask.f32 256  ;;  %v5630_v15 = vld [vmem:[%s7486_s1 + $0x20] sm:$0xff] }
  0x16   : > { %224 = vst [vmem:[#allocation2] sm:$0xf] %v5952_v2  ;;  %vm343_vm2 = vsmask.f32 4368  ;;  %vm667_vm3 = vsmask.f32 7938  ;;  %vm6215_vm10 = vmand %vm673_vm6, %vm342_vm1 }
  0x17   : > { %s5609_s16 = sshll.u32 %s219_s11, 8  ;;  %225 = vst [vmem:[#allocation2 + $0x4] sm:$0xf] %v5952_v2  ;;  %v5654_v16 = vld [vmem:[%s7486_s1 + $0x60] sm:$0xff]  ;;  %vm6077_vm4 = vmor %vm342_vm1, %vm343_vm2  ;;  %v5629_v25 = vld [vmem:[%s7486_s1 + $0x18] sm:$0xff]  ;;  %vm1525_vm11 = vcmask 1042432  }
  0x18   : > { %s6059_s30 = scalar_lea.vmem %s7485_s0, %s5609_s16  ;;  %5756 = vmatpush.bf16.msra.mxu2 %v5632_v3  ;;  %1920 = vmatpush.bf16.msra.mxu0 %v5632_v3  ;;  %226 = vst [vmem:[#allocation2 + $0x8] sm:$0x1] %v5952_v2  ;;  %vm6086_vm5 = vmand %vm666_vm0, %vm667_vm3  ;;  %v5653_v26 = vld [vmem:[%s7486_s1 + $0x58] sm:$0xff]  ;;  %v5628_v29 = vld [vmem:[%s7486_s1 + $0x10] sm:$0xff]  ;;  %vm909_vm7 = vsmask.f32 3328 }
  0x19   : > { %v292_v7 = vld [vmem:[%s6059_s30 + $0x70] sm:$0xff]  ;;  %v293_v8 = vld [vmem:[%s6059_s30 + $0x78] sm:$0xff]  ;;  %2234 = vmatpush.bf16.msra.mxu1 %v5656_v4  ;;  %5764 = vmatpush.bf16.msra.mxu3 %v5656_v4  ;;  %227 = vst [vmem:[#allocation2 + $0xc] sm:$0xf] %v5952_v2  ;;  %v5627_v31 = vld [vmem:[%s7486_s1 + $0x8] sm:$0xff]  ;;  %vm1526_vm12 = vcmask 1046532  }
  0x1a   : > { %v324_v9 = vpack.c.bf16 %v292_v7, %v292_v7  ;;  %v325_v10 = vpack.c.bf16 %v293_v8, %v293_v8  ;;  %228 = vst [vmem:[#allocation2 + $0x10] sm:$0xf] %v5952_v2  ;;  %v5652_v30 = vld [vmem:[%s7486_s1 + $0x50] sm:$0xff]  ;;  %v5651_v32 = vld [vmem:[%s7486_s1 + $0x48] sm:$0xff]  ;;  %v5626_v34 = vld [vmem:[%s7486_s1] sm:$0xff]  ;;  %s5754_s14 = sshll.u32 %s6007_s22, 8 }
  0x1b   : > { %229 = vst [vmem:[#allocation2 + $0x14] sm:$0x1] %v5952_v2  ;;  %v720_v21 = vld [vmem:[#allocation2 + $0x60] sm:$0xf]  ;;  %v5681_v41 = vld [vmem:[%s7486_s1 + $0xb8] sm:$0xff]  ;;  %v295_v50 = vld [vmem:[%s6059_s30 + $0x88] sm:$0xff]  ;;  %s4857_s17 = scalar_lea.hbm %s7490_s5, %s5754_s14 }
  0x1c   : > { %v465_v11 = vshrl.u32 %v324_v9, 16  ;;  %v468_v12 = vshll.u32 %v324_v9, 16  ;;  %v473_v13 = vshrl.u32 %v325_v10, 16  ;;  %v476_v14 = vshll.u32 %v325_v10, 16  ;;  %5757 = vmatpush.bf16.msra.mxu2 %v5631_v5  ;;  %1921 = vmatpush.bf16.msra.mxu0 %v5631_v5  ;;  %230 = vst [vmem:[#allocation2 + $0x18] sm:$0xf] %v5952_v2  ;;  %vm6595_vm13 = vmor %vm1525_vm11, %vm1526_vm12 }
  0x1d   : > { %2235 = vmatpush.bf16.msra.mxu1 %v5655_v6  ;;  %5765 = vmatpush.bf16.msra.mxu3 %v5655_v6  ;;  %231 = vst [vmem:[#allocation2 + $0x1c] sm:$0xf] %v5952_v2  ;;  %v5650_v35 = vld [vmem:[%s7486_s1 + $0x40] sm:$0xff]  ;;  %v6162_v58 = vpack.c.bf16 %v295_v50, %v295_v50  ;;  %v279_v59 = vld [vmem:[%s6059_s30 + $0x8] sm:$0xff]  ;;  %vm910_vm8 = vsmask.f32 7440 }
  0x1e   : > { %v467_v18 = vrot.slane %v465_v11, 7  ;;  %v6081_v19 = vrot.slane %v473_v13, 7  ;;  %232 = vst [vmem:[#allocation2 + $0x20] sm:$0x1] %v5952_v2  ;;  %v855_v37 = vld [vmem:[#allocation2] sm:$0xf]  ;;  %v6173_v6 = vpack.c.bf16 %v279_v59, %v279_v59  ;;  %vm6191_vm9 = vmor %vm909_vm7, %vm910_vm8 }
  0x1f   : > { %233 = vst [vmem:[#allocation2 + $0x24] sm:$0xf] %v5952_v2  ;;  %v856_v38 = vld [vmem:[#allocation2 + $0x4] sm:$0xf]  ;;  %v913_v39 = vshrl.u32 %v855_v37, 16  ;;  %v916_v40 = vshll.u32 %v855_v37, 16 }
  0x20   : > { %v470_v22 = vor.u32 %v468_v12, %v467_v18  ;;  %v471_v23 = vrot.slane %v467_v18, 4  ;;  %v478_v24 = vor.u32 %v476_v14, %v6081_v19  ;;  %5758 = vmatpush.bf16.msra.mxu2 %v5630_v15  ;;  %1922 = vmatpush.bf16.msra.mxu0 %v5630_v15  ;;  %234 = vst [vmem:[#allocation2 + $0x28] sm:$0xf] %v5952_v2  ;;  %v922_v42 = vshll.u32 %v856_v38, 16  ;;  %v294_v47 = vld [vmem:[%s6059_s30 + $0x80] sm:$0xff]  ;;  %v296_v11 = vld [vmem:[%s6059_s30 + $0x90] sm:$0xff] }
  0x21   : > { %2236 = vmatpush.bf16.msra.mxu1 %v5654_v16  ;;  %5766 = vmatpush.bf16.msra.mxu3 %v5654_v16  ;;  %235 = vst [vmem:[#allocation2 + $0x2c] sm:$0x1] %v5952_v2  ;;  %v926_v43 = vshrl.u32 %v856_v38, 16  ;;  %v915_v45 = vrot.slane %v913_v39, 4  ;;  %v918_v46 = vrot.slane %v916_v40, 5  ;;  %v278_v53 = vld [vmem:[%s6059_s30] sm:$0xff]  ;;  %v6159_v55 = vpack.c.bf16 %v294_v47, %v294_v47 }
  0x22   : > { %v479_v27 = vsel %vm6077_vm4, %v471_v23, %v478_v24  ;;  %v721_v28 = vsel %vm6086_vm5, %v470_v22, %v720_v21  ;;  %236 = vst [vmem:[#allocation2 + $0x30] sm:$0xf] %v5952_v2  ;;  %v6153_v48 = vrot.slane %v922_v42, 5  ;;  %v857_v56 = vld [vmem:[#allocation2 + $0x8] sm:$0x1]  ;;  %v480_v60 = vrot.slane %v6081_v19, 4 }
  0x23   : > { %722 = vst [vmem:[#allocation2 + $0x60] sm:$0xf] %v721_v28  ;;  %v928_v49 = vrot.slane %v926_v43, 4  ;;  %v919_v57 = vor.u32 %v918_v46, %v915_v45  ;;  %v6168_v62 = vpack.c.bf16 %v278_v53, %v278_v53  ;;  %v932_v4 = vshll.u32 %v857_v56, 16  ;;  %v297_v12 = vld [vmem:[%s6059_s30 + $0x98] sm:$0xff]  ;;  %v280_v18 = vld [vmem:[%s6059_s30 + $0x10] sm:$0xff] }
  0x24   : > { %723 = vst [vmem:[#allocation2 + $0x64] sm:$0xf] %v479_v27  ;;  %5759 = vmatpush.bf16.msra.mxu2 %v5629_v25  ;;  %1923 = vmatpush.bf16.msra.mxu0 %v5629_v25  ;;  %v482_v5 = vshrl.u32 %v6159_v55, 16  ;;  %v490_v8 = vshrl.u32 %v6162_v58, 16  ;;  %v5705_v16 = vld [vmem:[%s7486_s1 + $0xf8] sm:$0xff]  ;;  %v485_v24 = vshll.u32 %v6159_v55, 16 }
  0x25   : > { %2237 = vmatpush.bf16.msra.mxu1 %v5653_v26  ;;  %5767 = vmatpush.bf16.msra.mxu3 %v5653_v26  ;;  %237 = vst [vmem:[#allocation2 + $0x34] sm:$0xf] %v5952_v2  ;;  %v929_v61 = vor.u32 %v928_v49, %v6153_v48  ;;  %v920_v7 = vrot.slane %v919_v57, 4  ;;  %v346_v10 = vshrl.u32 %v6168_v62, 16  ;;  %v934_v22 = vrot.slane %v932_v4, 5  ;;  %v5729_v27 = vld [vmem:[%s7486_s1 + $0x138] sm:$0xff] }
  0x26   : > { %238 = vst [vmem:[#allocation2 + $0x38] sm:$0x1] %v5952_v2  ;;  %v484_v23 = vrot.slane %v482_v5, 7  ;;  %v354_v25 = vshrl.u32 %v6173_v6, 16  ;;  %v6198_v26 = vrot.slane %v490_v8, 7  ;;  %v5753_v28 = vld [vmem:[%s7486_s1 + $0x178] sm:$0xff] }
  0x27   : > { %239 = vst [vmem:[#allocation2 + $0x3c] sm:$0xf] %v5952_v2  ;;  %v930_v9 = vrot.slane %v929_v61, 4  ;;  %v783_v37 = vld [vmem:[#allocation2] sm:$0xff]   ;;  %v348_v40 = vrot.slane %v346_v10, 7  ;;  %v925_v42 = vsel %vm6191_vm9, %v920_v7, %v6153_v48  ;;  %v357_v45 = vshll.u32 %v6173_v6, 16 }
  0x28   : > { %5760 = vmatpush.bf16.msra.mxu2 %v5628_v29  ;;  %1924 = vmatpush.bf16.msra.mxu0 %v5628_v29  ;;  %240 = vst [vmem:[#allocation2 + $0x40] sm:$0xf] %v5952_v2  ;;  %v5680_v29 = vld [vmem:[%s7486_s1 + $0xb0] sm:$0xff]  ;;  %v487_v48 = vor.u32 %v485_v24, %v484_v23  ;;  %v669_v57 = vld [vmem:[#allocation2 + $0xc] sm:$0xf]  ;;  %s4860_s22 = sshll.u32 %s4857_s17, 4  ;;  %s4861_s22 = int_to_ptr.hbm [resolvable:$true] %s4860_s22 }
  0x29   : > { %2238 = vmatpush.bf16.msra.mxu1 %v5652_v30  ;;  %5768 = vmatpush.bf16.msra.mxu3 %v5652_v30  ;;  %241 = vst [vmem:[#allocation2 + $0x44] sm:$0x1] %v5952_v2  ;;  %v6209_v30 = vpack.c.bf16 %v296_v11, %v296_v11  ;;  %v935_v43 = vsel %vm6191_vm9, %v930_v9, %v934_v22  ;;  %v352_v56 = vrot.slane %v348_v40, 4  ;;  %v675_v61 = vld [vmem:[#allocation2 + $0x14] sm:$0x1]  ;;  %v298_v11 = vld [vmem:[%s6059_s30 + $0xa0] sm:$0xff] }
  0x2a   : > { %242 = vst [vmem:[#allocation2 + $0x48] sm:$0xf] %v5952_v2  ;;  %v879_v44 = vld [vmem:[#allocation2 + $0x60] sm:$0xf]  ;;  %v4004_v20 = vld [vmem:[%s6059_s30 + $0x30] sm:$0xff]  ;;  %s5902_s26 = sshra.s32 %s4861_s22, 4  ;;  %s5903_s26 = int_to_ptr.hbm [resolvable:$true] %s5902_s26 }
  0x2b   : > { %v799_v33 = vld [vmem:[#allocation2 + $0x60] sm:$0xff]   ;;  %243 = vst [vmem:[#allocation2 + $0x4c] sm:$0xf] %v5952_v2  ;;  %v1105_v51 = vshrl.u32 %v879_v44, 16  ;;  %v1108_v52 = vshll.u32 %v879_v44, 16  ;;  %v356_v44 = vrot.slane %v354_v25, 7  ;;  %p5909_p0 = scmp.lt.s32.totalorder %s5903_s26, %s7490_s5 }
  0x2c   : > { %835 = vst [vmem:[#allocation3 + $0x40] sm:$0xff] %v799_v33   ;;  %5761 = vmatpush.bf16.msra.mxu2 %v5627_v31  ;;  %1925 = vmatpush.bf16.msra.mxu0 %v5627_v31  ;;  %v880_v54 = vld [vmem:[#allocation2 + $0x64] sm:$0xf]  ;;  %v6211_v31 = vpack.c.bf16 %v297_v12, %v297_v12  ;;  %v499_v47 = vshrl.u32 %v6209_v30, 16  ;;  %s5904_s6 = scalar_lea.hbm %s5903_s26, 256  ;;  %s5908_s10 = scalar_lea.hbm %s7490_s5, 512 }
  0x2d   : > { %2239 = vmatpush.bf16.msra.mxu1 %v5651_v32  ;;  %5769 = vmatpush.bf16.msra.mxu3 %v5651_v32  ;;  %244 = vst [vmem:[#allocation2 + $0x50] sm:$0x1] %v5952_v2  ;;  %v1107_v63 = vrot.slane %v1105_v51, 4  ;;  %v1110_v0 = vrot.slane %v1108_v52, 5  ;;  %v1114_v1 = vshll.u32 %v880_v54, 16  ;;  %v1118_v3 = vshrl.u32 %v880_v54, 16  ;;  %p5905_p11 = scmp.ne.s32.totalorder %s5903_s26, %s5904_s6  ;;  %p5910_p1 = scmp.lt.s32.totalorder %s5908_s10, %s5904_s6 }
  0x2e   : > { %245 = vst [vmem:[#allocation2 + $0x54] sm:$0xf] %v5952_v2  ;;  %v507_v49 = vshrl.u32 %v6211_v31, 16  ;;  %v488_v51 = vrot.slane %v484_v23, 4  ;;  %v359_v59 = vor.u32 %v357_v45, %v356_v44  ;;  %v510_v5 = vshll.u32 %v6211_v31, 16  ;;  %v5704_v23 = vld [vmem:[%s7486_s1 + $0xf0] sm:$0xff] }
  0x2f   : > { %246 = vst [vmem:[#allocation2 + $0x58] sm:$0xf] %v5952_v2  ;;  %v1111_v13 = vor.u32 %v1110_v0, %v1107_v63  ;;  %v6182_v14 = vrot.slane %v1114_v1, 5  ;;  %v1120_v15 = vrot.slane %v1118_v3, 4  ;;  %v502_v63 = vshll.u32 %v6209_v30, 16  ;;  %v282_v45 = vld [vmem:[%s6059_s30 + $0x20] sm:$0xff]  ;;  %p5906_p12 = pnand %p5905_p11, %p6024_p5  ;;  %p5911_p2 = por %p5910_p1, %p5909_p0 }
  0x30   : > { %5762 = vmatpush.bf16.msra.mxu2 %v5626_v34  ;;  %1926 = vmatpush.bf16.msra.mxu0 %v5626_v34  ;;  %247 = vst [vmem:[#allocation2 + $0x5c] sm:$0x1] %v5952_v2  ;;  %v493_v34 = vshll.u32 %v6162_v58, 16  ;;  %v497_v58 = vrot.slane %v6198_v26, 4  ;;  %v6254_v0 = vrot.slane %v507_v49, 7  ;;  %v360_v9 = vsel %vm6077_vm4, %v352_v56, %v359_v59 }
  0x31   : > { %2240 = vmatpush.bf16.msra.mxu1 %v5650_v35  ;;  %5770 = vmatpush.bf16.msra.mxu3 %v5650_v35  ;;  %250 = vst [vmem:[#allocation2 + $0x68] sm:$0x1] %v5952_v2  ;;  %v281_v35 = vld [vmem:[%s6059_s30 + $0x18] sm:$0xff]  ;;  %v1112_v38 = vrot.slane %v1111_v13, 4  ;;  %v1121_v39 = vor.u32 %v1120_v15, %v6182_v14  ;;  %v6272_v13 = vpack.c.bf16 %v298_v11, %v298_v11  ;;  %p5907_p13 = pneg %p5906_p12 }
  0x32   : > { %251 = vst [vmem:[#allocation2 + $0x6c] sm:$0xf] %v5952_v2  ;;  %v6241_v50 = vpack.c.bf16 %v281_v35, %v281_v35  ;;  %v495_v52 = vor.u32 %v493_v34, %v6198_v26  ;;  %v512_v31 = vor.u32 %v510_v5, %v6254_v0  ;;  %v5752_v34 = vld [vmem:[%s7486_s1 + $0x170] sm:$0xff] }
  0x33   : > { %v5618_v36 = vld [vmem:[#allocation3 + $0x40] sm:$0xff]  ;;  %252 = vst [vmem:[#allocation2 + $0x70] sm:$0xf] %v5952_v2  ;;  %v6248_v19 = vrot.slane %v1121_v39, 4  ;;  %p5912_p3 = pnand %p5911_p2, %p5907_p13 }
  0x34   : > { %1967 = vmatmul.bf16.vlgmr.msra.gmra.mxu2 %v5618_v36  ;;  %253 = vst [vmem:[#allocation2 + $0x74] sm:$0x1] %v5952_v2  ;;  %v6222_v36 = vpack.c.bf16 %v280_v18, %v280_v18  ;;  %3367 = vmatpush.bf16.msrb.mxu0 %v5729_v27  ;;  %v371_v1 = vshrl.u32 %v6241_v50, 16  ;;  %v496_v3 = vsel %vm6077_vm4, %v488_v51, %v495_v52  ;;  %v374_v15 = vshll.u32 %v6241_v50, 16 }
  0x35   : > { %254 = vst [vmem:[#allocation2 + $0x78] sm:$0xf] %v5952_v2  ;;  %2611 = vmatpush.bf16.msrb.mxu2 %v5681_v41  ;;  %2989 = vmatpush.bf16.msrb.mxu3 %v5705_v16  ;;  %v349_v41 = vshll.u32 %v6168_v62, 16  ;;  %v6251_v62 = vrot.slane %v499_v47, 7  ;;  %v299_v16 = vld [vmem:[%s6059_s30 + $0xa8] sm:$0xff]  ;;  %v6311_v50 = vpack.c.bf16 %v282_v45, %v282_v45  ;;  %v519_v51 = vshll.u32 %v6272_v13, 16 }
  0x36   : > { %255 = vst [vmem:[#allocation2 + $0x7c] sm:$0xf] %v5952_v2  ;;  %3745 = vmatpush.bf16.msrb.mxu1 %v5753_v28  ;;  %v363_v54 = vshrl.u32 %v6222_v36, 16  ;;  %v366_v8 = vshll.u32 %v6222_v36, 16  ;;  %v6283_v26 = vpack.c.bf16 %v299_v16, %v299_v16  ;;  %v514_v36 = vrot.slane %v6254_v0, 4 }
  0x37   : > { %256 = vst [vmem:[#allocation2 + $0x80] sm:$0x1] %v5952_v2  ;;  %v351_v55 = vor.u32 %v349_v41, %v348_v40  ;;  %v505_v24 = vrot.slane %v6251_v62, 4  ;;  %v6286_v28 = vor.u32 %v502_v63, %v6251_v62  ;;  %v678_v40 = vld [vmem:[#allocation2 + $0x18] sm:$0xf] }
  0x38   : > { %257 = vst [vmem:[#allocation2 + $0x84] sm:$0xf] %v5952_v2  ;;  %v724_v33 = vld [vmem:[#allocation2 + $0x68] sm:$0x1]  ;;  %v6262_v6 = vrot.slane %v363_v54, 7 }
  0x39   : > { %258 = vst [vmem:[#allocation2 + $0x88] sm:$0xf] %v5952_v2  ;;  %2612 = vmatpush.bf16.msrb.mxu2 %v5680_v29  ;;  %v725_v46 = vsel %vm6215_vm10, %v480_v60, %v724_v33  ;;  %v727_v53 = vld [vmem:[#allocation2 + $0x6c] sm:$0xf]  ;;  %v361_v60 = vrot.slane %v356_v44, 4  ;;  %v670_v7 = vsel %vm6086_vm5, %v351_v55, %v669_v57  ;;  %v516_v29 = vshrl.u32 %v6272_v13, 16  ;;  %2990 = vmatpush.bf16.msrb.mxu3 %v5704_v23 }
  0x3a   : > { %259 = vst [vmem:[#allocation2 + $0x8c] sm:$0x1] %v5952_v2  ;;  %v728_v4 = vsel %vm6086_vm5, %v487_v48, %v727_v53  ;;  %v369_v25 = vrot.slane %v6262_v6, 4  ;;  %v5728_v33 = vld [vmem:[%s7486_s1 + $0x130] sm:$0xff]  ;;  %v6297_v35 = vor.u32 %v366_v8, %v6262_v6  ;;  %3746 = vmatpush.bf16.msrb.mxu1 %v5752_v34  ;;  %v524_v44 = vshrl.u32 %v6283_v26, 16  ;;  %v283_v54 = vld [vmem:[%s6059_s30 + $0x28] sm:$0xff] }
  0x3b   : > { %260 = vst [vmem:[#allocation2 + $0x90] sm:$0xf] %v5952_v2  ;;  %v676_v10 = vsel %vm6215_vm10, %v361_v60, %v675_v61  ;;  %v731_v22 = vld [vmem:[#allocation2 + $0x74] sm:$0x1]  ;;  %v6304_v41 = vrot.slane %v516_v29, 7  ;;  %3368 = vmatpush.bf16.msrb.mxu0 %v5728_v33  ;;  %v527_v53 = vshll.u32 %v6283_v26, 16  ;;  %v513_v55 = vsel %vm6077_vm4, %v505_v24, %v512_v31 }
  0x3c   : > { %261 = vst [vmem:[#allocation2 + $0x94] sm:$0xf] %v5952_v2  ;;  %v682_v47 = vld [vmem:[#allocation2 + $0x20] sm:$0x1]  ;;  %v6322_v56 = vrot.slane %v524_v44, 7  ;;  %v380_v57 = vshrl.u32 %v6311_v50, 16  ;;  %v679_v62 = vsel %vm6086_vm5, %v6297_v35, %v678_v40 }
  0x3d   : > { %262 = vst [vmem:[#allocation2 + $0x98] sm:$0x1] %v5952_v2  ;;  %v522_v52 = vrot.slane %v6304_v41, 4  ;;  %v383_v34 = vshll.u32 %v6311_v50, 16  ;;  %v5703_v44 = vld [vmem:[%s7486_s1 + $0xe8] sm:$0xff]  ;;  %v521_v45 = vor.u32 %v519_v51, %v6304_v41 }
  0x3e   : > { %263 = vst [vmem:[#allocation2 + $0x9c] sm:$0xf] %v5952_v2  ;;  %v738_v49 = vld [vmem:[#allocation2 + $0x80] sm:$0x1]  ;;  %v6339_v33 = vrot.slane %v380_v57, 7  ;;  %2991 = vmatpush.bf16.msrb.mxu3 %v5703_v44  ;;  %v529_v51 = vor.u32 %v527_v53, %v6322_v56 }
  0x3f   : > { %264 = vst [vmem:[#allocation2 + $0xa0] sm:$0xf] %v5952_v2 }
  0x40   : > { %265 = vst [vmem:[#allocation2 + $0xa4] sm:$0x1] %v5952_v2  ;;  %v385_v26 = vor.u32 %v383_v34, %v6339_v33 }
  0x41   : > { %266 = vst [vmem:[#allocation2 + $0xa8] sm:$0xf] %v5952_v2 }
  0x42   : > { %267 = vst [vmem:[#allocation2 + $0xac] sm:$0xf] %v5952_v2 }
  0x43   : > { %268 = vst [vmem:[#allocation2 + $0xb0] sm:$0x1] %v5952_v2 }
  0x44   : > { %269 = vst [vmem:[#allocation2 + $0xb4] sm:$0xf] %v5952_v2 }
  0x45   : > { %270 = vst [vmem:[#allocation2 + $0xb8] sm:$0xf] %v5952_v2 }
  0x46   : > { %271 = vst [vmem:[#allocation2 + $0xbc] sm:$0x1] %v5952_v2 }
  0x47   : > { %272 = vst [vmem:[#allocation2 + $0xc0] sm:$0xf] %v5952_v2 }
  0x48   : > { %273 = vst [vmem:[#allocation2 + $0xc4] sm:$0xf] %v5952_v2 }
  0x49   : > { %274 = vst [vmem:[#allocation2 + $0xc8] sm:$0x1] %v5952_v2 }
  0x4a   : > { %275 = vst [vmem:[#allocation2 + $0xcc] sm:$0xf] %v5952_v2 }
  0x4b   : > { %276 = vst [vmem:[#allocation2 + $0xd0] sm:$0xf] %v5952_v2 }
  0x4c   : > { %277 = vst [vmem:[#allocation2 + $0xd4] sm:$0x1] %v5952_v2  ;;  %v1117_v2 = vsel %vm6191_vm9, %v1112_v38, %v6182_v14  ;;  %v6274_v14 = vrot.slane %v371_v1, 7  ;;  %v5679_v38 = vld [vmem:[%s7486_s1 + $0xa8] sm:$0xff] }
  0x4d   : > { %819 = vst [vmem:[#allocation3] sm:$0xff] %v783_v37   ;;  %v734_v37 = vld [vmem:[#allocation2 + $0x78] sm:$0xf]  ;;  %2613 = vmatpush.bf16.msrb.mxu2 %v5679_v38 }
  0x4e   : > { %1381 = vst [vmem:[#allocation3 + $0x90] sm:$0xf] %v925_v42  ;;  %v376_v39 = vor.u32 %v374_v15, %v6274_v14  ;;  %v735_v60 = vsel %vm6086_vm5, %v6286_v28, %v734_v37  ;;  %v6337_v15 = vpack.c.bf16 %v283_v54, %v283_v54  ;;  %v300_v54 = vld [vmem:[%s6059_s30 + $0xb0] sm:$0xff] }
  0x4f   : > { %1382 = vst [vmem:[#allocation3 + $0x94] sm:$0xf] %v935_v43  ;;  %v378_v43 = vrot.slane %v6274_v14, 4 }
  0x50   : > { %726 = vst [vmem:[#allocation2 + $0x68] sm:$0x1] %v725_v46  ;;  %v732_v46 = vsel %vm6215_vm10, %v497_v58, %v731_v22  ;;  %v377_v61 = vsel %vm6077_vm4, %v369_v25, %v376_v39  ;;  %v388_v39 = vshrl.u32 %v6337_v15, 16 }
  0x51   : > { %1397 = vst [vmem:[#allocation3 + $0xd0] sm:$0xf] %v1117_v2 }
  0x52   : > { %729 = vst [vmem:[#allocation2 + $0x6c] sm:$0xf] %v728_v4  ;;  %v683_v4 = vsel %vm6215_vm10, %v378_v43, %v682_v47  ;;  %v390_v53 = vrot.slane %v388_v39, 7 }
  0x53   : > { %730 = vst [vmem:[#allocation2 + $0x70] sm:$0xf] %v496_v3 }
  0x54   : > { %v5610_v12 = vld [vmem:[#allocation3] sm:$0xff]  ;;  %671 = vst [vmem:[#allocation2 + $0xc] sm:$0xf] %v670_v7  ;;  %v395_v44 = vrot.slane %v390_v53, 4 }
  0x55   : > { %1927 = vmatmul.bf16.vlgmr.msra.gmra.mxu0 %v5610_v12  ;;  %672 = vst [vmem:[#allocation2 + $0x10] sm:$0xf] %v360_v9 }
  0x56   : > { %v5634_v18 = vld [vmem:[#allocation3 + $0x90] sm:$0xff]  ;;  %677 = vst [vmem:[#allocation2 + $0x14] sm:$0x1] %v676_v10  ;;  %v739_v10 = vsel %vm6215_vm10, %v514_v36, %v738_v49 }
  0x57   : > { %v881_v27 = vld [vmem:[#allocation2 + $0x68] sm:$0x1]  ;;  %2241 = vmatmul.bf16.vlgmr.msra.gmra.mxu1 %v5634_v18  ;;  %733 = vst [vmem:[#allocation2 + $0x74] sm:$0x1] %v732_v46  ;;  %v741_v46 = vld [vmem:[#allocation2 + $0x84] sm:$0xf] }
  0x58   : > { %v1124_v30 = vshll.u32 %v881_v27, 16  ;;  %736 = vst [vmem:[#allocation2 + $0x78] sm:$0xf] %v735_v60 }
  0x59   : > { %v882_v2 = vld [vmem:[#allocation2 + $0x6c] sm:$0xf]  ;;  %737 = vst [vmem:[#allocation2 + $0x7c] sm:$0xf] %v513_v55 }
  0x5a   : > { %v1126_v42 = vrot.slane %v1124_v30, 5  ;;  %v801_v58 = vld [vmem:[#allocation2 + $0x6c] sm:$0xff]   ;;  %v1132_v0 = vshll.u32 %v882_v2, 16  ;;  %680 = vst [vmem:[#allocation2 + $0x18] sm:$0xf] %v679_v62  ;;  %v5678_v62 = vld [vmem:[%s7486_s1 + $0xa0] sm:$0xff] }
  0x5b   : > { %v883_v59 = vld [vmem:[#allocation2 + $0x70] sm:$0xf]  ;;  %837 = vst [vmem:[#allocation3 + $0x48] sm:$0xff] %v801_v58   ;;  %v858_v63 = vld [vmem:[#allocation2 + $0xc] sm:$0xf]  ;;  %2614 = vmatpush.bf16.msrb.mxu2 %v5678_v62 }
  0x5c   : > { %v1127_v48 = vsel %vm6191_vm9, %v6248_v19, %v1126_v42  ;;  %v1129_v19 = vshrl.u32 %v882_v2, 16  ;;  %v1138_v1 = vshll.u32 %v883_v59, 16  ;;  %v1142_v3 = vshrl.u32 %v883_v59, 16  ;;  %v785_v5 = vld [vmem:[#allocation2 + $0xc] sm:$0xff]   ;;  %681 = vst [vmem:[#allocation2 + $0x1c] sm:$0xf] %v377_v61 }
  0x5d   : > { %1398 = vst [vmem:[#allocation3 + $0xd4] sm:$0xf] %v1127_v48  ;;  %v859_v6 = vld [vmem:[#allocation2 + $0x10] sm:$0xf]  ;;  %v937_v7 = vshrl.u32 %v858_v63, 16  ;;  %v940_v8 = vshll.u32 %v858_v63, 16 }
  0x5e   : > { %v1131_v9 = vrot.slane %v1129_v19, 4  ;;  %821 = vst [vmem:[#allocation3 + $0x8] sm:$0xff] %v785_v5   ;;  %v860_v11 = vld [vmem:[#allocation2 + $0x14] sm:$0x1]  ;;  %v946_v12 = vshll.u32 %v859_v6, 16  ;;  %v950_v13 = vshrl.u32 %v859_v6, 16 }
  0x5f   : > { %v1134_v14 = vrot.slane %v1132_v0, 5  ;;  %v939_v16 = vrot.slane %v937_v7, 4  ;;  %v942_v18 = vrot.slane %v940_v8, 5  ;;  %v956_v22 = vshll.u32 %v860_v11, 16  ;;  %v884_v36 = vld [vmem:[#allocation2 + $0x74] sm:$0x1] }
  0x60   : > { %v1140_v23 = vrot.slane %v1138_v1, 5  ;;  %v948_v24 = vrot.slane %v946_v12, 5  ;;  %v952_v25 = vrot.slane %v950_v13, 4  ;;  %v1144_v28 = vrot.slane %v1142_v3, 4  ;;  %684 = vst [vmem:[#allocation2 + $0x20] sm:$0x1] %v683_v4 }
  0x61   : > { %v1135_v27 = vor.u32 %v1134_v14, %v1131_v9  ;;  %v943_v30 = vor.u32 %v942_v18, %v939_v16  ;;  %v958_v31 = vrot.slane %v956_v22, 5  ;;  %v1148_v43 = vshll.u32 %v884_v36, 16  ;;  %740 = vst [vmem:[#allocation2 + $0x80] sm:$0x1] %v739_v10  ;;  %v5727_v58 = vld [vmem:[%s7486_s1 + $0x128] sm:$0xff]  ;;  %v803_v0 = vld [vmem:[#allocation2 + $0x78] sm:$0xff]  }
  0x62   : > { %v953_v35 = vor.u32 %v952_v25, %v948_v24  ;;  %v1145_v38 = vor.u32 %v1144_v28, %v1140_v23  ;;  %v5619_v40 = vld [vmem:[#allocation3 + $0x48] sm:$0xff]  ;;  %v531_v48 = vrot.slane %v6322_v56, 4  ;;  %v5751_v59 = vld [vmem:[%s7486_s1 + $0x168] sm:$0xff]  ;;  %v885_v61 = vld [vmem:[#allocation2 + $0x78] sm:$0xf]  ;;  %v742_v7 = vsel %vm6086_vm5, %v521_v45, %v741_v46  ;;  %3369 = vmatpush.bf16.msrb.mxu0 %v5727_v58  ;;  %839 = vst [vmem:[#allocation3 + $0x50] sm:$0xff] %v803_v0  }
  0x63   : > { %v1136_v37 = vrot.slane %v1135_v27, 4  ;;  %v944_v42 = vrot.slane %v943_v30, 4  ;;  %1972 = vmatmul.bf16.gmra.mxu2 %v5619_v40  ;;  %v1150_v57 = vrot.slane %v1148_v43, 5  ;;  %v685_v19 = vld [vmem:[#allocation2 + $0x24] sm:$0xf]  ;;  %v1153_v3 = vshrl.u32 %v885_v61, 16  ;;  %3747 = vmatpush.bf16.msrb.mxu1 %v5751_v59 }
  0x64   : > { %v5642_v29 = vld [vmem:[#allocation3 + $0xd0] sm:$0xff]  ;;  %v954_v47 = vrot.slane %v953_v35, 4  ;;  %v1146_v50 = vrot.slane %v1145_v38, 4  ;;  %v886_v1 = vld [vmem:[#allocation2 + $0x7c] sm:$0xf]  ;;  %v1156_v5 = vshll.u32 %v885_v61, 16  ;;  %v530_v12 = vsel %vm6077_vm4, %v522_v52, %v529_v51 }
  0x65   : > { %2281 = vmatmul.bf16.vlgmr.msra.gmra.mxu3 %v5642_v29  ;;  %v1141_v49 = vsel %vm6191_vm9, %v1136_v37, %v1140_v23  ;;  %v5611_v2 = vld [vmem:[#allocation3 + $0x8] sm:$0xff]  ;;  %v949_v55 = vsel %vm6191_vm9, %v944_v42, %v948_v24  ;;  %v861_v4 = vld [vmem:[#allocation2 + $0x18] sm:$0xf]  ;;  %v1162_v6 = vshll.u32 %v886_v1, 16  ;;  %v862_v9 = vld [vmem:[#allocation2 + $0x1c] sm:$0xf]  ;;  %v6376_v13 = vpack.c.bf16 %v300_v54, %v300_v54 }
  0x66   : > { %1399 = vst [vmem:[#allocation3 + $0xd8] sm:$0xf] %v1141_v49  ;;  %v959_v60 = vsel %vm6191_vm9, %v954_v47, %v958_v31  ;;  %1932 = vmatmul.bf16.gmra.mxu0 %v5611_v2  ;;  %v1151_v63 = vsel %vm6191_vm9, %v1146_v50, %v1150_v57  ;;  %v787_v8 = vld [vmem:[#allocation2 + $0x18] sm:$0xff]   ;;  %v961_v10 = vshrl.u32 %v861_v4, 16  ;;  %v964_v11 = vshll.u32 %v861_v4, 16  ;;  %v5702_v0 = vld [vmem:[%s7486_s1 + $0xe0] sm:$0xff] }
  0x67   : > { %1383 = vst [vmem:[#allocation3 + $0x98] sm:$0xf] %v949_v55  ;;  %v863_v14 = vld [vmem:[#allocation2 + $0x20] sm:$0x1]  ;;  %v970_v16 = vshll.u32 %v862_v9, 16  ;;  %v974_v18 = vshrl.u32 %v862_v9, 16  ;;  %v686_v23 = vsel %vm6086_vm5, %v385_v26, %v685_v19  ;;  %2992 = vmatpush.bf16.msrb.mxu3 %v5702_v0 }
  0x68   : > { %1384 = vst [vmem:[#allocation3 + $0x9c] sm:$0xf] %v959_v60  ;;  %v1155_v22 = vrot.slane %v1153_v3, 4  ;;  %v963_v24 = vrot.slane %v961_v10, 4  ;;  %v966_v25 = vrot.slane %v964_v11, 5  ;;  %v980_v27 = vshll.u32 %v863_v14, 16 }
  0x69   : > { %1400 = vst [vmem:[#allocation3 + $0xdc] sm:$0xf] %v1151_v63  ;;  %v887_v28 = vld [vmem:[#allocation2 + $0x80] sm:$0x1]  ;;  %v1158_v29 = vrot.slane %v1156_v5, 5  ;;  %v972_v30 = vrot.slane %v970_v16, 5 }
  0x6a   : > { %823 = vst [vmem:[#allocation3 + $0x10] sm:$0xff] %v787_v8   ;;  %v976_v41 = vrot.slane %v974_v18, 4  ;;  %v1164_v31 = vrot.slane %v1162_v6, 5  ;;  %v1166_v34 = vshrl.u32 %v886_v1, 16  ;;  %v967_v52 = vor.u32 %v966_v25, %v963_v24  ;;  %v689_v38 = vld [vmem:[#allocation2 + $0x2c] sm:$0x1] }
  0x6b   : > { %743 = vst [vmem:[#allocation2 + $0x84] sm:$0xf] %v742_v7  ;;  %v982_v35 = vrot.slane %v980_v27, 5  ;;  %v1159_v36 = vor.u32 %v1158_v29, %v1155_v22  ;;  %v1172_v37 = vshll.u32 %v887_v28, 16  ;;  %v391_v43 = vshll.u32 %v6337_v15, 16  ;;  %v301_v51 = vld [vmem:[%s6059_s30 + $0xb8] sm:$0xff] }
  0x6c   : > { %744 = vst [vmem:[#allocation2 + $0x88] sm:$0xf] %v530_v12  ;;  %v977_v40 = vor.u32 %v976_v41, %v972_v30  ;;  %v1168_v42 = vrot.slane %v1166_v34, 4  ;;  %v968_v46 = vrot.slane %v967_v52, 4  ;;  %v386_v50 = vrot.slane %v6339_v33, 4  ;;  %v5620_v58 = vld [vmem:[#allocation3 + $0x50] sm:$0xff] }
  0x6d   : > { %687 = vst [vmem:[#allocation2 + $0x24] sm:$0xf] %v686_v23  ;;  %v1160_v47 = vrot.slane %v1159_v36, 4  ;;  %v1174_v49 = vrot.slane %v1172_v37, 5  ;;  %v393_v55 = vor.u32 %v391_v43, %v390_v53  ;;  %v690_v57 = vsel %vm6215_vm10, %v395_v44, %v689_v38  ;;  %v745_v19 = vld [vmem:[#allocation2 + $0x8c] sm:$0x1] }
  0x6e   : > { %v978_v54 = vrot.slane %v977_v40, 4  ;;  %v1169_v2 = vor.u32 %v1168_v42, %v1164_v31  ;;  %v973_v15 = vsel %vm6191_vm9, %v968_v46, %v972_v30  ;;  %691 = vst [vmem:[#allocation2 + $0x2c] sm:$0x1] %v690_v57  ;;  %v533_v33 = vshrl.u32 %v6376_v13, 16  ;;  %v284_v53 = vld [vmem:[%s6059_s30 + $0x30] sm:$0xff]  ;;  %v285_v5 = vld [vmem:[%s6059_s30 + $0x38] sm:$0xff] }
  0x6f   : > { %v5635_v39 = vld [vmem:[#allocation3 + $0x98] sm:$0xff]  ;;  %v1165_v59 = vsel %vm6191_vm9, %v1160_v47, %v1164_v31  ;;  %1385 = vst [vmem:[#allocation3 + $0xa0] sm:$0xf] %v973_v15  ;;  %v536_v26 = vshll.u32 %v6376_v13, 16  ;;  %v333_v1 = vpack.c.bf16 %v301_v51, %v301_v51  ;;  %v394_v8 = vsel %vm6077_vm4, %v386_v50, %v393_v55  ;;  %v302_v25 = vld [vmem:[%s6059_s30 + $0xc0] sm:$0xff]  ;;  %v5677_v44 = vld [vmem:[%s7486_s1 + $0x98] sm:$0xff] }
  0x70   : > { %v5643_v45 = vld [vmem:[#allocation3 + $0xd8] sm:$0xff]  ;;  %2246 = vmatmul.bf16.gmra.mxu1 %v5635_v39  ;;  %v983_v61 = vsel %vm6191_vm9, %v978_v54, %v982_v35  ;;  %v1170_v62 = vrot.slane %v1169_v2, 4  ;;  %v6397_v3 = vrot.slane %v533_v33, 7  ;;  %1401 = vst [vmem:[#allocation3 + $0xe0] sm:$0xf] %v1165_v59  ;;  %v746_v9 = vsel %vm6215_vm10, %v531_v48, %v745_v19  ;;  %v5726_v48 = vld [vmem:[%s7486_s1 + $0x120] sm:$0xff]  ;;  %2615 = vmatpush.bf16.msrb.mxu2 %v5677_v44 }
  0x71   : > { %v5612_v60 = vld [vmem:[#allocation3 + $0x10] sm:$0xff]  ;;  %1386 = vst [vmem:[#allocation3 + $0xa4] sm:$0xf] %v983_v61  ;;  %v748_v4 = vld [vmem:[#allocation2 + $0x90] sm:$0xf]  ;;  %v316_v18 = vpack.c.bf16 %v284_v53, %v284_v53  ;;  %v541_v30 = vshrl.u32 %v333_v1, 16  ;;  %3370 = vmatpush.bf16.msrb.mxu0 %v5726_v48  ;;  %v317_v35 = vpack.c.bf16 %v285_v5, %v285_v5  ;;  %v6422_v55 = vpack.c.bf16 %v302_v25, %v302_v25 }
  0x72   : > { %v888_v63 = vld [vmem:[#allocation2 + $0x84] sm:$0xf]  ;;  %v1175_v6 = vsel %vm6191_vm9, %v1170_v62, %v1174_v49  ;;  %v538_v16 = vor.u32 %v536_v26, %v6397_v3  ;;  %688 = vst [vmem:[#allocation2 + $0x28] sm:$0xf] %v394_v8  ;;  %v539_v29 = vrot.slane %v6397_v3, 4  ;;  %v544_v43 = vshll.u32 %v333_v1, 16 }
  0x73   : > { %v805_v7 = vld [vmem:[#allocation2 + $0x84] sm:$0xff]   ;;  %v1177_v11 = vshrl.u32 %v888_v63, 16  ;;  %1977 = vmatmul.bf16.gmra.mxu2 %v5620_v58  ;;  %1402 = vst [vmem:[#allocation3 + $0xe4] sm:$0xf] %v1175_v6  ;;  %v1180_v13 = vshll.u32 %v888_v63, 16  ;;  %v543_v39 = vrot.slane %v541_v30, 7 }
  0x74   : > { %v889_v10 = vld [vmem:[#allocation2 + $0x88] sm:$0xf]  ;;  %v864_v12 = vld [vmem:[#allocation2 + $0x24] sm:$0xf]  ;;  %841 = vst [vmem:[#allocation3 + $0x58] sm:$0xff] %v805_v7   ;;  %v749_v52 = vsel %vm6086_vm5, %v538_v16, %v748_v4  ;;  %v400_v46 = vshll.u32 %v316_v18, 16 }
  0x75   : > { %2286 = vmatmul.bf16.gmra.mxu3 %v5643_v45  ;;  %v1186_v14 = vshll.u32 %v889_v10, 16  ;;  %v985_v22 = vshrl.u32 %v864_v12, 16  ;;  %v988_v23 = vshll.u32 %v864_v12, 16  ;;  %v1179_v24 = vrot.slane %v1177_v11, 4  ;;  %v866_v41 = vld [vmem:[#allocation2 + $0x2c] sm:$0x1] }
  0x76   : > { %v1190_v56 = vshrl.u32 %v889_v10, 16  ;;  %1937 = vmatmul.bf16.gmra.mxu0 %v5612_v60  ;;  %v1182_v27 = vrot.slane %v1180_v13, 5  ;;  %747 = vst [vmem:[#allocation2 + $0x8c] sm:$0x1] %v746_v9  ;;  %v1004_v36 = vshll.u32 %v866_v41, 16  ;;  %v5750_v40 = vld [vmem:[%s7486_s1 + $0x160] sm:$0xff]  ;;  %v546_v51 = vor.u32 %v544_v43, %v543_v39 }
  0x77   : > { %v1188_v28 = vrot.slane %v1186_v14, 5  ;;  %v987_v31 = vrot.slane %v985_v22, 4  ;;  %v990_v34 = vrot.slane %v988_v23, 5  ;;  %750 = vst [vmem:[#allocation2 + $0x90] sm:$0xf] %v749_v52  ;;  %v397_v45 = vshrl.u32 %v316_v18, 16  ;;  %3748 = vmatpush.bf16.msrb.mxu1 %v5750_v40 }
  0x78   : > { %v1183_v37 = vor.u32 %v1182_v27, %v1179_v24  ;;  %v1192_v38 = vrot.slane %v1190_v56, 4  ;;  %v5636_v47 = vld [vmem:[#allocation3 + $0xa0] sm:$0xff]  ;;  %v548_v54 = vrot.slane %v543_v39, 4  ;;  %v692_v2 = vld [vmem:[#allocation2 + $0x30] sm:$0xf]  ;;  %v6424_v57 = vrot.slane %v1004_v36, 5 }
  0x79   : > { %v991_v42 = vor.u32 %v990_v34, %v987_v31  ;;  %v399_v58 = vrot.slane %v397_v45, 7  ;;  %v405_v15 = vshrl.u32 %v317_v35, 16  ;;  %v752_v59 = vld [vmem:[#allocation2 + $0x98] sm:$0x1]  ;;  %v303_v19 = vld [vmem:[%s6059_s30 + $0xc8] sm:$0xff]  ;;  %v408_v26 = vshll.u32 %v317_v35, 16 }
  0x7a   : > { %v1184_v49 = vrot.slane %v1183_v37, 4  ;;  %v1193_v50 = vor.u32 %v1192_v38, %v1188_v28  ;;  %v5644_v33 = vld [vmem:[#allocation3 + $0xe0] sm:$0xff]  ;;  %v286_v53 = vld [vmem:[%s6059_s30 + $0x40] sm:$0xff]  ;;  %v865_v0 = vld [vmem:[#allocation2 + $0x28] sm:$0xf]  ;;  %v547_v1 = vsel %vm6077_vm4, %v539_v29, %v546_v51  ;;  %v753_v6 = vsel %vm6215_vm10, %v548_v54, %v752_v59 }
  0x7b   : > { %v992_v60 = vrot.slane %v991_v42, 4  ;;  %v789_v63 = vld [vmem:[#allocation2 + $0x24] sm:$0xff]   ;;  %v402_v3 = vor.u32 %v400_v46, %v399_v58  ;;  %v403_v4 = vrot.slane %v399_v58, 4  ;;  %v696_v5 = vld [vmem:[#allocation2 + $0x38] sm:$0x1]  ;;  %v994_v7 = vshll.u32 %v865_v0, 16 }
  0x7c   : > { %v1189_v61 = vsel %vm6191_vm9, %v1184_v49, %v1188_v28  ;;  %v1194_v62 = vrot.slane %v1193_v50, 4  ;;  %825 = vst [vmem:[#allocation3 + $0x18] sm:$0xff] %v789_v63   ;;  %v998_v8 = vshrl.u32 %v865_v0, 16  ;;  %v407_v10 = vrot.slane %v405_v15, 7  ;;  %v5621_v22 = vld [vmem:[#allocation3 + $0x58] sm:$0xff]  ;;  %v5701_v52 = vld [vmem:[%s7486_s1 + $0xd8] sm:$0xff] }
  0x7d   : > { %1403 = vst [vmem:[#allocation3 + $0xe8] sm:$0xf] %v1189_v61  ;;  %v890_v9 = vld [vmem:[#allocation2 + $0x8c] sm:$0x1]  ;;  %v6434_v11 = vpack.c.bf16 %v303_v19, %v303_v19  ;;  %v693_v13 = vsel %vm6086_vm5, %v402_v3, %v692_v2  ;;  %v550_v16 = vshrl.u32 %v6422_v55, 16  ;;  %v6439_v18 = vpack.c.bf16 %v286_v53, %v286_v53  ;;  %2993 = vmatpush.bf16.msrb.mxu3 %v5701_v52  ;;  %v304_v46 = vld [vmem:[%s6059_s30 + $0xd0] sm:$0xff] }
  0x7e   : > { %v1196_v12 = vshll.u32 %v890_v9, 16  ;;  %751 = vst [vmem:[#allocation2 + $0x94] sm:$0xf] %v547_v1  ;;  %v891_v14 = vld [vmem:[#allocation2 + $0x90] sm:$0xf]  ;;  %v996_v23 = vrot.slane %v994_v7, 5  ;;  %v410_v56 = vor.u32 %v408_v26, %v407_v10 }
  0x7f   : > { %v1000_v24 = vrot.slane %v998_v8, 4  ;;  %v412_v48 = vrot.slane %v407_v10, 4  ;;  %694 = vst [vmem:[#allocation2 + $0x30] sm:$0xf] %v693_v13  ;;  %v1201_v27 = vshrl.u32 %v891_v14, 16  ;;  %v1204_v28 = vshll.u32 %v891_v14, 16 }
  0x80   : > { %2251 = vmatmul.bf16.gmra.mxu1 %v5636_v47  ;;  %v1198_v25 = vrot.slane %v1196_v12, 5  ;;  %754 = vst [vmem:[#allocation2 + $0x98] sm:$0x1] %v753_v6  ;;  %v552_v29 = vrot.slane %v550_v16, 7  ;;  %v997_v30 = vsel %vm6191_vm9, %v992_v60, %v996_v23  ;;  %v411_v31 = vsel %vm6077_vm4, %v403_v4, %v410_v56  ;;  %v755_v35 = vld [vmem:[#allocation2 + $0x9c] sm:$0xf] }
  0x81   : > { %v1001_v41 = vor.u32 %v1000_v24, %v996_v23  ;;  %v697_v34 = vsel %vm6215_vm10, %v412_v48, %v696_v5  ;;  %1387 = vst [vmem:[#allocation3 + $0xa8] sm:$0xf] %v997_v30  ;;  %v1203_v37 = vrot.slane %v1201_v27, 4  ;;  %v1206_v38 = vrot.slane %v1204_v28, 5  ;;  %v287_v40 = vld [vmem:[%s6059_s30 + $0x48] sm:$0xff]  ;;  %v5725_v54 = vld [vmem:[%s7486_s1 + $0x118] sm:$0xff] }
  0x82   : > { %v1199_v36 = vsel %vm6191_vm9, %v1194_v62, %v1198_v25  ;;  %v553_v39 = vshll.u32 %v6422_v55, 16  ;;  %v556_v43 = vrot.slane %v552_v29, 4  ;;  %v558_v44 = vshrl.u32 %v6434_v11, 16  ;;  %695 = vst [vmem:[#allocation2 + $0x34] sm:$0xf] %v411_v31  ;;  %v5749_v2 = vld [vmem:[%s7486_s1 + $0x158] sm:$0xff]  ;;  %3371 = vmatpush.bf16.msrb.mxu0 %v5725_v54 }
  0x83   : > { %1982 = vmatmul.bf16.gmra.mxu2 %v5621_v22  ;;  %v1002_v42 = vrot.slane %v1001_v41, 4  ;;  %1404 = vst [vmem:[#allocation3 + $0xec] sm:$0xf] %v1199_v36  ;;  %v561_v45 = vshll.u32 %v6434_v11, 16  ;;  %v5613_v47 = vld [vmem:[#allocation3 + $0x18] sm:$0xff]  ;;  %v1207_v49 = vor.u32 %v1206_v38, %v1203_v37  ;;  %v414_v55 = vshrl.u32 %v6439_v18, 16  ;;  %3749 = vmatpush.bf16.msrb.mxu1 %v5749_v2 }
  0x84   : > { %v555_v50 = vor.u32 %v553_v39, %v552_v29  ;;  %698 = vst [vmem:[#allocation2 + $0x38] sm:$0x1] %v697_v34  ;;  %v560_v59 = vrot.slane %v558_v44, 7  ;;  %v6469_v62 = vpack.c.bf16 %v287_v40, %v287_v40  ;;  %v5676_v5 = vld [vmem:[%s7486_s1 + $0x90] sm:$0xff]  ;;  %v6474_v6 = vpack.c.bf16 %v304_v46, %v304_v46  ;;  %v699_v11 = vld [vmem:[#allocation2 + $0x3c] sm:$0xf] }
  0x85   : > { %2291 = vmatmul.bf16.gmra.mxu3 %v5644_v33  ;;  %v1007_v51 = vsel %vm6191_vm9, %v1002_v42, %v6424_v57  ;;  %v807_v58 = vld [vmem:[#allocation2 + $0x90] sm:$0xff]   ;;  %v1208_v33 = vrot.slane %v1207_v49, 4  ;;  %v759_v12 = vld [vmem:[#allocation2 + $0xa4] sm:$0x1]  ;;  %2616 = vmatpush.bf16.msrb.mxu2 %v5676_v5  ;;  %v416_v16 = vrot.slane %v414_v55, 7  ;;  %v417_v22 = vshll.u32 %v6439_v18, 16 }
  0x86   : > { %v892_v15 = vld [vmem:[#allocation2 + $0x94] sm:$0xf]  ;;  %1942 = vmatmul.bf16.gmra.mxu0 %v5613_v47  ;;  %1388 = vst [vmem:[#allocation3 + $0xac] sm:$0xf] %v1007_v51  ;;  %v867_v19 = vld [vmem:[#allocation2 + $0x30] sm:$0xf]  ;;  %v756_v61 = vsel %vm6086_vm5, %v555_v50, %v755_v35  ;;  %v563_v0 = vor.u32 %v561_v45, %v560_v59 }
  0x87   : > { %v1210_v60 = vshll.u32 %v892_v15, 16  ;;  %843 = vst [vmem:[#allocation3 + $0x60] sm:$0xff] %v807_v58   ;;  %v1009_v26 = vshrl.u32 %v867_v19, 16  ;;  %v1012_v53 = vshll.u32 %v867_v19, 16  ;;  %v893_v63 = vld [vmem:[#allocation2 + $0x98] sm:$0x1]  ;;  %v419_v31 = vor.u32 %v417_v22, %v416_v16 }
  0x88   : > { %v1214_v57 = vshrl.u32 %v892_v15, 16  ;;  %v1220_v3 = vshll.u32 %v893_v63, 16  ;;  %v565_v4 = vrot.slane %v560_v59, 4  ;;  %757 = vst [vmem:[#allocation2 + $0x9c] sm:$0xf] %v756_v61  ;;  %v564_v10 = vsel %vm6077_vm4, %v556_v43, %v563_v0  ;;  %v305_v23 = vld [vmem:[%s6059_s30 + $0xd8] sm:$0xff] }
  0x89   : > { %v1212_v1 = vrot.slane %v1210_v60, 5  ;;  %v1011_v7 = vrot.slane %v1009_v26, 4  ;;  %v1014_v8 = vrot.slane %v1012_v53, 5  ;;  %758 = vst [vmem:[#allocation2 + $0xa0] sm:$0xf] %v564_v10  ;;  %v791_v24 = vld [vmem:[#allocation2 + $0x30] sm:$0xff]   ;;  %v700_v45 = vsel %vm6086_vm5, %v419_v31, %v699_v11 }
  0x8a   : > { %v1216_v9 = vrot.slane %v1214_v57, 4  ;;  %v1222_v14 = vrot.slane %v1220_v3, 5  ;;  %v868_v56 = vld [vmem:[#allocation2 + $0x34] sm:$0xf]  ;;  %v422_v27 = vshrl.u32 %v6469_v62, 16  ;;  %v760_v28 = vsel %vm6215_vm10, %v565_v4, %v759_v12  ;;  %827 = vst [vmem:[#allocation3 + $0x20] sm:$0xff] %v791_v24  }
  0x8b   : > { %v1213_v13 = vsel %vm6191_vm9, %v1208_v33, %v1212_v1  ;;  %v1015_v48 = vor.u32 %v1014_v8, %v1011_v7  ;;  %v869_v29 = vld [vmem:[#allocation2 + $0x38] sm:$0x1]  ;;  %v1018_v30 = vshll.u32 %v868_v56, 16  ;;  %v1022_v41 = vshrl.u32 %v868_v56, 16  ;;  %v703_v52 = vld [vmem:[#allocation2 + $0x44] sm:$0x1] }
  0x8c   : > { %v1217_v25 = vor.u32 %v1216_v9, %v1212_v1  ;;  %1405 = vst [vmem:[#allocation3 + $0xf0] sm:$0xf] %v1213_v13  ;;  %v420_v34 = vrot.slane %v416_v16, 4  ;;  %v5645_v18 = vld [vmem:[#allocation3 + $0xe8] sm:$0xff]  ;;  %v1028_v37 = vshll.u32 %v869_v29, 16  ;;  %v424_v39 = vrot.slane %v422_v27, 7 }
  0x8d   : > { %v5637_v35 = vld [vmem:[#allocation3 + $0xa8] sm:$0xff]  ;;  %v1016_v36 = vrot.slane %v1015_v48, 4  ;;  %v1020_v42 = vrot.slane %v1018_v30, 5  ;;  %v1024_v43 = vrot.slane %v1022_v41, 4  ;;  %v425_v44 = vshll.u32 %v6469_v62, 16  ;;  %v288_v15 = vld [vmem:[%s6059_s30 + $0x50] sm:$0xff] }
  0x8e   : > { %v1218_v38 = vrot.slane %v1217_v25, 4  ;;  %v5622_v40 = vld [vmem:[#allocation3 + $0x60] sm:$0xff]  ;;  %761 = vst [vmem:[#allocation2 + $0xa4] sm:$0x1] %v760_v28  ;;  %v1030_v46 = vrot.slane %v1028_v37, 5  ;;  %v429_v49 = vrot.slane %v424_v39, 4  ;;  %v337_v54 = vpack.c.bf16 %v305_v23, %v305_v23 }
  0x8f   : > { %701 = vst [vmem:[#allocation2 + $0x3c] sm:$0xf] %v700_v45  ;;  %v894_v50 = vld [vmem:[#allocation2 + $0x9c] sm:$0xf]  ;;  %v1021_v2 = vsel %vm6191_vm9, %v1016_v36, %v1020_v42  ;;  %v1025_v55 = vor.u32 %v1024_v43, %v1020_v42  ;;  %v427_v51 = vor.u32 %v425_v44, %v424_v39  ;;  %v5700_v57 = vld [vmem:[%s7486_s1 + $0xd0] sm:$0xff]  ;;  %v306_v0 = vld [vmem:[%s6059_s30 + $0xe0] sm:$0xff]  ;;  %v6503_v7 = vpack.c.bf16 %v288_v15, %v288_v15 }
  0x90   : > { %2256 = vmatmul.bf16.gmra.mxu1 %v5637_v35  ;;  %v1223_v47 = vsel %vm6191_vm9, %v1218_v38, %v1222_v14  ;;  %v1225_v58 = vshrl.u32 %v894_v50, 16  ;;  %v289_v59 = vld [vmem:[%s6059_s30 + $0x58] sm:$0xff]  ;;  %1389 = vst [vmem:[#allocation3 + $0xb0] sm:$0xf] %v1021_v2  ;;  %v704_v33 = vsel %vm6215_vm10, %v429_v49, %v703_v52  ;;  %v895_v60 = vld [vmem:[#allocation2 + $0xa0] sm:$0xf]  ;;  %2994 = vmatpush.bf16.msrb.mxu3 %v5700_v57 }
  0x91   : > { %1406 = vst [vmem:[#allocation3 + $0xf4] sm:$0xf] %v1223_v47  ;;  %v809_v19 = vld [vmem:[#allocation2 + $0x9c] sm:$0xff]   ;;  %v1228_v61 = vshll.u32 %v894_v50, 16  ;;  %v1026_v62 = vrot.slane %v1025_v55, 4  ;;  %v428_v26 = vsel %vm6077_vm4, %v420_v34, %v427_v51  ;;  %v1234_v63 = vshll.u32 %v895_v60, 16 }
  0x92   : > { %845 = vst [vmem:[#allocation3 + $0x68] sm:$0xff] %v809_v19   ;;  %v1227_v53 = vrot.slane %v1225_v58, 4  ;;  %v5614_v1 = vld [vmem:[#allocation3 + $0x20] sm:$0xff]  ;;  %v1238_v4 = vshrl.u32 %v895_v60, 16  ;;  %v567_v5 = vshrl.u32 %v6474_v6, 16  ;;  %v570_v10 = vshll.u32 %v6474_v6, 16 }
  0x93   : > { %1987 = vmatmul.bf16.gmra.mxu2 %v5622_v40  ;;  %702 = vst [vmem:[#allocation2 + $0x40] sm:$0xf] %v428_v26  ;;  %v1230_v3 = vrot.slane %v1228_v61, 5  ;;  %v1031_v8 = vsel %vm6191_vm9, %v1026_v62, %v1030_v46  ;;  %v1236_v9 = vrot.slane %v1234_v63, 5  ;;  %v575_v11 = vshrl.u32 %v337_v54, 16  ;;  %v5724_v12 = vld [vmem:[%s7486_s1 + $0x110] sm:$0xff] }
  0x94   : > { %705 = vst [vmem:[#allocation2 + $0x44] sm:$0x1] %v704_v33  ;;  %v1240_v16 = vrot.slane %v1238_v4, 4  ;;  %v569_v22 = vrot.slane %v567_v5, 7  ;;  %v762_v23 = vld [vmem:[#allocation2 + $0xa8] sm:$0xf]  ;;  %v6511_v24 = vpack.c.bf16 %v289_v59, %v289_v59  ;;  %v6516_v28 = vpack.c.bf16 %v306_v0, %v306_v0  ;;  %3372 = vmatpush.bf16.msrb.mxu0 %v5724_v12 }
  0x95   : > { %2296 = vmatmul.bf16.gmra.mxu3 %v5645_v18  ;;  %1390 = vst [vmem:[#allocation3 + $0xb4] sm:$0xf] %v1031_v8  ;;  %v896_v13 = vld [vmem:[#allocation2 + $0xa4] sm:$0x1]  ;;  %v1231_v14 = vor.u32 %v1230_v3, %v1227_v53  ;;  %v577_v25 = vrot.slane %v575_v11, 7  ;;  %v578_v27 = vshll.u32 %v337_v54, 16 }
  0x96   : > { %1947 = vmatmul.bf16.gmra.mxu0 %v5614_v1  ;;  %v870_v56 = vld [vmem:[#allocation2 + $0x3c] sm:$0xf]  ;;  %v1244_v48 = vshll.u32 %v896_v13, 16  ;;  %v5748_v6 = vld [vmem:[%s7486_s1 + $0x150] sm:$0xff]  ;;  %v1241_v31 = vor.u32 %v1240_v16, %v1236_v9  ;;  %v5675_v34 = vld [vmem:[%s7486_s1 + $0x88] sm:$0xff]  ;;  %v572_v18 = vor.u32 %v570_v10, %v569_v22  ;;  %v573_v36 = vrot.slane %v569_v22, 4 }
  0x97   : > { %v1033_v29 = vshrl.u32 %v870_v56, 16  ;;  %v1036_v30 = vshll.u32 %v870_v56, 16  ;;  %v1232_v41 = vrot.slane %v1231_v14, 4  ;;  %v307_v52 = vld [vmem:[%s6059_s30 + $0xe8] sm:$0xff]  ;;  %v580_v37 = vor.u32 %v578_v27, %v577_v25  ;;  %3750 = vmatpush.bf16.msrb.mxu1 %v5748_v6  ;;  %2617 = vmatpush.bf16.msrb.mxu2 %v5675_v34  ;;  %v766_v43 = vld [vmem:[#allocation2 + $0xb0] sm:$0x1] }
  0x98   : > { %v1246_v35 = vrot.slane %v1244_v48, 5  ;;  %v1242_v42 = vrot.slane %v1241_v31, 4  ;;  %v582_v47 = vrot.slane %v577_v25, 4  ;;  %v763_v49 = vsel %vm6086_vm5, %v572_v18, %v762_v23  ;;  %v5646_v54 = vld [vmem:[#allocation3 + $0xf0] sm:$0xff]  ;;  %v710_v10 = vld [vmem:[#allocation2 + $0x50] sm:$0x1] }
  0x99   : > { %v1035_v38 = vrot.slane %v1033_v29, 4  ;;  %v1038_v39 = vrot.slane %v1036_v30, 5  ;;  %v1237_v40 = vsel %vm6191_vm9, %v1232_v41, %v1236_v9  ;;  %v581_v46 = vsel %vm6077_vm4, %v573_v36, %v580_v37  ;;  %764 = vst [vmem:[#allocation2 + $0xa8] sm:$0xf] %v763_v49  ;;  %v706_v57 = vld [vmem:[#allocation2 + $0x48] sm:$0xf] }
  0x9a   : > { %v793_v44 = vld [vmem:[#allocation2 + $0x3c] sm:$0xff]   ;;  %1407 = vst [vmem:[#allocation3 + $0xf8] sm:$0xf] %v1237_v40  ;;  %v6528_v50 = vpack.c.bf16 %v307_v52, %v307_v52  ;;  %v1247_v15 = vsel %vm6191_vm9, %v1242_v42, %v1246_v35  ;;  %v431_v33 = vshrl.u32 %v6503_v7, 16  ;;  %v434_v60 = vshll.u32 %v6503_v7, 16  ;;  %v5699_v48 = vld [vmem:[%s7486_s1 + $0xc8] sm:$0xff] }
  0x9b   : > { %v871_v45 = vld [vmem:[#allocation2 + $0x40] sm:$0xf]  ;;  %829 = vst [vmem:[#allocation3 + $0x28] sm:$0xff] %v793_v44   ;;  %v872_v2 = vld [vmem:[#allocation2 + $0x44] sm:$0x1]  ;;  %v1039_v55 = vor.u32 %v1038_v39, %v1035_v38  ;;  %v767_v61 = vsel %vm6215_vm10, %v582_v47, %v766_v43  ;;  %v439_v63 = vshrl.u32 %v6511_v24, 16  ;;  %2995 = vmatpush.bf16.msrb.mxu3 %v5699_v48 }
  0x9c   : > { %v1042_v51 = vshll.u32 %v871_v45, 16  ;;  %v1046_v58 = vshrl.u32 %v871_v45, 16  ;;  %v5638_v59 = vld [vmem:[#allocation3 + $0xb0] sm:$0xff]  ;;  %v1052_v19 = vshll.u32 %v872_v2, 16  ;;  %1408 = vst [vmem:[#allocation3 + $0xfc] sm:$0xf] %v1247_v15 }
  0x9d   : > { %v1040_v62 = vrot.slane %v1039_v55, 4  ;;  %765 = vst [vmem:[#allocation2 + $0xac] sm:$0xf] %v581_v46  ;;  %v433_v1 = vrot.slane %v431_v33, 7  ;;  %v442_v3 = vshll.u32 %v6511_v24, 16  ;;  %v584_v4 = vshrl.u32 %v6516_v28, 16 }
  0x9e   : > { %v1044_v26 = vrot.slane %v1042_v51, 5  ;;  %v1048_v53 = vrot.slane %v1046_v58, 4  ;;  %v1054_v0 = vrot.slane %v1052_v19, 5  ;;  %v5623_v5 = vld [vmem:[#allocation3 + $0x68] sm:$0xff]  ;;  %v441_v9 = vrot.slane %v439_v63, 7  ;;  %v291_v27 = vld [vmem:[%s6059_s30 + $0x68] sm:$0xff] }
  0x9f   : > { %768 = vst [vmem:[#allocation2 + $0xb0] sm:$0x1] %v767_v61  ;;  %v587_v11 = vshll.u32 %v6516_v28, 16  ;;  %v436_v12 = vor.u32 %v434_v60, %v433_v1  ;;  %v437_v13 = vrot.slane %v433_v1, 4  ;;  %v586_v14 = vrot.slane %v584_v4, 7  ;;  %v290_v22 = vld [vmem:[%s6059_s30 + $0x60] sm:$0xff] }
  0xa0   : > { %2261 = vmatmul.bf16.gmra.mxu1 %v5638_v59  ;;  %v1045_v7 = vsel %vm6191_vm9, %v1040_v62, %v1044_v26  ;;  %v1049_v8 = vor.u32 %v1048_v53, %v1044_v26  ;;  %v592_v16 = vshrl.u32 %v6528_v50, 16  ;;  %v444_v24 = vor.u32 %v442_v3, %v441_v9  ;;  %v769_v31 = vld [vmem:[#allocation2 + $0xb4] sm:$0xf]  ;;  %v5723_v35 = vld [vmem:[%s7486_s1 + $0x108] sm:$0xff]  ;;  %v5674_v40 = vld [vmem:[%s7486_s1 + $0x80] sm:$0xff] }
  0xa1   : > { %1391 = vst [vmem:[#allocation3 + $0xb8] sm:$0xf] %v1045_v7  ;;  %v446_v56 = vrot.slane %v441_v9, 4  ;;  %v595_v25 = vshll.u32 %v6528_v50, 16  ;;  %v707_v28 = vsel %vm6086_vm5, %v436_v12, %v706_v57  ;;  %v589_v29 = vor.u32 %v587_v11, %v586_v14  ;;  %v5747_v18 = vld [vmem:[%s7486_s1 + $0x148] sm:$0xff]  ;;  %3373 = vmatpush.bf16.msrb.mxu0 %v5723_v35  ;;  %2618 = vmatpush.bf16.msrb.mxu2 %v5674_v40 }
  0xa2   : > { %v1050_v23 = vrot.slane %v1049_v8, 4  ;;  %v5615_v6 = vld [vmem:[#allocation3 + $0x28] sm:$0xff]  ;;  %v590_v30 = vrot.slane %v586_v14, 4  ;;  %v6551_v41 = vrot.slane %v592_v16, 7  ;;  %v445_v52 = vsel %vm6077_vm4, %v437_v13, %v444_v24  ;;  %708 = vst [vmem:[#allocation2 + $0x48] sm:$0xf] %v707_v28  ;;  %3751 = vmatpush.bf16.msrb.mxu1 %v5747_v18 }
  0xa3   : > { %1992 = vmatmul.bf16.gmra.mxu2 %v5623_v5  ;;  %v322_v36 = vpack.c.bf16 %v290_v22, %v290_v22  ;;  %v711_v37 = vsel %vm6215_vm10, %v446_v56, %v710_v10  ;;  %v897_v38 = vld [vmem:[#allocation2 + $0xa8] sm:$0xf]  ;;  %v323_v42 = vpack.c.bf16 %v291_v27, %v291_v27  ;;  %709 = vst [vmem:[#allocation2 + $0x4c] sm:$0xf] %v445_v52  ;;  %v713_v8 = vld [vmem:[#allocation2 + $0x54] sm:$0xf] }
  0xa4   : > { %v1055_v34 = vsel %vm6191_vm9, %v1050_v23, %v1054_v0  ;;  %v597_v39 = vor.u32 %v595_v25, %v6551_v41  ;;  %v811_v43 = vld [vmem:[#allocation2 + $0xa8] sm:$0xff]   ;;  %v1249_v45 = vshrl.u32 %v897_v38, 16  ;;  %v770_v46 = vsel %vm6086_vm5, %v589_v29, %v769_v31  ;;  %712 = vst [vmem:[#allocation2 + $0x50] sm:$0x1] %v711_v37  ;;  %v5647_v16 = vld [vmem:[#allocation3 + $0xf8] sm:$0xff] }
  0xa5   : > { %2301 = vmatmul.bf16.gmra.mxu3 %v5646_v54  ;;  %1392 = vst [vmem:[#allocation3 + $0xbc] sm:$0xf] %v1055_v34  ;;  %v898_v44 = vld [vmem:[#allocation2 + $0xac] sm:$0xf]  ;;  %v1252_v49 = vshll.u32 %v897_v38, 16  ;;  %v448_v58 = vshrl.u32 %v322_v36, 16 }
  0xa6   : > { %1952 = vmatmul.bf16.gmra.mxu0 %v5615_v6  ;;  %847 = vst [vmem:[#allocation3 + $0x70] sm:$0xff] %v811_v43   ;;  %v899_v47 = vld [vmem:[#allocation2 + $0xb0] sm:$0x1]  ;;  %v1258_v50 = vshll.u32 %v898_v44, 16  ;;  %v1262_v54 = vshrl.u32 %v898_v44, 16  ;;  %v598_v2 = vsel %vm6077_vm4, %v590_v30, %v597_v39  ;;  %v1251_v55 = vrot.slane %v1249_v45, 4 }
  0xa7   : > { %v1268_v51 = vshll.u32 %v899_v47, 16  ;;  %v451_v15 = vshll.u32 %v322_v36, 16  ;;  %v1254_v59 = vrot.slane %v1252_v49, 5  ;;  %771 = vst [vmem:[#allocation2 + $0xb4] sm:$0xf] %v770_v46  ;;  %v456_v60 = vshrl.u32 %v323_v42, 16 }
  0xa8   : > { %v1260_v19 = vrot.slane %v1258_v50, 5  ;;  %v1264_v33 = vrot.slane %v1262_v54, 4  ;;  %772 = vst [vmem:[#allocation2 + $0xb8] sm:$0xf] %v598_v2  ;;  %v450_v61 = vrot.slane %v448_v58, 7  ;;  %v459_v62 = vshll.u32 %v323_v42, 16 }
  0xa9   : > { %v873_v26 = vld [vmem:[#allocation2 + $0x48] sm:$0xf]  ;;  %v1255_v53 = vor.u32 %v1254_v59, %v1251_v55  ;;  %v1270_v57 = vrot.slane %v1268_v51, 5  ;;  %v458_v0 = vrot.slane %v456_v60, 7  ;;  %v599_v5 = vrot.slane %v6551_v41, 4  ;;  %v5698_v2 = vld [vmem:[%s7486_s1 + $0xc0] sm:$0xff] }
  0xaa   : > { %v1265_v63 = vor.u32 %v1264_v33, %v1260_v19  ;;  %v1057_v3 = vshrl.u32 %v873_v26, 16  ;;  %v1060_v4 = vshll.u32 %v873_v26, 16  ;;  %v453_v7 = vor.u32 %v451_v15, %v450_v61  ;;  %v795_v9 = vld [vmem:[#allocation2 + $0x48] sm:$0xff]   ;;  %v717_v29 = vld [vmem:[#allocation2 + $0x5c] sm:$0x1]  ;;  %v5722_v15 = vld [vmem:[%s7486_s1 + $0x100] sm:$0xff]  ;;  %2996 = vmatpush.bf16.msrb.mxu3 %v5698_v2 }
  0xab   : > { %v874_v10 = vld [vmem:[#allocation2 + $0x4c] sm:$0xf]  ;;  %v1256_v11 = vrot.slane %v1255_v53, 4  ;;  %v454_v13 = vrot.slane %v450_v61, 4  ;;  %v461_v14 = vor.u32 %v459_v62, %v458_v0  ;;  %831 = vst [vmem:[#allocation3 + $0x30] sm:$0xff] %v795_v9   ;;  %v463_v6 = vrot.slane %v458_v0, 4  ;;  %3374 = vmatpush.bf16.msrb.mxu0 %v5722_v15 }
  0xac   : > { %v5639_v1 = vld [vmem:[#allocation3 + $0xb8] sm:$0xff]  ;;  %v1266_v12 = vrot.slane %v1265_v63, 4  ;;  %v1059_v22 = vrot.slane %v1057_v3, 4  ;;  %v1062_v23 = vrot.slane %v1060_v4, 5  ;;  %v1066_v24 = vshll.u32 %v874_v10, 16  ;;  %v5746_v0 = vld [vmem:[%s7486_s1 + $0x140] sm:$0xff] }
  0xad   : > { %v1070_v56 = vshrl.u32 %v874_v10, 16  ;;  %v875_v48 = vld [vmem:[#allocation2 + $0x50] sm:$0x1]  ;;  %v1261_v25 = vsel %vm6191_vm9, %v1256_v11, %v1260_v19  ;;  %v714_v28 = vsel %vm6086_vm5, %v453_v7, %v713_v8  ;;  %v5624_v30 = vld [vmem:[#allocation3 + $0x70] sm:$0xff]  ;;  %v773_v35 = vld [vmem:[#allocation2 + $0xbc] sm:$0x1]  ;;  %v462_v36 = vsel %vm6077_vm4, %v454_v13, %v461_v14  ;;  %3752 = vmatpush.bf16.msrb.mxu1 %v5746_v0 }
  0xae   : > { %v1271_v27 = vsel %vm6191_vm9, %v1266_v12, %v1270_v57  ;;  %v1063_v41 = vor.u32 %v1062_v23, %v1059_v22  ;;  %v1068_v31 = vrot.slane %v1066_v24, 5  ;;  %v1076_v52 = vshll.u32 %v875_v48, 16  ;;  %1409 = vst [vmem:[#allocation3 + $0x100] sm:$0xf] %v1261_v25  ;;  %v900_v37 = vld [vmem:[#allocation2 + $0xb4] sm:$0xf] }
  0xaf   : > { %v1072_v34 = vrot.slane %v1070_v56, 4  ;;  %1410 = vst [vmem:[#allocation3 + $0x104] sm:$0xf] %v1271_v27  ;;  %v813_v18 = vld [vmem:[#allocation2 + $0xb4] sm:$0xff]   ;;  %v1417_v38 = vld [vmem:[#allocation2] sm:$0xe]  ;;  %v718_v47 = vsel %vm6215_vm10, %v463_v6, %v717_v29  ;;  %v774_v19 = vsel %vm6215_vm10, %v599_v5, %v773_v35 }
  0xb0   : > { %2266 = vmatmul.bf16.gmra.mxu1 %v5639_v1  ;;  %v1418_v39 = vld [vmem:[#allocation2 + $0x4] sm:$0xf]  ;;  %v1419_v40 = vld [vmem:[#allocation2 + $0x8] sm:$0x1]  ;;  %v1064_v42 = vrot.slane %v1063_v41, 4  ;;  %v1078_v44 = vrot.slane %v1076_v52, 5 }
  0xb1   : > { %v1073_v43 = vor.u32 %v1072_v34, %v1068_v31  ;;  %849 = vst [vmem:[#allocation3 + $0x78] sm:$0xff] %v813_v18   ;;  %v901_v45 = vld [vmem:[#allocation2 + $0xb8] sm:$0xf]  ;;  %v1273_v46 = vshrl.u32 %v900_v37, 16  ;;  %v1276_v49 = vshll.u32 %v900_v37, 16  ;;  %v4930_v53 = vrot.slane %v1417_v38, 9 }
  0xb2   : > { %715 = vst [vmem:[#allocation2 + $0x54] sm:$0xf] %v714_v28  ;;  %v1282_v50 = vshll.u32 %v901_v45, 16  ;;  %v1286_v54 = vshrl.u32 %v901_v45, 16  ;;  %v1069_v55 = vsel %vm6191_vm9, %v1064_v42, %v1068_v31  ;;  %v5616_v59 = vld [vmem:[#allocation3 + $0x30] sm:$0xff]  ;;  %v1530_v63 = vrot.slane %v1418_v39, 5 }
  0xb3   : > { %1997 = vmatmul.bf16.gmra.mxu2 %v5624_v30  ;;  %v1074_v51 = vrot.slane %v1073_v43, 4  ;;  %716 = vst [vmem:[#allocation2 + $0x58] sm:$0xf] %v462_v36  ;;  %v1275_v58 = vrot.slane %v1273_v46, 4  ;;  %v1278_v33 = vrot.slane %v1276_v49, 5  ;;  %v1533_v57 = vrot.slane %v1419_v40, 5 }
  0xb4   : > { %1393 = vst [vmem:[#allocation3 + $0xc0] sm:$0xf] %v1069_v55  ;;  %v1284_v60 = vrot.slane %v1282_v50, 5  ;;  %v1288_v61 = vrot.slane %v1286_v54, 4  ;;  %v1420_v3 = vld [vmem:[#allocation2 + $0xc] sm:$0xe]  ;;  %v1531_v4 = vsel %vm6595_vm13, %v4930_v53, %v1530_v63 }
  0xb5   : > { %2306 = vmatmul.bf16.gmra.mxu3 %v5647_v16  ;;  %v1079_v26 = vsel %vm6191_vm9, %v1074_v51, %v1078_v44  ;;  %719 = vst [vmem:[#allocation2 + $0x5c] sm:$0x1] %v718_v47  ;;  %v1279_v1 = vor.u32 %v1278_v33, %v1275_v58  ;;  %v1532_v5 = vrot.slane %v1530_v63, 4  ;;  %v1421_v7 = vld [vmem:[#allocation2 + $0x10] sm:$0xf]  ;;  %v4931_v9 = vrot.slane %v1420_v3, 9 }
  0xb6   : > { %1957 = vmatmul.bf16.gmra.mxu0 %v5616_v59  ;;  %1394 = vst [vmem:[#allocation3 + $0xc4] sm:$0xf] %v1079_v26  ;;  %v1289_v11 = vor.u32 %v1288_v61, %v1284_v60  ;;  %v1422_v13 = vld [vmem:[#allocation2 + $0x14] sm:$0x1]  ;;  %v1537_v56 = vrot.slane %v1421_v7, 5  ;;  %v5648_v48 = vld [vmem:[#allocation3 + $0x100] sm:$0xff] }
  0xb7   : > { %775 = vst [vmem:[#allocation2 + $0xbc] sm:$0x1] %v774_v19  ;;  %v1280_v8 = vrot.slane %v1279_v1, 4  ;;  %v1534_v12 = vsel %vm6595_vm13, %v1532_v5, %v1533_v57  ;;  %v1540_v6 = vrot.slane %v1422_v13, 5  ;;  %v1424_v55 = vld [vmem:[#allocation2 + $0x1c] sm:$0xf]  ;;  %v1968_v3 = vpop.f32.mrf.mxu2 }
  0xb8   : > { %1691 = vst [vmem:[#allocation3 + $0x120] sm:$0xf] %v1531_v4  ;;  %v1538_v41 = vsel %vm6595_vm13, %v4931_v9, %v1537_v56  ;;  %v1539_v37 = vrot.slane %v1537_v56, 4  ;;  %v5625_v38 = vld [vmem:[#allocation3 + $0x78] sm:$0xff]  ;;  %v1290_v42 = vrot.slane %v1289_v11, 4  ;;  %v1544_v51 = vrot.slane %v1424_v55, 5 }
  0xb9   : > { %v876_v10 = vld [vmem:[#allocation2 + $0x54] sm:$0xf]  ;;  %v1285_v24 = vsel %vm6191_vm9, %v1280_v8, %v1284_v60  ;;  %1692 = vst [vmem:[#allocation3 + $0x124] sm:$0xf] %v1534_v12  ;;  %v1423_v58 = vld [vmem:[#allocation2 + $0x18] sm:$0xe] }
  0xba   : > { %v797_v14 = vld [vmem:[#allocation2 + $0x54] sm:$0xff]   ;;  %v1081_v22 = vshrl.u32 %v876_v10, 16  ;;  %v1084_v23 = vshll.u32 %v876_v10, 16  ;;  %1411 = vst [vmem:[#allocation3 + $0x108] sm:$0xf] %v1285_v24  ;;  %v1541_v45 = vsel %vm6595_vm13, %v1539_v37, %v1540_v6  ;;  %v4932_v59 = vrot.slane %v1423_v58, 9 }
  0xbb   : > { %v877_v16 = vld [vmem:[#allocation2 + $0x58] sm:$0xf]  ;;  %833 = vst [vmem:[#allocation3 + $0x38] sm:$0xff] %v797_v14   ;;  %v1425_v15 = vld [vmem:[#allocation2 + $0x20] sm:$0x1]  ;;  %v1546_v19 = vrot.slane %v1544_v51, 4 }
  0xbc   : > { %v1090_v25 = vshll.u32 %v877_v16, 16  ;;  %v1094_v27 = vshrl.u32 %v877_v16, 16  ;;  %v878_v28 = vld [vmem:[#allocation2 + $0x5c] sm:$0x1]  ;;  %v1083_v29 = vrot.slane %v1081_v22, 4  ;;  %v1086_v30 = vrot.slane %v1084_v23, 5 }
  0xbd   : > { %v5640_v31 = vld [vmem:[#allocation3 + $0xc0] sm:$0xff]  ;;  %v1100_v35 = vshll.u32 %v878_v28, 16  ;;  %1693 = vst [vmem:[#allocation3 + $0x128] sm:$0xf] %v1538_v41  ;;  %v1547_v33 = vrot.slane %v1425_v15, 5  ;;  %v1545_v60 = vsel %vm6595_vm13, %v4932_v59, %v1544_v51  ;;  %v5706_v4 = vld [vmem:[#allocation3 + $0x98] sm:$0xff] }
  0xbe   : > { %v1092_v34 = vrot.slane %v1090_v25, 5  ;;  %v1096_v52 = vrot.slane %v1094_v27, 4  ;;  %v1087_v18 = vor.u32 %v1086_v30, %v1083_v29  ;;  %v902_v36 = vld [vmem:[#allocation2 + $0xbc] sm:$0x1]  ;;  %1694 = vst [vmem:[#allocation3 + $0x12c] sm:$0xf] %v1541_v45 }
  0xbf   : > { %v1102_v40 = vrot.slane %v1100_v35, 5  ;;  %v1292_v43 = vshll.u32 %v902_v36, 16  ;;  %v1548_v61 = vsel %vm6595_vm13, %v1546_v19, %v1547_v33  ;;  %1695 = vst [vmem:[#allocation3 + $0x130] sm:$0xf] %v1545_v60  ;;  %v1427_v5 = vld [vmem:[#allocation2 + $0x28] sm:$0xf]  ;;  %v1970_v23 = vpop.f32.mrf.mxu2 }
  0xc0   : > { %2271 = vmatmul.bf16.gmra.mxu1 %v5640_v31  ;;  %v1097_v39 = vor.u32 %v1096_v52, %v1092_v34  ;;  %v1088_v44 = vrot.slane %v1087_v18, 4  ;;  %1696 = vst [vmem:[#allocation3 + $0x134] sm:$0xf] %v1548_v61  ;;  %v5658_v57 = vld [vmem:[#allocation3 + $0x120] sm:$0xff]  ;;  %v1551_v7 = vrot.slane %v1427_v5, 5  ;;  %v5682_v24 = vld [vmem:[#allocation3 + $0x8] sm:$0xff] }
  0xc1   : > { %v1294_v47 = vrot.slane %v1292_v43, 5  ;;  %v1426_v8 = vld [vmem:[#allocation2 + $0x24] sm:$0xe]  ;;  %v1428_v9 = vld [vmem:[#allocation2 + $0x2c] sm:$0x1]  ;;  %v5707_v27 = vld [vmem:[#allocation3 + $0xa0] sm:$0xff] }
  0xc2   : > { %v1098_v46 = vrot.slane %v1097_v39, 4  ;;  %v5617_v49 = vld [vmem:[#allocation3 + $0x38] sm:$0xff]  ;;  %v1093_v50 = vsel %vm6191_vm9, %v1088_v44, %v1092_v34  ;;  %v4933_v10 = vrot.slane %v1426_v8, 9  ;;  %v1553_v11 = vrot.slane %v1551_v7, 4  ;;  %v1431_v34 = vld [vmem:[#allocation2 + $0x38] sm:$0x1] }
  0xc3   : > { %2002 = vmatmul.bf16.gmra.mxu2 %v5625_v38  ;;  %1395 = vst [vmem:[#allocation3 + $0xc8] sm:$0xf] %v1093_v50  ;;  %v1295_v2 = vsel %vm6191_vm9, %v1290_v42, %v1294_v47  ;;  %v1554_v12 = vrot.slane %v1428_v9, 5  ;;  %v1430_v28 = vld [vmem:[#allocation2 + $0x34] sm:$0xf]  ;;  %v1561_v18 = vrot.slane %v1431_v34, 5 }
  0xc4   : > { %v1103_v54 = vsel %vm6191_vm9, %v1098_v46, %v1102_v40  ;;  %1412 = vst [vmem:[#allocation3 + $0x10c] sm:$0xf] %v1295_v2  ;;  %v1552_v14 = vsel %vm6595_vm13, %v4933_v10, %v1551_v7  ;;  %v1558_v30 = vrot.slane %v1430_v28, 5  ;;  %v1429_v31 = vld [vmem:[#allocation2 + $0x30] sm:$0xe]  ;;  %v5683_v45 = vld [vmem:[#allocation3 + $0x10] sm:$0xff] }
  0xc5   : > { %2311 = vmatmul.bf16.gmra.mxu3 %v5648_v48  ;;  %1396 = vst [vmem:[#allocation3 + $0xcc] sm:$0xf] %v1103_v54  ;;  %v1555_v16 = vsel %vm6595_vm13, %v1553_v11, %v1554_v12  ;;  %v5730_v22 = vld [vmem:[#allocation3 + $0x128] sm:$0xff]  ;;  %v4934_v52 = vrot.slane %v1429_v31, 9  ;;  %v1432_v19 = vld [vmem:[#allocation2 + $0x3c] sm:$0xe] }
  0xc6   : > { %1962 = vmatmul.bf16.gmra.mxu0 %v5617_v49  ;;  %1697 = vst [vmem:[#allocation3 + $0x138] sm:$0xf] %v1552_v14  ;;  %v5659_v56 = vld [vmem:[#allocation3 + $0x128] sm:$0xff]  ;;  %v1560_v35 = vrot.slane %v1558_v30, 4  ;;  %v4935_v60 = vrot.slane %v1432_v19, 9  ;;  %v5684_v8 = vld [vmem:[#allocation3 + $0x18] sm:$0xff] }
  0xc7   : > { %1698 = vst [vmem:[#allocation3 + $0x13c] sm:$0xf] %v1555_v16  ;;  %v1559_v36 = vsel %vm6595_vm13, %v4934_v52, %v1558_v30  ;;  %v5731_v40 = vld [vmem:[#allocation3 + $0x130] sm:$0xff]  ;;  %v5708_v50 = vld [vmem:[#allocation3 + $0xa8] sm:$0xff]  ;;  %v1440_v19 = vld [vmem:[#allocation2 + $0x5c] sm:$0x1] }
  0xc8   : > { %v1562_v37 = vsel %vm6595_vm13, %v1560_v35, %v1561_v18  ;;  %1699 = vst [vmem:[#allocation3 + $0x140] sm:$0xf] %v1559_v36  ;;  %v5660_v47 = vld [vmem:[#allocation3 + $0x130] sm:$0xff]  ;;  %v1433_v51 = vld [vmem:[#allocation2 + $0x40] sm:$0xf] }
  0xc9   : > { %1700 = vst [vmem:[#allocation3 + $0x144] sm:$0xf] %v1562_v37  ;;  %v1565_v15 = vrot.slane %v1433_v51, 5  ;;  %v1434_v33 = vld [vmem:[#allocation2 + $0x44] sm:$0x1]  ;;  %v5709_v11 = vld [vmem:[#allocation3 + $0xb0] sm:$0xff] }
  0xcb   : > { %v5649_v53 = vld [vmem:[#allocation3 + $0x108] sm:$0xff]  ;;  %v1567_v61 = vrot.slane %v1565_v15, 4 }
  0xcc   : > { %v5641_v26 = vld [vmem:[#allocation3 + $0xc8] sm:$0xff] }
  0xce   : > { %v5661_v10 = vld [vmem:[#allocation3 + $0x138] sm:$0xff] }
  0xd0   : > { %2276 = vmatmul.bf16.gmra.mxu1 %v5641_v26  ;;  %v1568_v26 = vrot.slane %v1434_v33, 5  ;;  %v5733_v52 = vld [vmem:[#allocation3 + $0x140] sm:$0xff] }
  0xd2   : > { %v1928_v63 = vpop.f32.mrf.mxu0 }
  0xd3   : > { %2619 = vmatmul.bf16.vlgmr.msrb.gmra.mxu2 %v5658_v57 }
  0xd4   : > { %v2242_v0 = vpop.f32.mrf.mxu1 }
  0xd5   : > { %2316 = vmatmul.bf16.gmra.mxu3 %v5649_v53  ;;  %v6624_v1 = vadd.f32 %v2242_v0, %v1928_v63  ;;  %v1566_v53 = vsel %vm6595_vm13, %v4935_v60, %v1565_v15  ;;  %v1569_v63 = vsel %vm6595_vm13, %v1567_v61, %v1568_v26  ;;  %v1582_v61 = vrot.slane %v1440_v19, 5 }
  0xd6   : > { %3375 = vmatmul.bf16.vlgmr.msrb.gmra.mxu0 %v5706_v4  ;;  %1701 = vst [vmem:[#allocation3 + $0x148] sm:$0xf] %v1566_v53 }
  0xd7   : > { %1702 = vst [vmem:[#allocation3 + $0x14c] sm:$0xf] %v1569_v63 }
  0xda   : > { %v6626_v13 = vpop.f32.mrf.mxu0 }
  0xdc   : > { %v6632_v48 = vpop.f32.mrf.mxu1 }
  0xde   : > { %v5734_v63 = vld [vmem:[#allocation3 + $0x148] sm:$0xff] }
  0xe0   : > { %3753 = vmatmul.bf16.vlgmr.msrb.gmra.mxu1 %v5730_v22 }
  0xe3   : > { %v1933_v25 = vpop.f32.mrf.mxu0  ;;  %2624 = vmatmul.bf16.gmra.mxu2 %v5659_v56 }
  0xe5   : > { %2997 = vmatmul.bf16.vlgmr.msrb.gmra.mxu3 %v5682_v24 }
  0xe6   : > { %v1973_v41 = vpop.f32.mrf.mxu2  ;;  %3380 = vmatmul.bf16.gmra.mxu0 %v5707_v27  ;;  %v1435_v27 = vld [vmem:[#allocation2 + $0x48] sm:$0xe] }
  0xe7   : > { %v4936_v28 = vrot.slane %v1435_v27, 9 }
  0xe8   : > { %v2282_v6 = vpop.f32.mrf.mxu3 }
  0xe9   : > { %v6634_v29 = vadd.f32 %v2282_v6, %v1968_v3  ;;  %v5732_v3 = vld [vmem:[#allocation3 + $0x138] sm:$0xff] }
  0xea   : > { %v1437_v6 = vld [vmem:[#allocation2 + $0x50] sm:$0x1] }
  0xeb   : > { %v1935_v38 = vpop.f32.mrf.mxu0 }
  0xed   : > { %v2247_v39 = vpop.f32.mrf.mxu1 }
  0xee   : > { %v6640_v43 = vadd.f32 %v2247_v39, %v1933_v25  ;;  %v1975_v46 = vpop.f32.mrf.mxu2  ;;  %v5685_v39 = vld [vmem:[#allocation3 + $0x20] sm:$0xff] }
  0xf0   : > { %v2284_v42 = vpop.f32.mrf.mxu3  ;;  %3758 = vmatmul.bf16.gmra.mxu1 %v5731_v40 }
  0xf1   : > { %v6642_v44 = vadd.f32 %v2284_v42, %v1970_v23  ;;  %v1436_v23 = vld [vmem:[#allocation2 + $0x4c] sm:$0xf]  ;;  %v5662_v42 = vld [vmem:[#allocation3 + $0x140] sm:$0xff] }
  0xf2   : > { %v1572_v56 = vrot.slane %v1436_v23, 5 }
  0xf3   : > { %v1938_v49 = vpop.f32.mrf.mxu0  ;;  %2629 = vmatmul.bf16.gmra.mxu2 %v5660_v47 }
  0xf4   : > { %v1574_v30 = vrot.slane %v1572_v56, 4  ;;  %v1573_v31 = vsel %vm6595_vm13, %v4936_v28, %v1572_v56  ;;  %v1442_v56 = vld [vmem:[#allocation2 + $0x64] sm:$0xf] }
  0xf5   : > { %3002 = vmatmul.bf16.gmra.mxu3 %v5683_v45  ;;  %v2249_v54 = vpop.f32.mrf.mxu1  ;;  %1703 = vst [vmem:[#allocation3 + $0x150] sm:$0xf] %v1573_v31  ;;  %v5710_v45 = vld [vmem:[#allocation3 + $0xb8] sm:$0xff] }
  0xf6   : > { %v6644_v55 = vadd.f32 %v2249_v54, %v1935_v38  ;;  %v1978_v59 = vpop.f32.mrf.mxu2  ;;  %3385 = vmatmul.bf16.gmra.mxu0 %v5708_v50  ;;  %v1439_v50 = vld [vmem:[#allocation2 + $0x58] sm:$0xf] }
  0xf7   : > { %v1579_v51 = vrot.slane %v1439_v50, 5 }
  0xf8   : > { %v2287_v2 = vpop.f32.mrf.mxu3 }
  0xf9   : > { %v6646_v58 = vadd.f32 %v2287_v2, %v1973_v41  ;;  %v1575_v41 = vrot.slane %v1437_v6, 5  ;;  %v1581_v60 = vrot.slane %v1579_v51, 4  ;;  %v1586_v6 = vrot.slane %v1442_v56, 5 }
  0xfb   : > { %v1940_v57 = vpop.f32.mrf.mxu0  ;;  %v1576_v34 = vsel %vm6595_vm13, %v1574_v30, %v1575_v41  ;;  %v1583_v53 = vsel %vm6595_vm13, %v1581_v60, %v1582_v61  ;;  %v1441_v30 = vld [vmem:[#allocation2 + $0x60] sm:$0xe]  ;;  %v1443_v41 = vld [vmem:[#allocation2 + $0x68] sm:$0x1] }
  0xfc   : > { %1704 = vst [vmem:[#allocation3 + $0x154] sm:$0xf] %v1576_v34  ;;  %v4938_v31 = vrot.slane %v1441_v30, 9  ;;  %v1588_v34 = vrot.slane %v1586_v6, 4 }
  0xfd   : > { %v2252_v0 = vpop.f32.mrf.mxu1  ;;  %1706 = vst [vmem:[#allocation3 + $0x15c] sm:$0xf] %v1583_v53 }
  0xfe   : > { %v6652_v5 = vadd.f32 %v2252_v0, %v1938_v49  ;;  %v1980_v9 = vpop.f32.mrf.mxu2 }
 0x100   : > { %v2289_v4 = vpop.f32.mrf.mxu3  ;;  %3763 = vmatmul.bf16.gmra.mxu1 %v5732_v3 }
 0x101   : > { %v6654_v7 = vadd.f32 %v2289_v4, %v1975_v46 }
 0x103   : > { %2634 = vmatmul.bf16.gmra.mxu2 %v5661_v10  ;;  %v1943_v14 = vpop.f32.mrf.mxu0  ;;  %v5664_v50 = vld [vmem:[#allocation3 + $0x150] sm:$0xff] }
 0x105   : > { %3007 = vmatmul.bf16.gmra.mxu3 %v5684_v8  ;;  %v2254_v12 = vpop.f32.mrf.mxu1 }
 0x106   : > { %v6656_v22 = vadd.f32 %v2254_v12, %v1940_v57  ;;  %v1983_v25 = vpop.f32.mrf.mxu2  ;;  %3390 = vmatmul.bf16.gmra.mxu0 %v5709_v11  ;;  %v5663_v11 = vld [vmem:[#allocation3 + $0x148] sm:$0xff]  ;;  %v5711_v12 = vld [vmem:[#allocation3 + $0xc0] sm:$0xff] }
 0x108   : > { %v2292_v16 = vpop.f32.mrf.mxu3 }
 0x109   : > { %v6658_v24 = vadd.f32 %v2292_v16, %v1978_v59  ;;  %v1438_v59 = vld [vmem:[#allocation2 + $0x54] sm:$0xe] }
 0x10a   : > { %v4937_v33 = vrot.slane %v1438_v59, 9 }
 0x10b   : > { %v1945_v35 = vpop.f32.mrf.mxu0 }
 0x10c   : > { %v1580_v26 = vsel %vm6595_vm13, %v4937_v33, %v1579_v51  ;;  %v5712_v51 = vld [vmem:[#allocation3 + $0xc8] sm:$0xff]  ;;  %v1445_v33 = vld [vmem:[#allocation2 + $0x70] sm:$0xf] }
 0x10d   : > { %v2257_v36 = vpop.f32.mrf.mxu1  ;;  %1705 = vst [vmem:[#allocation3 + $0x158] sm:$0xf] %v1580_v26  ;;  %v1593_v26 = vrot.slane %v1445_v33, 5 }
 0x10e   : > { %v6666_v38 = vadd.f32 %v2257_v36, %v1943_v14  ;;  %v1985_v40 = vpop.f32.mrf.mxu2  ;;  %v5735_v36 = vld [vmem:[#allocation3 + $0x150] sm:$0xff] }
 0x110   : > { %v2294_v18 = vpop.f32.mrf.mxu3  ;;  %3768 = vmatmul.bf16.gmra.mxu1 %v5733_v52  ;;  %v1589_v52 = vrot.slane %v1443_v41, 5 }
 0x111   : > { %v6664_v37 = vadd.f32 %v2294_v18, %v1980_v9  ;;  %v5686_v9 = vld [vmem:[#allocation3 + $0x28] sm:$0xff] }
 0x112   : > { %v1590_v18 = vsel %vm6595_vm13, %v1588_v34, %v1589_v52 }
 0x113   : > { %2639 = vmatmul.bf16.gmra.mxu2 %v5662_v42  ;;  %v1948_v46 = vpop.f32.mrf.mxu0  ;;  %1708 = vst [vmem:[#allocation3 + $0x164] sm:$0xf] %v1590_v18  ;;  %v1448_v18 = vld [vmem:[#allocation2 + $0x7c] sm:$0xf] }
 0x114   : > { %v5665_v41 = vld [vmem:[#allocation3 + $0x158] sm:$0xff] }
 0x115   : > { %3012 = vmatmul.bf16.gmra.mxu3 %v5685_v39  ;;  %v2259_v49 = vpop.f32.mrf.mxu1 }
 0x116   : > { %v6670_v2 = vadd.f32 %v2259_v49, %v1945_v35  ;;  %v1988_v15 = vpop.f32.mrf.mxu2  ;;  %3395 = vmatmul.bf16.gmra.mxu0 %v5710_v45  ;;  %v1587_v35 = vsel %vm6595_vm13, %v4938_v31, %v1586_v6  ;;  %v5713_v31 = vld [vmem:[#allocation3 + $0xd0] sm:$0xff] }
 0x117   : > { %1707 = vst [vmem:[#allocation3 + $0x160] sm:$0xf] %v1587_v35 }
 0x118   : > { %v2297_v47 = vpop.f32.mrf.mxu3 }
 0x119   : > { %v6668_v54 = vadd.f32 %v2297_v47, %v1983_v25  ;;  %v5687_v47 = vld [vmem:[#allocation3 + $0x30] sm:$0xff] }
 0x11b   : > { %v1950_v57 = vpop.f32.mrf.mxu0 }
 0x11d   : > { %v2262_v3 = vpop.f32.mrf.mxu1 }
 0x11e   : > { %v6678_v8 = vadd.f32 %v2262_v3, %v1948_v46  ;;  %v1990_v10 = vpop.f32.mrf.mxu2  ;;  %v1595_v3 = vrot.slane %v1593_v26, 4  ;;  %v5737_v33 = vld [vmem:[#allocation3 + $0x160] sm:$0xff] }
 0x120   : > { %v2299_v0 = vpop.f32.mrf.mxu3  ;;  %3773 = vmatmul.bf16.gmra.mxu1 %v5734_v63  ;;  %v1444_v63 = vld [vmem:[#allocation2 + $0x6c] sm:$0xe] }
 0x121   : > { %v6676_v4 = vadd.f32 %v2299_v0, %v1985_v40  ;;  %v4939_v0 = vrot.slane %v1444_v63, 9 }
 0x123   : > { %2644 = vmatmul.bf16.gmra.mxu2 %v5663_v11  ;;  %v1953_v14 = vpop.f32.mrf.mxu0 }
 0x125   : > { %3017 = vmatmul.bf16.gmra.mxu3 %v5686_v9  ;;  %v2264_v23 = vpop.f32.mrf.mxu1 }
 0x126   : > { %v6682_v27 = vadd.f32 %v2264_v23, %v1950_v57  ;;  %v1993_v28 = vpop.f32.mrf.mxu2  ;;  %3400 = vmatmul.bf16.gmra.mxu0 %v5711_v12  ;;  %v1446_v57 = vld [vmem:[#allocation2 + $0x74] sm:$0x1] }
 0x127   : > { %v1596_v9 = vrot.slane %v1446_v57, 5  ;;  %v5736_v12 = vld [vmem:[#allocation3 + $0x158] sm:$0xff] }
 0x128   : > { %v2302_v16 = vpop.f32.mrf.mxu3 }
 0x129   : > { %v6680_v25 = vadd.f32 %v2302_v16, %v1988_v15  ;;  %v1597_v11 = vsel %vm6595_vm13, %v1595_v3, %v1596_v9  ;;  %v5689_v3 = vld [vmem:[#allocation3 + $0x40] sm:$0xff] }
 0x12a   : > { %1710 = vst [vmem:[#allocation3 + $0x16c] sm:$0xf] %v1597_v11  ;;  %v5714_v11 = vld [vmem:[#allocation3 + $0xd8] sm:$0xff] }
 0x12b   : > { %v1955_v39 = vpop.f32.mrf.mxu0 }
 0x12d   : > { %v2267_v42 = vpop.f32.mrf.mxu1 }
 0x12e   : > { %v6690_v46 = vadd.f32 %v2267_v42, %v1953_v14  ;;  %v1995_v49 = vpop.f32.mrf.mxu2 }
 0x130   : > { %v2304_v40 = vpop.f32.mrf.mxu3  ;;  %3778 = vmatmul.bf16.gmra.mxu1 %v5735_v36 }
 0x131   : > { %v6688_v45 = vadd.f32 %v2304_v40, %v1990_v10  ;;  %v1594_v10 = vsel %vm6595_vm13, %v4939_v0, %v1593_v26  ;;  %v1600_v40 = vrot.slane %v1448_v18, 5 }
 0x132   : > { %1709 = vst [vmem:[#allocation3 + $0x168] sm:$0xf] %v1594_v10  ;;  %v5666_v10 = vld [vmem:[#allocation3 + $0x160] sm:$0xff] }
 0x133   : > { %2649 = vmatmul.bf16.gmra.mxu2 %v5664_v50  ;;  %v1958_v15 = vpop.f32.mrf.mxu0 }
 0x135   : > { %3022 = vmatmul.bf16.gmra.mxu3 %v5687_v47  ;;  %v2269_v19 = vpop.f32.mrf.mxu1  ;;  %v1447_v47 = vld [vmem:[#allocation2 + $0x78] sm:$0xe] }
 0x136   : > { %v6694_v61 = vadd.f32 %v2269_v19, %v1955_v39  ;;  %v1998_v53 = vpop.f32.mrf.mxu2  ;;  %3405 = vmatmul.bf16.gmra.mxu0 %v5712_v51  ;;  %v4940_v50 = vrot.slane %v1447_v47, 9  ;;  %v1602_v51 = vrot.slane %v1600_v40, 4 }
 0x138   : > { %v2307_v59 = vpop.f32.mrf.mxu3 }
 0x139   : > { %v6692_v60 = vadd.f32 %v2307_v59, %v1993_v28  ;;  %v5688_v28 = vld [vmem:[#allocation3 + $0x38] sm:$0xff]  ;;  %v1601_v59 = vsel %vm6595_vm13, %v4940_v50, %v1600_v40  ;;  %v5738_v50 = vld [vmem:[#allocation3 + $0x168] sm:$0xff] }
 0x13a   : > { %1711 = vst [vmem:[#allocation3 + $0x170] sm:$0xf] %v1601_v59 }
 0x13b   : > { %v1960_v14 = vpop.f32.mrf.mxu0 }
 0x13d   : > { %v2272_v23 = vpop.f32.mrf.mxu1 }
 0x13e   : > { %v6702_v6 = vadd.f32 %v2272_v23, %v1958_v15  ;;  %v2000_v30 = vpop.f32.mrf.mxu2  ;;  %v1451_v23 = vld [vmem:[#allocation2 + $0x88] sm:$0xf] }
 0x140   : > { %v2309_v16 = vpop.f32.mrf.mxu3  ;;  %3783 = vmatmul.bf16.gmra.mxu1 %v5736_v12 }
 0x141   : > { %v6700_v56 = vadd.f32 %v2309_v16, %v1995_v49  ;;  %v1449_v49 = vld [vmem:[#allocation2 + $0x80] sm:$0x1] }
 0x142   : > { %v1603_v15 = vrot.slane %v1449_v49, 5 }
 0x143   : > { %2654 = vmatmul.bf16.gmra.mxu2 %v5665_v41  ;;  %v1963_v34 = vpop.f32.mrf.mxu0 }
 0x144   : > { %v1604_v19 = vsel %vm6595_vm13, %v1602_v51, %v1603_v15 }
 0x145   : > { %3027 = vmatmul.bf16.gmra.mxu3 %v5688_v28  ;;  %v2274_v35 = vpop.f32.mrf.mxu1  ;;  %1712 = vst [vmem:[#allocation3 + $0x174] sm:$0xf] %v1604_v19  ;;  %v5690_v19 = vld [vmem:[#allocation3 + $0x48] sm:$0xff] }
 0x146   : > { %v6706_v39 = vadd.f32 %v2274_v35, %v1960_v14  ;;  %v2003_v42 = vpop.f32.mrf.mxu2  ;;  %3410 = vmatmul.bf16.gmra.mxu0 %v5713_v31  ;;  %v1607_v31 = vrot.slane %v1451_v23, 5 }
 0x148   : > { %v2312_v52 = vpop.f32.mrf.mxu3  ;;  %v1609_v18 = vrot.slane %v1607_v31, 4 }
 0x149   : > { %v6704_v36 = vadd.f32 %v2312_v52, %v1998_v53  ;;  %v1452_v52 = vld [vmem:[#allocation2 + $0x8c] sm:$0x1] }
 0x14a   : > { %v1610_v40 = vrot.slane %v1452_v52, 5 }
 0x14b   : > { %v1965_v26 = vpop.f32.mrf.mxu0 }
 0x14c   : > { %v1611_v49 = vsel %vm6595_vm13, %v1609_v18, %v1610_v40  ;;  %v2355_v40 = vadd.f32 %v6632_v48, %v6626_v13  ;;  %v5691_v13 = vld [vmem:[#allocation3 + $0x50] sm:$0xff] }
 0x14d   : > { %v2277_v63 = vpop.f32.mrf.mxu1  ;;  %1714 = vst [vmem:[#allocation3 + $0x17c] sm:$0xf] %v1611_v49 }
 0x14e   : > { %v6714_v0 = vadd.f32 %v2277_v63, %v1963_v34  ;;  %v2005_v9 = vpop.f32.mrf.mxu2  ;;  %v1450_v34 = vld [vmem:[#allocation2 + $0x84] sm:$0xe] }
 0x14f   : > { %v4941_v35 = vrot.slane %v1450_v34, 9  ;;  %v1455_v34 = vld [vmem:[#allocation2 + $0x98] sm:$0x1] }
 0x150   : > { %v2314_v53 = vpop.f32.mrf.mxu3  ;;  %3788 = vmatmul.bf16.gmra.mxu1 %v5737_v33 }
 0x151   : > { %v6712_v57 = vadd.f32 %v2314_v53, %v2000_v30  ;;  %v1608_v47 = vsel %vm6595_vm13, %v4941_v35, %v1607_v31  ;;  %v5715_v53 = vld [vmem:[#allocation3 + $0xe0] sm:$0xff]  ;;  %v6730_v35 = vld [vmem:[%s7487_s2] ss:$0 sm:$0xff] }
 0x152   : > { %1713 = vst [vmem:[#allocation3 + $0x178] sm:$0xf] %v1608_v47 }
 0x153   : > { %2659 = vmatmul.bf16.gmra.mxu2 %v5666_v10  ;;  %v3376_v12 = vpop.f32.mrf.mxu0 }
 0x155   : > { %3032 = vmatmul.bf16.gmra.mxu3 %v5689_v3  ;;  %v2279_v16 = vpop.f32.mrf.mxu1 }
 0x156   : > { %v6718_v41 = vadd.f32 %v2279_v16, %v1965_v26  ;;  %v2620_v30 = vpop.f32.mrf.mxu2  ;;  %3415 = vmatmul.bf16.gmra.mxu0 %v5714_v11  ;;  %v5667_v26 = vld [vmem:[#allocation3 + $0x168] sm:$0xff] }
 0x157   : > { %v2732_v63 = vadd.f32 %v2620_v30, %v6624_v1  ;;  %v1617_v30 = vrot.slane %v1455_v34, 5 }
 0x158   : > { %v2317_v14 = vpop.f32.mrf.mxu3 }
 0x159   : > { %v6716_v28 = vadd.f32 %v2317_v14, %v2003_v42  ;;  %v1454_v14 = vld [vmem:[#allocation2 + $0x94] sm:$0xf] }
 0x15a   : > { %v1614_v23 = vrot.slane %v1454_v14, 5 }
 0x15b   : > { %v3378_v42 = vpop.f32.mrf.mxu0 }
 0x15c   : > { %v1616_v1 = vrot.slane %v1614_v23, 4 }
 0x15d   : > { %v3754_v15 = vpop.f32.mrf.mxu1 }
 0x15e   : > { %v2622_v33 = vpop.f32.mrf.mxu2 }
 0x160   : > { %v2319_v51 = vpop.f32.mrf.mxu3  ;;  %3793 = vmatmul.bf16.gmra.mxu1 %v5738_v50  ;;  %v3998_v50 = vld [vmem:[%s6059_s30] sm:$0xff] }
 0x161   : > { %v6724_v59 = vadd.f32 %v2319_v51, %v2005_v9  ;;  %v1453_v9 = vld [vmem:[#allocation2 + $0x90] sm:$0xe]  ;;  %v1618_v51 = vsel %vm6595_vm13, %v1616_v1, %v1617_v30 }
 0x162   : > { %v4942_v18 = vrot.slane %v1453_v9, 9  ;;  %1716 = vst [vmem:[#allocation3 + $0x184] sm:$0xf] %v1618_v51  ;;  %v5668_v9 = vld [vmem:[#allocation3 + $0x170] sm:$0xff] }
 0x163   : > { %7512 = vst [vmem:[#allocation8_spill] sm:$0xff] %v6724_v59  ;;  %2664 = vmatmul.bf16.gmra.mxu2 %v5667_v26  ;;  %v3381_v3 = vpop.f32.mrf.mxu0  ;;  %v5739_v26 = vld [vmem:[#allocation3 + $0x170] sm:$0xff] }
 0x164   : > { %v1615_v49 = vsel %vm6595_vm13, %v4942_v18, %v1614_v23 }
 0x165   : > { %3037 = vmatmul.bf16.gmra.mxu3 %v5690_v19  ;;  %v3756_v11 = vpop.f32.mrf.mxu1  ;;  %1715 = vst [vmem:[#allocation3 + $0x180] sm:$0xf] %v1615_v49 }
 0x166   : > { %v2625_v31 = vpop.f32.mrf.mxu2  ;;  %3420 = vmatmul.bf16.gmra.mxu0 %v5715_v53 }
 0x167   : > { %v2734_v18 = vadd.f32 %v2625_v31, %v6640_v43 }
 0x168   : > { %v2998_v10 = vpop.f32.mrf.mxu3 }
 0x169   : > { %v3110_v16 = vadd.f32 %v2998_v10, %v2732_v63 }
 0x16b   : > { %v3488_v52 = vadd.f32 %v3376_v12, %v3110_v16  ;;  %v2733_v12 = vadd.f32 %v2622_v33, %v2355_v40  ;;  %v3383_v53 = vpop.f32.mrf.mxu0  ;;  %v3999_v33 = vld [vmem:[%s6059_s30 + $0x8] sm:$0xff] }
 0x16d   : > { %v3866_v47 = vadd.f32 %v3754_v15, %v3488_v52  ;;  %v3759_v10 = vpop.f32.mrf.mxu1  ;;  %v5716_v52 = vld [vmem:[#allocation3 + $0xe8] sm:$0xff] }
 0x16e   : > { %v2627_v15 = vpop.f32.mrf.mxu2 }
 0x16f   : > { %v3966_v19 = vadd.f32 %v6730_v35, %v3866_v47 }
 0x170   : > { %v3000_v63 = vpop.f32.mrf.mxu3  ;;  %3798 = vmatmul.bf16.gmra.mxu1 %v5739_v26 }
 0x171   : > { %v3111_v14 = vadd.f32 %v3000_v63, %v2733_v12  ;;  %v6740_v48 = vadd.f32 %v3998_v50, %v3966_v19  ;;  %v1456_v12 = vld [vmem:[#allocation2 + $0x9c] sm:$0xe]  ;;  %v1458_v19 = vld [vmem:[#allocation2 + $0xa4] sm:$0x1] }
 0x172   : > { %v4943_v43 = vrot.slane %v1456_v12, 9 }
 0x173   : > { %v3489_v16 = vadd.f32 %v3378_v42, %v3111_v14  ;;  %v7494_v23 = vmax.f32 %v6740_v48, 0.0  ;;  %2669 = vmatmul.bf16.gmra.mxu2 %v5668_v9  ;;  %v3386_v30 = vpop.f32.mrf.mxu0  ;;  %v1457_v42 = vld [vmem:[#allocation2 + $0xa0] sm:$0xf]  ;;  %v1624_v14 = vrot.slane %v1458_v19, 5  ;;  %v4000_v9 = vld [vmem:[%s6059_s30 + $0x10] sm:$0xff] }
 0x175   : > { %v3867_v34 = vadd.f32 %v3756_v11, %v3489_v16  ;;  %3042 = vmatmul.bf16.gmra.mxu3 %v5691_v13  ;;  %4094 = vadd.xlane.f32.xlu0 %v7494_v23  ;;  %v3761_v47 = vpop.f32.mrf.mxu1  ;;  %v1621_v11 = vrot.slane %v1457_v42, 5  ;;  %v5692_v42 = vld [vmem:[#allocation3 + $0x58] sm:$0xff] }
 0x176   : > { %v2630_v51 = vpop.f32.mrf.mxu2  ;;  %3425 = vmatmul.bf16.gmra.mxu0 %v5716_v52  ;;  %v5740_v52 = vld [vmem:[#allocation3 + $0x178] sm:$0xff] }
 0x177   : > { %v3967_v1 = vadd.f32 %v6730_v35, %v3867_v34  ;;  %v1623_v31 = vrot.slane %v1621_v11, 4  ;;  %v1622_v16 = vsel %vm6595_vm13, %v4943_v43, %v1621_v11 }
 0x178   : > { %v3003_v40 = vpop.f32.mrf.mxu3  ;;  %1717 = vst [vmem:[#allocation3 + $0x188] sm:$0xf] %v1622_v16 }
 0x179   : > { %v3112_v49 = vadd.f32 %v3003_v40, %v2734_v18  ;;  %v6748_v50 = vadd.f32 %v3999_v33, %v3967_v1  ;;  %v1625_v34 = vsel %vm6595_vm13, %v1623_v31, %v1624_v14  ;;  %v2735_v33 = vadd.f32 %v2627_v15, %v6644_v55  ;;  %v4001_v55 = vld [vmem:[%s6059_s30 + $0x18] sm:$0xff]  ;;  %v5717_v15 = vld [vmem:[#allocation3 + $0xf0] sm:$0xff] }
 0x17a   : > { %1718 = vst [vmem:[#allocation3 + $0x18c] sm:$0xf] %v1625_v34  ;;  %v2736_v31 = vadd.f32 %v2630_v51, %v6652_v5 }
 0x17b   : > { %v3490_v26 = vadd.f32 %v3381_v3, %v3112_v49  ;;  %v7493_v63 = vmax.f32 %v6748_v50, 0.0  ;;  %v3388_v18 = vpop.f32.mrf.mxu0 }
 0x17d   : > { %v3868_v13 = vadd.f32 %v3759_v10, %v3490_v26  ;;  %4096 = vadd.xlane.f32.xlu0 %v7493_v63  ;;  %v3764_v1 = vpop.f32.mrf.mxu1  ;;  %v5669_v26 = vld [vmem:[#allocation3 + $0x178] sm:$0xff] }
 0x17e   : > { %v2632_v11 = vpop.f32.mrf.mxu2 }
 0x17f   : > { %v3968_v3 = vadd.f32 %v6730_v35, %v3868_v13 }
 0x180   : > { %v3005_v10 = vpop.f32.mrf.mxu3  ;;  %3803 = vmatmul.bf16.gmra.mxu1 %v5740_v52  ;;  %v1459_v52 = vld [vmem:[#allocation2 + $0xa8] sm:$0xe] }
 0x181   : > { %v3113_v40 = vadd.f32 %v3005_v10, %v2735_v33  ;;  %v6760_v49 = vadd.f32 %v4000_v9, %v3968_v3  ;;  %v1460_v9 = vld [vmem:[#allocation2 + $0xac] sm:$0xf]  ;;  %v1461_v10 = vld [vmem:[#allocation2 + $0xb0] sm:$0x1]  ;;  %v4944_v51 = vrot.slane %v1459_v52, 9  ;;  %v5693_v52 = vld [vmem:[#allocation3 + $0x60] sm:$0xff] }
 0x183   : > { %v3491_v12 = vadd.f32 %v3383_v53, %v3113_v40  ;;  %v7492_v19 = vmax.f32 %v6760_v49, 0.0  ;;  %2674 = vmatmul.bf16.gmra.mxu2 %v5669_v26  ;;  %v6768_v13 = vpop.f32.mrf.mxu0 }
 0x185   : > { %v3869_v43 = vadd.f32 %v3761_v47, %v3491_v12  ;;  %3047 = vmatmul.bf16.gmra.mxu3 %v5692_v42  ;;  %4098 = vadd.xlane.f32.xlu1 %v7492_v19  ;;  %v3766_v53 = vpop.f32.mrf.mxu1  ;;  %v1628_v47 = vrot.slane %v1460_v9, 5  ;;  %v1631_v12 = vrot.slane %v1461_v10, 5 }
 0x186   : > { %v2635_v3 = vpop.f32.mrf.mxu2  ;;  %3430 = vmatmul.bf16.gmra.mxu0 %v5717_v15 }
 0x187   : > { %v3969_v14 = vadd.f32 %v6730_v35, %v3869_v43  ;;  %v1630_v42 = vrot.slane %v1628_v47, 4  ;;  %v1629_v43 = vsel %vm6595_vm13, %v4944_v51, %v1628_v47  ;;  %v308_v47 = vld [vmem:[%s6059_s30 + $0xf0] sm:$0xff] }
 0x188   : > { %v3008_v16 = vpop.f32.mrf.mxu3  ;;  %1719 = vst [vmem:[#allocation3 + $0x190] sm:$0xf] %v1629_v43 }
 0x189   : > { %v3114_v34 = vadd.f32 %v3008_v16, %v2736_v31  ;;  %v6770_v33 = vadd.f32 %v4001_v55, %v3969_v14  ;;  %v4002_v55 = vld [vmem:[%s6059_s30 + $0x20] sm:$0xff]  ;;  %v1632_v15 = vsel %vm6595_vm13, %v1630_v42, %v1631_v12  ;;  %v5741_v14 = vld [vmem:[#allocation3 + $0x180] sm:$0xff]  ;;  %v340_v42 = vpack.c.bf16 %v308_v47, %v308_v47 }
 0x18a   : > { %1720 = vst [vmem:[#allocation3 + $0x194] sm:$0xf] %v1632_v15  ;;  %v2738_v47 = vadd.f32 %v2635_v3, %v6666_v38  ;;  %v1464_v38 = vld [vmem:[#allocation2 + $0xbc] sm:$0x1] }
 0x18b   : > { %v3492_v40 = vadd.f32 %v3386_v30, %v3114_v34  ;;  %v7491_v5 = vmax.f32 %v6770_v33, 0.0  ;;  %v2737_v30 = vadd.f32 %v2632_v11, %v6656_v22  ;;  %v6782_v16 = vpop.f32.mrf.mxu0  ;;  %v5670_v11 = vld [vmem:[#allocation3 + $0x180] sm:$0xff] }
 0x18d   : > { %v3870_v26 = vadd.f32 %v3764_v1, %v3492_v40  ;;  %4100 = vadd.xlane.f32.xlu1 %v7491_v5  ;;  %v3769_v9 = vpop.f32.mrf.mxu1  ;;  %v309_v40 = vld [vmem:[%s6059_s30 + $0xf8] sm:$0xff] }
 0x18e   : > { %v2637_v51 = vpop.f32.mrf.mxu2  ;;  %v341_v12 = vpack.c.bf16 %v309_v40, %v309_v40 }
 0x18f   : > { %v3970_v31 = vadd.f32 %v6730_v35, %v3870_v26  ;;  %v601_v26 = vshrl.u32 %v340_v42, 16 }
 0x190   : > { %v3010_v1 = vpop.f32.mrf.mxu3  ;;  %3808 = vmatmul.bf16.gmra.mxu1 %v5741_v14  ;;  %v609_v5 = vshrl.u32 %v341_v12, 16  ;;  %v612_v63 = vshll.u32 %v341_v12, 16  ;;  %v1462_v12 = vld [vmem:[#allocation2 + $0xb4] sm:$0xe] }
 0x191   : > { %v3115_v34 = vadd.f32 %v3010_v1, %v2737_v30  ;;  %v6784_v10 = vadd.f32 %v4002_v55, %v3970_v31  ;;  %v4003_v30 = vld [vmem:[%s6059_s30 + $0x28] sm:$0xff]  ;;  %v5718_v55 = vld [vmem:[#allocation3 + $0xf8] sm:$0xff]  ;;  %v603_v31 = vrot.slane %v601_v26, 7  ;;  %v604_v1 = vshll.u32 %v340_v42, 16  ;;  %v776_v42 = vld [vmem:[#allocation2 + $0xc0] sm:$0xf] }
 0x192   : > { %v611_v19 = vrot.slane %v609_v5, 7 }
 0x193   : > { %v3493_v43 = vadd.f32 %v3388_v18, %v3115_v34  ;;  %v7495_v22 = vmax.f32 %v6784_v10, 0.0  ;;  %2679 = vmatmul.bf16.gmra.mxu2 %v5670_v11  ;;  %v6794_v14 = vpop.f32.mrf.mxu0 }
 0x194   : > { %v614_v23 = vor.u32 %v612_v63, %v611_v19 }
 0x195   : > { %v3871_v15 = vadd.f32 %v3766_v53, %v3493_v43  ;;  %3052 = vmatmul.bf16.gmra.mxu3 %v5693_v52  ;;  %4102 = vadd.xlane.f32.xlu2 %v7495_v22  ;;  %v3771_v40 = vpop.f32.mrf.mxu1  ;;  %v1463_v53 = vld [vmem:[#allocation2 + $0xb8] sm:$0xf]  ;;  %v606_v52 = vor.u32 %v604_v1, %v603_v31  ;;  %v607_v43 = vrot.slane %v603_v31, 4  ;;  %v4945_v31 = vrot.slane %v1462_v12, 9 }
 0x196   : > { %v1635_v26 = vrot.slane %v1463_v53, 5  ;;  %v2640_v5 = vpop.f32.mrf.mxu2  ;;  %3435 = vmatmul.bf16.gmra.mxu0 %v5718_v55  ;;  %v1638_v1 = vrot.slane %v1464_v38, 5 }
 0x197   : > { %v3971_v18 = vadd.f32 %v6730_v35, %v3871_v15  ;;  %v615_v3 = vsel %vm6077_vm4, %v607_v43, %v614_v23  ;;  %v777_v11 = vsel %vm6086_vm5, %v606_v52, %v776_v42  ;;  %v780_v23 = vld [vmem:[#allocation2 + $0xc8] sm:$0x1] }
 0x198   : > { %v3013_v34 = vpop.f32.mrf.mxu3  ;;  %778 = vst [vmem:[#allocation2 + $0xc0] sm:$0xf] %v777_v11  ;;  %v1636_v17 = vsel %vm6595_vm13, %v4945_v31, %v1635_v26 }
 0x199   : > { %v3116_v22 = vadd.f32 %v3013_v34, %v2738_v47  ;;  %v6796_v59 = vadd.f32 %v4003_v30, %v3971_v18  ;;  %v1637_v30 = vrot.slane %v1635_v26, 4  ;;  %v616_v47 = vrot.slane %v611_v19, 4  ;;  %779 = vst [vmem:[#allocation2 + $0xc4] sm:$0xf] %v615_v3  ;;  %v5694_v26 = vld [vmem:[#allocation3 + $0x68] sm:$0xff] }
 0x19a   : > { %1721 = vst [vmem:[#allocation3 + $0x198] sm:$0xf] %v1636_v17  ;;  %v2739_v18 = vadd.f32 %v2637_v51, %v6670_v2  ;;  %v5671_v51 = vld [vmem:[#allocation3 + $0x188] sm:$0xff]  ;;  %v5719_v17 = vld [vmem:[#allocation3 + $0x100] sm:$0xff] }
 0x19b   : > { %v3494_v15 = vadd.f32 %v6768_v13, %v3116_v22  ;;  %v4067_v63 = vmax.f32 %v6796_v59, 0.0  ;;  %v1639_v13 = vsel %vm6595_vm13, %v1637_v30, %v1638_v1  ;;  %v781_v22 = vsel %vm6215_vm10, %v616_v47, %v780_v23  ;;  %v6815_v34 = vpop.f32.mrf.mxu0 }
 0x19c   : > { %1722 = vst [vmem:[#allocation3 + $0x19c] sm:$0xf] %v1639_v13  ;;  %v2740_v13 = vadd.f32 %v2640_v5, %v6678_v8 }
 0x19d   : > { %v3872_v55 = vadd.f32 %v3769_v9, %v3494_v15  ;;  %4104 = vadd.xlane.f32.xlu2 %v4067_v63  ;;  %v5742_v9 = vld [vmem:[#allocation3 + $0x188] sm:$0xff]  ;;  %v3774_v52 = vpop.f32.mrf.mxu1  ;;  %782 = vst [vmem:[#allocation2 + $0xc8] sm:$0x1] %v781_v22 }
 0x19e   : > { %v2642_v12 = vpop.f32.mrf.mxu2 }
 0x19f   : > { %v3972_v19 = vadd.f32 %v6730_v35, %v3872_v55  ;;  %v903_v38 = vld [vmem:[#allocation2 + $0xc0] sm:$0xf]  ;;  %v4005_v55 = vld [vmem:[%s6059_s30 + $0x38] sm:$0xff] }
 0x1a0   : > { %v3015_v53 = vpop.f32.mrf.mxu3  ;;  %3813 = vmatmul.bf16.gmra.mxu1 %v5742_v9  ;;  %v904_v3 = vld [vmem:[#allocation2 + $0xc4] sm:$0xf]  ;;  %v1297_v11 = vshrl.u32 %v903_v38, 16  ;;  %v1300_v15 = vshll.u32 %v903_v38, 16 }
 0x1a1   : > { %v3117_v43 = vadd.f32 %v3015_v53, %v2739_v18  ;;  %v6817_v42 = vadd.f32 %v4004_v20, %v3972_v19  ;;  %v1306_v31 = vshll.u32 %v904_v3, 16  ;;  %v1310_v30 = vshrl.u32 %v904_v3, 16  ;;  %v1466_v38 = vld [vmem:[#allocation2 + $0xc4] sm:$0xf] }
 0x1a2   : > { %v1299_v47 = vrot.slane %v1297_v11, 4  ;;  %v1302_v23 = vrot.slane %v1300_v15, 5  ;;  %v1642_v11 = vrot.slane %v1466_v38, 5  ;;  %v5695_v38 = vld [vmem:[#allocation3 + $0x70] sm:$0xff] }
 0x1a3   : > { %v3495_v32 = vadd.f32 %v6782_v16, %v3117_v43  ;;  %v7496_v2 = vmax.f32 %v6817_v42, 0.0  ;;  %v1308_v20 = vrot.slane %v1306_v31, 5  ;;  %v1312_v16 = vrot.slane %v1310_v30, 4  ;;  %2684 = vmatmul.bf16.gmra.mxu2 %v5671_v51  ;;  %v6826_v18 = vpop.f32.mrf.mxu0  ;;  %v1465_v51 = vld [vmem:[#allocation2 + $0xc0] sm:$0xe] }
 0x1a4   : > { %v905_v19 = vld [vmem:[#allocation2 + $0xc8] sm:$0x1]  ;;  %v1303_v53 = vor.u32 %v1302_v23, %v1299_v47  ;;  %v4946_v23 = vrot.slane %v1465_v51, 9 }
 0x1a5   : > { %v3873_v1 = vadd.f32 %v3771_v40, %v3495_v32  ;;  %3057 = vmatmul.bf16.gmra.mxu3 %v5694_v26  ;;  %4106 = vadd.xlane.f32.xlu0 %v7496_v2  ;;  %v3776_v40 = vpop.f32.mrf.mxu1  ;;  %v1313_v43 = vor.u32 %v1312_v16, %v1308_v20  ;;  %v1316_v26 = vshll.u32 %v905_v19, 16  ;;  %v815_v2 = vld [vmem:[#allocation2 + $0xc0] sm:$0xff]   ;;  %v1467_v47 = vld [vmem:[#allocation2 + $0xc8] sm:$0x1] }
 0x1a6   : > { %v2645_v15 = vpop.f32.mrf.mxu2  ;;  %3440 = vmatmul.bf16.gmra.mxu0 %v5719_v17  ;;  %v1304_v31 = vrot.slane %v1303_v53, 4  ;;  %851 = vst [vmem:[#allocation3 + $0x80] sm:$0xff] %v815_v2   ;;  %v1644_v17 = vrot.slane %v1642_v11, 4  ;;  %v4006_v19 = vld [vmem:[%s6059_s30 + $0x40] sm:$0xff] }
 0x1a7   : > { %v3973_v22 = vadd.f32 %v6730_v35, %v3873_v1  ;;  %v1314_v8 = vrot.slane %v1313_v43, 4  ;;  %v1318_v5 = vrot.slane %v1316_v26, 5  ;;  %v2742_v51 = vadd.f32 %v2645_v15, %v6690_v46  ;;  %v4008_v46 = vld [vmem:[%s6059_s30 + $0x50] sm:$0xff] }
 0x1a8   : > { %v3018_v9 = vpop.f32.mrf.mxu3 }
 0x1a9   : > { %v3118_v32 = vadd.f32 %v3018_v9, %v2740_v13  ;;  %v6828_v3 = vadd.f32 %v4005_v55, %v3973_v22  ;;  %v1309_v55 = vsel %vm6191_vm9, %v1304_v31, %v1308_v20  ;;  %v1319_v16 = vsel %vm6191_vm9, %v1314_v8, %v1318_v5  ;;  %v5743_v9 = vld [vmem:[#allocation3 + $0x190] sm:$0xff]  ;;  %v5720_v5 = vld [vmem:[#allocation3 + $0x108] sm:$0xff] }
 0x1aa   : > { %v1645_v13 = vrot.slane %v1467_v47, 5  ;;  %1413 = vst [vmem:[#allocation3 + $0x110] sm:$0xf] %v1309_v55  ;;  %v2741_v20 = vadd.f32 %v2642_v12, %v6682_v27  ;;  %v5672_v27 = vld [vmem:[#allocation3 + $0x190] sm:$0xff] }
 0x1ab   : > { %v3496_v30 = vadd.f32 %v6794_v14, %v3118_v32  ;;  %v4069_v1 = vmax.f32 %v6828_v3, 0.0  ;;  %v1643_v14 = vsel %vm6595_vm13, %v4946_v23, %v1642_v11  ;;  %1414 = vst [vmem:[#allocation3 + $0x114] sm:$0xf] %v1319_v16  ;;  %v3403_v53 = vpop.f32.mrf.mxu0  ;;  %v4007_v8 = vld [vmem:[%s6059_s30 + $0x48] sm:$0xff] }
 0x1ac   : > { %v1646_v2 = vsel %vm6595_vm13, %v1644_v17, %v1645_v13  ;;  %1723 = vst [vmem:[#allocation3 + $0x1a0] sm:$0xf] %v1643_v14 }
 0x1ad   : > { %v3874_v22 = vadd.f32 %v3774_v52, %v3496_v30  ;;  %4108 = vadd.xlane.f32.xlu1 %v4069_v1  ;;  %v3779_v43 = vpop.f32.mrf.mxu1  ;;  %1724 = vst [vmem:[#allocation3 + $0x1a4] sm:$0xf] %v1646_v2 }
 0x1ae   : > { %v2647_v11 = vpop.f32.mrf.mxu2 }
 0x1af   : > { %v3974_v21 = vadd.f32 %v6730_v35, %v3874_v22  ;;  %v2743_v15 = vadd.f32 %v2647_v11, %v6694_v61  ;;  %v4009_v61 = vld [vmem:[%s6059_s30 + $0x58] sm:$0xff] }
 0x1b0   : > { %v3020_v52 = vpop.f32.mrf.mxu3  ;;  %3818 = vmatmul.bf16.gmra.mxu1 %v5743_v9 }
 0x1b1   : > { %v3119_v26 = vadd.f32 %v3020_v52, %v2741_v20  ;;  %v6845_v32 = vadd.f32 %v4006_v19, %v3974_v21  ;;  %v5744_v19 = vld [vmem:[#allocation3 + $0x198] sm:$0xff] }
 0x1b2   : > { %v5696_v52 = vld [vmem:[#allocation3 + $0x78] sm:$0xff]  ;;  %v5721_v11 = vld [vmem:[#allocation3 + $0x110] sm:$0xff] }
 0x1b3   : > { %v3497_v31 = vadd.f32 %v6815_v34, %v3119_v26  ;;  %v4070_v62 = vmax.f32 %v6845_v32, 0.0  ;;  %2689 = vmatmul.bf16.gmra.mxu2 %v5672_v27  ;;  %v3406_v47 = vpop.f32.mrf.mxu0  ;;  %v7042_v32 = vld [vmem:[%s7487_s2] ss:$0 sm:$0xff] }
 0x1b5   : > { %v3875_v12 = vadd.f32 %v3776_v40, %v3497_v31  ;;  %3062 = vmatmul.bf16.gmra.mxu3 %v5695_v38  ;;  %4110 = vadd.xlane.f32.xlu2 %v4070_v62  ;;  %v3781_v34 = vpop.f32.mrf.mxu1  ;;  %v5673_v31 = vld [vmem:[#allocation3 + $0x198] sm:$0xff] }
 0x1b6   : > { %v2650_v17 = vpop.f32.mrf.mxu2  ;;  %3445 = vmatmul.bf16.gmra.mxu0 %v5720_v5 }
 0x1b7   : > { %v3975_v30 = vadd.f32 %v6730_v35, %v3875_v12  ;;  %v2744_v12 = vadd.f32 %v2650_v17, %v6702_v6  ;;  %v5953_v6 = vmov 128.0   ;;  %v4010_v17 = vld [vmem:[%s6059_s30 + $0x60] sm:$0xff] }
 0x1b8   : > { %v3023_v23 = vpop.f32.mrf.mxu3  ;;  %5817 = vrcp.f32 %v5953_v6 }
 0x1b9   : > { %v3120_v55 = vadd.f32 %v3023_v23, %v2742_v51  ;;  %v6854_v16 = vadd.f32 %v4007_v8, %v3975_v30 }
 0x1bb   : > { %v3498_v40 = vadd.f32 %v6826_v18, %v3120_v55  ;;  %v4071_v13 = vmax.f32 %v6854_v16, 0.0  ;;  %v3408_v2 = vpop.f32.mrf.mxu0 }
 0x1bd   : > { %v3876_v22 = vadd.f32 %v3779_v43, %v3498_v40  ;;  %4112 = vadd.xlane.f32.xlu0 %v4071_v13  ;;  %v3784_v21 = vpop.f32.mrf.mxu1 }
 0x1be   : > { %v2652_v18 = vpop.f32.mrf.mxu2 }
 0x1bf   : > { %v3976_v14 = vadd.f32 %v6730_v35, %v3876_v22 }
 0x1c0   : > { %v3025_v20 = vpop.f32.mrf.mxu3  ;;  %3823 = vmatmul.bf16.gmra.mxu1 %v5744_v19 }
 0x1c1   : > { %v3121_v9 = vadd.f32 %v3025_v20, %v2743_v15  ;;  %v6863_v26 = vadd.f32 %v4008_v46, %v3976_v14  ;;  %v2745_v46 = vadd.f32 %v2652_v18, %v6706_v39  ;;  %v5745_v14 = vld [vmem:[#allocation3 + $0x1a0] sm:$0xff]  ;;  %v4011_v39 = vld [vmem:[%s6059_s30 + $0x68] sm:$0xff] }
 0x1c3   : > { %v3499_v38 = vadd.f32 %v3403_v53, %v3121_v9  ;;  %v4072_v43 = vmax.f32 %v6863_v26, 0.0  ;;  %2694 = vmatmul.bf16.gmra.mxu2 %v5673_v31  ;;  %v3411_v5 = vpop.f32.mrf.mxu0  ;;  %v5818_v31 = vpop.eup %5817 }
 0x1c4   : > { %v4159_v18 = vmul.f32 128.0, %v5818_v31  ;;  %vm4163_vm14 = vweird.f32 %v5818_v31 }
 0x1c5   : > { %v3877_v27 = vadd.f32 %v3781_v34, %v3499_v38  ;;  %3067 = vmatmul.bf16.gmra.mxu3 %v5696_v52  ;;  %4114 = vadd.xlane.f32.xlu1 %v4072_v43  ;;  %v3786_v53 = vpop.f32.mrf.mxu1 }
 0x1c6   : > { %v2655_v55 = vpop.f32.mrf.mxu2  ;;  %3450 = vmatmul.bf16.gmra.mxu0 %v5721_v11 }
 0x1c7   : > { %v3977_v8 = vadd.f32 %v6730_v35, %v3877_v27 }
 0x1c8   : > { %v3028_v51 = vpop.f32.mrf.mxu3 }
 0x1c9   : > { %v3122_v30 = vadd.f32 %v3028_v51, %v2744_v12  ;;  %v6871_v23 = vadd.f32 %v4009_v61, %v3977_v8  ;;  %v2746_v12 = vadd.f32 %v2655_v55, %v6714_v0 }
 0x1cb   : > { %v3500_v34 = vadd.f32 %v3406_v47, %v3122_v30  ;;  %v4073_v40 = vmax.f32 %v6871_v23, 0.0  ;;  %v3413_v19 = vpop.f32.mrf.mxu0  ;;  %v5697_v47 = vld [vmem:[#allocation3 + $0x80] sm:$0xff] }
 0x1cd   : > { %v3878_v22 = vadd.f32 %v3784_v21, %v3500_v34  ;;  %4116 = vadd.xlane.f32.xlu2 %v4073_v40  ;;  %v3789_v9 = vpop.f32.mrf.mxu1 }
 0x1ce   : > { %v2657_v21 = vpop.f32.mrf.mxu2 }
 0x1cf   : > { %v3978_v15 = vadd.f32 %v6730_v35, %v3878_v22  ;;  %v2747_v0 = vadd.f32 %v2657_v21, %v6718_v41  ;;  %v4013_v41 = vld [vmem:[%s6059_s30 + $0x78] sm:$0xff] }
 0x1d0   : > { %v3030_v20 = vpop.f32.mrf.mxu3  ;;  %3828 = vmatmul.bf16.gmra.mxu1 %v5745_v14  ;;  %v4012_v14 = vld [vmem:[%s6059_s30 + $0x70] sm:$0xff] }
 0x1d1   : > { %v3123_v52 = vadd.f32 %v3030_v20, %v2745_v46  ;;  %v6879_v38 = vadd.f32 %v4010_v17, %v3978_v15  ;;  %v4160_v17 = vsub.f32 1.0, %v4159_v18 }
 0x1d3   : > { %v3501_v27 = vadd.f32 %v3408_v2, %v3123_v52  ;;  %v4074_v61 = vmax.f32 %v6879_v38, 0.0  ;;  %v3416_v51 = vpop.f32.mrf.mxu0  ;;  %v4161_v20 = vmul.f32 %v5818_v31, %v4160_v17 }
 0x1d5   : > { %v3879_v11 = vadd.f32 %v3786_v53, %v3501_v27  ;;  %3072 = vmatmul.bf16.gmra.mxu3 %v5697_v47  ;;  %4118 = vadd.xlane.f32.xlu0 %v4074_v61  ;;  %v3791_v34 = vpop.f32.mrf.mxu1  ;;  %v4162_v18 = vadd.f32 %v5818_v31, %v4161_v20 }
 0x1d6   : > { %v2660_v6 = vpop.f32.mrf.mxu2 }
 0x1d7   : > { %v3979_v8 = vadd.f32 %v6730_v35, %v3879_v11  ;;  %v2748_v21 = vadd.f32 %v2660_v6, %v6634_v29 }
 0x1d8   : > { %v3033_v30 = vpop.f32.mrf.mxu3 }
 0x1d9   : > { %v3124_v22 = vadd.f32 %v3033_v30, %v2746_v12  ;;  %v6887_v2 = vadd.f32 %v4011_v39, %v3979_v8  ;;  %v6900_v30 = vsel %vm4163_vm14, %v5818_v31, %v4162_v18  ;;  %v7513_v31 = vmax.f32 %v6740_v48, 0.0  ;;  %v4014_v18 = vld [vmem:[%s6059_s30 + $0x80] sm:$0xff] }
 0x1db   : > { %v3502_v53 = vadd.f32 %v3411_v5, %v3124_v22  ;;  %v4075_v46 = vmax.f32 %v6887_v2, 0.0  ;;  %v3418_v52 = vpop.f32.mrf.mxu0 }
 0x1dd   : > { %v3880_v15 = vadd.f32 %v3789_v9, %v3502_v53  ;;  %4120 = vadd.xlane.f32.xlu1 %v4075_v46  ;;  %v3794_v27 = vpop.f32.mrf.mxu1 }
 0x1de   : > { %v2662_v5 = vpop.f32.mrf.mxu2 }
 0x1df   : > { %v3980_v55 = vadd.f32 %v6730_v35, %v3880_v15 }
 0x1e0   : > { %v3035_v47 = vpop.f32.mrf.mxu3 }
 0x1e1   : > { %v3125_v11 = vadd.f32 %v3035_v47, %v2747_v0  ;;  %v6895_v39 = vadd.f32 %v4012_v14, %v3980_v55 }
 0x1e3   : > { %v3503_v12 = vadd.f32 %v3413_v19, %v3125_v11  ;;  %v4076_v9 = vmax.f32 %v6895_v39, 0.0  ;;  %v3421_v17 = vpop.f32.mrf.mxu0 }
 0x1e5   : > { %v3881_v8 = vadd.f32 %v3791_v34, %v3503_v12  ;;  %4122 = vadd.xlane.f32.xlu2 %v4076_v9  ;;  %v3796_v20 = vpop.f32.mrf.mxu1  ;;  %v2749_v12 = vadd.f32 %v2662_v5, %v6642_v44 }
 0x1e6   : > { %v2665_v34 = vpop.f32.mrf.mxu2 }
 0x1e7   : > { %v3981_v22 = vadd.f32 %v6730_v35, %v3881_v8 }
 0x1e8   : > { %v3038_v53 = vpop.f32.mrf.mxu3  ;;  %v4095_v15 = vpop.xlane.xlu0 %4094 }
 0x1e9   : > { %v3126_v14 = vadd.f32 %v3038_v53, %v2748_v21  ;;  %v4165_v19 = vmul.f32 %v6900_v30, %v4095_v15  ;;  %v6906_v0 = vadd.f32 %v4013_v41, %v3981_v22 }
 0x1eb   : > { %v3504_v55 = vadd.f32 %v3416_v51, %v3126_v14  ;;  %v6910_v47 = vsub.f32 %v7513_v31, %v4165_v19  ;;  %v4077_v29 = vmax.f32 %v6906_v0, 0.0  ;;  %v3423_v8 = vpop.f32.mrf.mxu0  ;;  %v7514_v19 = vmax.f32 %v6748_v50, 0.0 }
 0x1ed   : > { %v3882_v6 = vadd.f32 %v3794_v27, %v3504_v55  ;;  %4124 = vadd.xlane.f32.xlu0 %v4077_v29  ;;  %v4229_v11 = vmul.f32 %v6910_v47, %v6910_v47  ;;  %v3799_v27 = vpop.f32.mrf.mxu1 }
 0x1ee   : > { %v2667_v15 = vpop.f32.mrf.mxu2 }
 0x1ef   : > { %4261 = vadd.xlane.f32.xlu2 %v4229_v11  ;;  %v3982_v51 = vadd.f32 %v6730_v35, %v3882_v6  ;;  %v4015_v6 = vld [vmem:[%s6059_s30 + $0x88] sm:$0xff]  ;;  %v2750_v11 = vadd.f32 %v2665_v34, %v6646_v58 }
 0x1f0   : > { %v3040_v48 = vpop.f32.mrf.mxu3  ;;  %v4097_v41 = vpop.xlane.xlu0 %4096 }
 0x1f1   : > { %v3127_v21 = vadd.f32 %v3040_v48, %v2749_v12  ;;  %v4166_v22 = vmul.f32 %v6900_v30, %v4097_v41  ;;  %v6921_v53 = vadd.f32 %v4014_v18, %v3982_v51 }
 0x1f3   : > { %v3505_v14 = vadd.f32 %v3418_v52, %v3127_v21  ;;  %v6925_v55 = vsub.f32 %v7514_v19, %v4166_v22  ;;  %v4078_v44 = vmax.f32 %v6921_v53, 0.0  ;;  %v3426_v18 = vpop.f32.mrf.mxu0 }
 0x1f5   : > { %v3883_v5 = vadd.f32 %v3796_v20, %v3505_v14  ;;  %4126 = vadd.xlane.f32.xlu1 %v4078_v44  ;;  %v4230_v31 = vmul.f32 %v6925_v55, %v6925_v55  ;;  %v3801_v20 = vpop.f32.mrf.mxu1  ;;  %v7515_v14 = vmax.f32 %v6760_v49, 0.0 }
 0x1f6   : > { %v2670_v21 = vpop.f32.mrf.mxu2 }
 0x1f7   : > { %4263 = vadd.xlane.f32.xlu0 %v4230_v31  ;;  %v3983_v52 = vadd.f32 %v6730_v35, %v3883_v5  ;;  %v4016_v31 = vld [vmem:[%s6059_s30 + $0x90] sm:$0xff] }
 0x1f8   : > { %v3043_v50 = vpop.f32.mrf.mxu3  ;;  %v4099_v12 = vpop.xlane.xlu1 %4098 }
 0x1f9   : > { %v3128_v51 = vadd.f32 %v3043_v50, %v2750_v11  ;;  %v4167_v48 = vmul.f32 %v6900_v30, %v4099_v12  ;;  %v6936_v41 = vadd.f32 %v4015_v6, %v3983_v52  ;;  %v2751_v11 = vadd.f32 %v2667_v15, %v6654_v7 }
 0x1fb   : > { %v3506_v22 = vadd.f32 %v3421_v17, %v3128_v51  ;;  %v6940_v19 = vsub.f32 %v7515_v14, %v4167_v48  ;;  %v7497_v58 = vmax.f32 %v6936_v41, 0.0  ;;  %v3428_v6 = vpop.f32.mrf.mxu0  ;;  %v7516_v14 = vmax.f32 %v6770_v33, 0.0 }
 0x1fd   : > { %v3884_v34 = vadd.f32 %v3799_v27, %v3506_v22  ;;  %4128 = vadd.xlane.f32.xlu2 %v7497_v58  ;;  %v4231_v5 = vmul.f32 %v6940_v19, %v6940_v19  ;;  %v3804_v27 = vpop.f32.mrf.mxu1 }
 0x1fe   : > { %v2672_v48 = vpop.f32.mrf.mxu2 }
 0x1ff   : > { %4265 = vadd.xlane.f32.xlu1 %v4231_v5  ;;  %v3984_v17 = vadd.f32 %v6730_v35, %v3884_v34  ;;  %v4017_v5 = vld [vmem:[%s6059_s30 + $0x98] sm:$0xff] }
 0x200   : > { %v3045_v49 = vpop.f32.mrf.mxu3  ;;  %v4101_v52 = vpop.xlane.xlu1 %4100 }
 0x201   : > { %v3129_v50 = vadd.f32 %v3045_v49, %v2751_v11  ;;  %v4168_v12 = vmul.f32 %v6900_v30, %v4101_v52  ;;  %v6951_v51 = vadd.f32 %v4016_v31, %v3984_v17  ;;  %v2752_v11 = vadd.f32 %v2670_v21, %v6658_v24 }
 0x203   : > { %v3507_v22 = vadd.f32 %v3423_v8, %v3129_v50  ;;  %v6955_v58 = vsub.f32 %v7516_v14, %v4168_v12  ;;  %v7498_v7 = vmax.f32 %v6951_v51, 0.0  ;;  %v3431_v31 = vpop.f32.mrf.mxu0  ;;  %v7517_v14 = vmax.f32 %v6784_v10, 0.0 }
 0x205   : > { %v3885_v15 = vadd.f32 %v3801_v20, %v3507_v22  ;;  %4130 = vadd.xlane.f32.xlu0 %v7498_v7  ;;  %v4232_v34 = vmul.f32 %v6955_v58, %v6955_v58  ;;  %v3806_v20 = vpop.f32.mrf.mxu1 }
 0x206   : > { %v2675_v12 = vpop.f32.mrf.mxu2 }
 0x207   : > { %4267 = vadd.xlane.f32.xlu2 %v4232_v34  ;;  %v3985_v8 = vadd.f32 %v6730_v35, %v3885_v15  ;;  %v4018_v34 = vld [vmem:[%s6059_s30 + $0xa0] sm:$0xff] }
 0x208   : > { %v3048_v33 = vpop.f32.mrf.mxu3  ;;  %v4103_v17 = vpop.xlane.xlu2 %4102 }
 0x209   : > { %v3130_v49 = vadd.f32 %v3048_v33, %v2752_v11  ;;  %v4169_v52 = vmul.f32 %v6900_v30, %v4103_v17  ;;  %v6966_v50 = vadd.f32 %v4017_v5, %v3985_v8  ;;  %v2753_v11 = vadd.f32 %v2672_v48, %v6664_v37 }
 0x20b   : > { %v3508_v22 = vadd.f32 %v3426_v18, %v3130_v49  ;;  %v6970_v7 = vsub.f32 %v7517_v14, %v4169_v52  ;;  %v4081_v24 = vmax.f32 %v6966_v50, 0.0  ;;  %v3433_v49 = vpop.f32.mrf.mxu0 }
 0x20d   : > { %v3886_v21 = vadd.f32 %v3804_v27, %v3508_v22  ;;  %4132 = vadd.xlane.f32.xlu1 %v4081_v24  ;;  %v4233_v15 = vmul.f32 %v6970_v7, %v6970_v7  ;;  %v3809_v17 = vpop.f32.mrf.mxu1 }
 0x20e   : > { %v2677_v52 = vpop.f32.mrf.mxu2 }
 0x20f   : > { %4269 = vadd.xlane.f32.xlu0 %v4233_v15  ;;  %v3986_v18 = vadd.f32 %v6730_v35, %v3886_v21  ;;  %v4019_v15 = vld [vmem:[%s6059_s30 + $0xa8] sm:$0xff] }
 0x210   : > { %v3050_v5 = vpop.f32.mrf.mxu3  ;;  %v4105_v10 = vpop.xlane.xlu2 %4104 }
 0x211   : > { %v3131_v8 = vadd.f32 %v3050_v5, %v2753_v11  ;;  %v4170_v33 = vmul.f32 %v6900_v30, %v4105_v10  ;;  %v6981_v27 = vadd.f32 %v4018_v34, %v3986_v18  ;;  %v2754_v34 = vadd.f32 %v2675_v12, %v6668_v54 }
 0x213   : > { %v3509_v22 = vadd.f32 %v3428_v6, %v3131_v8  ;;  %v6985_v14 = vsub.f32 %v4067_v63, %v4170_v33  ;;  %v4082_v37 = vmax.f32 %v6981_v27, 0.0  ;;  %v7518_v33 = vmax.f32 %v6817_v42, 0.0  ;;  %v3436_v12 = vpop.f32.mrf.mxu0 }
 0x215   : > { %v3887_v48 = vadd.f32 %v3806_v20, %v3509_v22  ;;  %4134 = vadd.xlane.f32.xlu2 %v4082_v37  ;;  %v4234_v21 = vmul.f32 %v6985_v14, %v6985_v14  ;;  %v3811_v5 = vpop.f32.mrf.mxu1 }
 0x216   : > { %v2680_v10 = vpop.f32.mrf.mxu2 }
 0x217   : > { %4271 = vadd.xlane.f32.xlu1 %v4234_v21  ;;  %v3987_v6 = vadd.f32 %v6730_v35, %v3887_v48 }
 0x218   : > { %v3053_v11 = vpop.f32.mrf.mxu3  ;;  %v4107_v59 = vpop.xlane.xlu0 %4106 }
 0x219   : > { %v3132_v63 = vadd.f32 %v3053_v11, %v2754_v34  ;;  %v4171_v18 = vmul.f32 %v6900_v30, %v4107_v59  ;;  %v6996_v20 = vadd.f32 %v4019_v15, %v3987_v6  ;;  %v4020_v34 = vld [vmem:[%s6059_s30 + $0xb0] sm:$0xff]  ;;  %v2755_v15 = vadd.f32 %v2677_v52, %v6676_v4 }
 0x21b   : > { %v3510_v8 = vadd.f32 %v3431_v31, %v3132_v63  ;;  %v7000_v22 = vsub.f32 %v7518_v33, %v4171_v18  ;;  %v4083_v54 = vmax.f32 %v6996_v20, 0.0 }
 0x21d   : > { %v3888_v21 = vadd.f32 %v3809_v17, %v3510_v8  ;;  %4136 = vadd.xlane.f32.xlu0 %v4083_v54  ;;  %v4235_v48 = vmul.f32 %v7000_v22, %v7000_v22  ;;  %v3814_v63 = vpop.f32.mrf.mxu1 }
 0x21e   : > { %v2682_v18 = vpop.f32.mrf.mxu2 }
 0x21f   : > { %4273 = vadd.xlane.f32.xlu2 %v4235_v48  ;;  %v3988_v31 = vadd.f32 %v6730_v35, %v3888_v21  ;;  %v3438_v48 = vpop.f32.mrf.mxu0 }
 0x220   : > { %v3055_v42 = vpop.f32.mrf.mxu3  ;;  %v4109_v6 = vpop.xlane.xlu1 %4108 }
 0x221   : > { %v3133_v11 = vadd.f32 %v3055_v42, %v2755_v15  ;;  %v4172_v59 = vmul.f32 %v6900_v30, %v4109_v6  ;;  %v7011_v17 = vadd.f32 %v4020_v34, %v3988_v31  ;;  %v4021_v15 = vld [vmem:[%s6059_s30 + $0xb8] sm:$0xff]  ;;  %v2756_v34 = vadd.f32 %v2680_v10, %v6680_v25 }
 0x223   : > { %v3511_v8 = vadd.f32 %v3433_v49, %v3133_v11  ;;  %v7015_v33 = vsub.f32 %v4069_v1, %v4172_v59  ;;  %v4084_v4 = vmax.f32 %v7011_v17, 0.0 }
 0x225   : > { %v3889_v52 = vadd.f32 %v3811_v5, %v3511_v8  ;;  %4138 = vadd.xlane.f32.xlu1 %v4084_v4  ;;  %v4236_v21 = vmul.f32 %v7015_v33, %v7015_v33  ;;  %v3816_v5 = vpop.f32.mrf.mxu1 }
 0x226   : > { %v2685_v11 = vpop.f32.mrf.mxu2 }
 0x227   : > { %4275 = vadd.xlane.f32.xlu0 %v4236_v21  ;;  %v3989_v49 = vadd.f32 %v6730_v35, %v3889_v52  ;;  %v4022_v52 = vld [vmem:[%s6059_s30 + $0xc0] sm:$0xff]  ;;  %v2757_v21 = vadd.f32 %v2682_v18, %v6688_v45 }
 0x228   : > { %v3058_v3 = vpop.f32.mrf.mxu3  ;;  %v4111_v1 = vpop.xlane.xlu2 %4110 }
 0x229   : > { %v3134_v31 = vadd.f32 %v3058_v3, %v2756_v34  ;;  %v4173_v42 = vmul.f32 %v6900_v30, %v4111_v1  ;;  %v7026_v6 = vadd.f32 %v4021_v15, %v3989_v49  ;;  %v3441_v15 = vpop.f32.mrf.mxu0 }
 0x22b   : > { %v3512_v59 = vadd.f32 %v3436_v12, %v3134_v31  ;;  %v7030_v8 = vsub.f32 %v4070_v62, %v4173_v42  ;;  %v4085_v25 = vmax.f32 %v7026_v6, 0.0 }
 0x22d   : > { %v3890_v10 = vadd.f32 %v3814_v63, %v3512_v59  ;;  %4140 = vadd.xlane.f32.xlu2 %v4085_v25  ;;  %v4237_v35 = vmul.f32 %v7030_v8, %v7030_v8  ;;  %v3819_v3 = vpop.f32.mrf.mxu1 }
 0x22e   : > { %v2687_v42 = vpop.f32.mrf.mxu2 }
 0x22f   : > { %4277 = vadd.xlane.f32.xlu1 %v4237_v35  ;;  %v3990_v62 = vadd.f32 %v7042_v32, %v3890_v10  ;;  %v4023_v35 = vld [vmem:[%s6059_s30 + $0xc8] sm:$0xff] }
 0x230   : > { %v3060_v12 = vpop.f32.mrf.mxu3  ;;  %v4113_v63 = vpop.xlane.xlu0 %4112 }
 0x231   : > { %v3135_v34 = vadd.f32 %v3060_v12, %v2757_v21  ;;  %v4174_v49 = vmul.f32 %v6900_v30, %v4113_v63  ;;  %v7046_v1 = vadd.f32 %v4022_v52, %v3990_v62  ;;  %v2758_v21 = vadd.f32 %v2685_v11, %v6692_v60 }
 0x233   : > { %v3513_v31 = vadd.f32 %v3438_v48, %v3135_v34  ;;  %v7050_v45 = vsub.f32 %v4071_v13, %v4174_v49  ;;  %v4086_v18 = vmax.f32 %v7046_v1, 0.0 }
 0x235   : > { %v3891_v59 = vadd.f32 %v3816_v5, %v3513_v31  ;;  %4142 = vadd.xlane.f32.xlu0 %v4086_v18  ;;  %v4238_v10 = vmul.f32 %v7050_v45, %v7050_v45  ;;  %v3443_v5 = vpop.f32.mrf.mxu0  ;;  %v3821_v49 = vpop.f32.mrf.mxu1 }
 0x236   : > { %v2690_v31 = vpop.f32.mrf.mxu2 }
 0x237   : > { %4279 = vadd.xlane.f32.xlu2 %v4238_v10  ;;  %v3991_v48 = vadd.f32 %v7042_v32, %v3891_v59  ;;  %v4024_v10 = vld [vmem:[%s6059_s30 + $0xd0] sm:$0xff] }
 0x238   : > { %v3063_v16 = vpop.f32.mrf.mxu3  ;;  %v4115_v13 = vpop.xlane.xlu1 %4114 }
 0x239   : > { %v3136_v52 = vadd.f32 %v3063_v16, %v2758_v21  ;;  %v4175_v62 = vmul.f32 %v6900_v30, %v4115_v13  ;;  %v7061_v12 = vadd.f32 %v4023_v35, %v3991_v48  ;;  %v2759_v35 = vadd.f32 %v2687_v42, %v6700_v56 }
 0x23b   : > { %v3514_v63 = vadd.f32 %v3441_v15, %v3136_v52  ;;  %v7065_v34 = vsub.f32 %v4072_v43, %v4175_v62  ;;  %v4087_v60 = vmax.f32 %v7061_v12, 0.0 }
 0x23d   : > { %v3892_v11 = vadd.f32 %v3819_v3, %v3514_v63  ;;  %4144 = vadd.xlane.f32.xlu1 %v4087_v60  ;;  %v4239_v59 = vmul.f32 %v7065_v34, %v7065_v34  ;;  %v3446_v62 = vpop.f32.mrf.mxu0  ;;  %v3824_v42 = vpop.f32.mrf.mxu1 }
 0x23f   : > { %4281 = vadd.xlane.f32.xlu0 %v4239_v59  ;;  %v3992_v26 = vadd.f32 %v7042_v32, %v3892_v11  ;;  %v4025_v11 = vld [vmem:[%s6059_s30 + $0xd8] sm:$0xff]  ;;  %v2760_v59 = vadd.f32 %v2690_v31, %v6704_v36 }
 0x240   : > { %v3065_v43 = vpop.f32.mrf.mxu3  ;;  %v4117_v15 = vpop.xlane.xlu2 %4116 }
 0x241   : > { %v3137_v21 = vadd.f32 %v3065_v43, %v2759_v35  ;;  %v4176_v48 = vmul.f32 %v6900_v30, %v4117_v15  ;;  %v7076_v3 = vadd.f32 %v4024_v10, %v3992_v26 }
 0x243   : > { %v3515_v16 = vadd.f32 %v3443_v5, %v3137_v21  ;;  %v7080_v13 = vsub.f32 %v4073_v40, %v4176_v48  ;;  %v4088_v52 = vmax.f32 %v7076_v3, 0.0  ;;  %v2692_v5 = vpop.f32.mrf.mxu2 }
 0x245   : > { %v3893_v56 = vadd.f32 %v3821_v49, %v3515_v16  ;;  %4146 = vadd.xlane.f32.xlu2 %v4088_v52  ;;  %v4240_v63 = vmul.f32 %v7080_v13, %v7080_v13  ;;  %v3448_v48 = vpop.f32.mrf.mxu0  ;;  %v4026_v16 = vld [vmem:[%s6059_s30 + $0xe0] sm:$0xff] }
 0x247   : > { %4283 = vadd.xlane.f32.xlu1 %v4240_v63  ;;  %v3993_v23 = vadd.f32 %v7042_v32, %v3893_v56  ;;  %v2761_v56 = vadd.f32 %v2692_v5, %v6712_v57  ;;  %v3826_v63 = vpop.f32.mrf.mxu1 }
 0x248   : > { %v3068_v40 = vpop.f32.mrf.mxu3  ;;  %v4119_v10 = vpop.xlane.xlu0 %4118 }
 0x249   : > { %v3138_v35 = vadd.f32 %v3068_v40, %v2760_v59  ;;  %v4177_v49 = vmul.f32 %v6900_v30, %v4119_v10  ;;  %v7091_v26 = vadd.f32 %v4025_v11, %v3993_v23 }
 0x24b   : > { %v3516_v43 = vadd.f32 %v3446_v62, %v3138_v35  ;;  %v7095_v15 = vsub.f32 %v4074_v61, %v4177_v49  ;;  %v4089_v21 = vmax.f32 %v7091_v26, 0.0  ;;  %v2695_v23 = vpop.f32.mrf.mxu2  ;;  %v4027_v49 = vld [vmem:[%s6059_s30 + $0xe8] sm:$0xff] }
 0x24d   : > { %v3894_v36 = vadd.f32 %v3824_v42, %v3516_v43  ;;  %4148 = vadd.xlane.f32.xlu0 %v4089_v21  ;;  %v4241_v31 = vmul.f32 %v7095_v15, %v7095_v15  ;;  %v2762_v43 = vadd.f32 %v2695_v23, %v6716_v28  ;;  %v7519_v28 = vld [vmem:[#allocation8_spill] sm:$0xff] }
 0x24f   : > { %4285 = vadd.xlane.f32.xlu2 %v4241_v31  ;;  %v3994_v38 = vadd.f32 %v7042_v32, %v3894_v36  ;;  %v3451_v31 = vpop.f32.mrf.mxu0 }
 0x250   : > { %v3070_v61 = vpop.f32.mrf.mxu3  ;;  %v4121_v62 = vpop.xlane.xlu1 %4120 }
 0x251   : > { %v3139_v11 = vadd.f32 %v3070_v61, %v2761_v56  ;;  %v4178_v42 = vmul.f32 %v6900_v30, %v4121_v62  ;;  %v7106_v59 = vadd.f32 %v4026_v16, %v3994_v38  ;;  %v3829_v16 = vpop.f32.mrf.mxu1 }
 0x253   : > { %v3517_v40 = vadd.f32 %v3448_v48, %v3139_v11  ;;  %v7110_v10 = vsub.f32 %v4075_v46, %v4178_v42  ;;  %v4090_v57 = vmax.f32 %v7106_v59, 0.0  ;;  %v2697_v61 = vpop.f32.mrf.mxu2 }
 0x254   : > { %v2763_v11 = vadd.f32 %v2697_v61, %v7519_v28 }
 0x255   : > { %v3895_v5 = vadd.f32 %v3826_v63, %v3517_v40  ;;  %4150 = vadd.xlane.f32.xlu1 %v4090_v57  ;;  %v4242_v35 = vmul.f32 %v7110_v10, %v7110_v10 }
 0x257   : > { %4287 = vadd.xlane.f32.xlu0 %v4242_v35  ;;  %v3995_v36 = vadd.f32 %v7042_v32, %v3895_v5 }
 0x258   : > { %v3073_v48 = vpop.f32.mrf.mxu3  ;;  %v4123_v56 = vpop.xlane.xlu2 %4122 }
 0x259   : > { %v3140_v2 = vadd.f32 %v3073_v48, %v2762_v43  ;;  %v7120_v46 = vadd.f32 %v4027_v49, %v3995_v36  ;;  %v5884_v49 = vld [vmem:[%s6059_s30 + $0xf0] sm:$0xff]  ;;  %v3453_v36 = vpop.f32.mrf.mxu0  ;;  %v3831_v61 = vpop.f32.mrf.mxu1 }
 0x25b   : > { %v3518_v63 = vadd.f32 %v3451_v31, %v3140_v2  ;;  %v4091_v38 = vmax.f32 %v7120_v46, 0.0 }
 0x25d   : > { %v3896_v62 = vadd.f32 %v3829_v16, %v3518_v63  ;;  %4152 = vadd.xlane.f32.xlu2 %v4091_v38 }
 0x25f   : > { %v3996_v42 = vadd.f32 %v7042_v32, %v3896_v62 }
 0x260   : > { %v3075_v23 = vpop.f32.mrf.mxu3  ;;  %v4125_v40 = vpop.xlane.xlu0 %4124 }
 0x261   : > { %v3141_v5 = vadd.f32 %v3075_v23, %v2763_v11  ;;  %v4180_v35 = vmul.f32 %v6900_v30, %v4125_v40  ;;  %v7129_v43 = vadd.f32 %v5884_v49, %v3996_v42  ;;  %v5885_v23 = vld [vmem:[%s6059_s30 + $0xf8] sm:$0xff]  ;;  %s215_s30 = sand.u32 1, %s5942_s19  }
 0x262   : > { %v4262_v31 = vpop.xlane.xlu2 %4261  ;;  %s4927_s8 = sshll.u32 %s215_s30, 8  ;;  %s4846_s25 = scalar_lea.sflag [#allocation6], %s215_s30 }
 0x263   : > { %v3519_v48 = vadd.f32 %v3453_v36, %v3141_v5  ;;  %v7133_v2 = vsub.f32 %v4077_v29, %v4180_v35  ;;  %v4325_v16 = vmul.f32 %v4262_v31, %v6900_v30  ;;  %v4092_v63 = vmax.f32 %v7129_v43, 0.0  ;;  %s7195_s9 = scalar_lea.vmem [#allocation5], %s4927_s8 }
 0x264   : > { %v4179_v35 = vmul.f32 %v6900_v30, %v4123_v56  ;;  %s4858_s23 = sshll.u32 %s7195_s9, 4  ;;  %s4859_s23 = int_to_ptr.vmem [resolvable:$true] %s4858_s23 }
 0x265   : > { %v3897_v62 = vadd.f32 %v3831_v61, %v3519_v48  ;;  %v4357_v28 = vadd.f32 1e-05, %v4325_v16  ;;  %4154 = vadd.xlane.f32.xlu0 %v4092_v63  ;;  %v4244_v11 = vmul.f32 %v7133_v2, %v7133_v2 }
 0x266   : > { %v7159_v56 = vsub.f32 %v4076_v9, %v4179_v35 }
 0x267   : > { %5819 = vrsqrt.f32 %v4357_v28  ;;  %4291 = vadd.xlane.f32.xlu2 %v4244_v11  ;;  %v3997_v42 = vadd.f32 %v7042_v32, %v3897_v62  ;;  %vm4395_vm0 = vweird.f32 %v4357_v28 }
 0x268   : > { %v4127_v0 = vpop.xlane.xlu1 %4126 }
 0x269   : > { %v4181_v29 = vmul.f32 %v6900_v30, %v4127_v0  ;;  %v7144_v40 = vadd.f32 %v5885_v23, %v3997_v42 }
 0x26a   : > { %v4264_v5 = vpop.xlane.xlu0 %4263 }
 0x26b   : > { %v7149_v49 = vsub.f32 %v4078_v44, %v4181_v29  ;;  %v4326_v36 = vmul.f32 %v4264_v5, %v6900_v30  ;;  %v7499_v31 = vmax.f32 %v7144_v40, 0.0  ;;  %v4243_v29 = vmul.f32 %v7159_v56, %v7159_v56 }
 0x26d   : > { %v5820_v48 = vpop.eup %5819  ;;  %v4358_v16 = vadd.f32 1e-05, %v4326_v36  ;;  %4156 = vadd.xlane.f32.xlu1 %v7499_v31  ;;  %v4245_v32 = vmul.f32 %v7149_v49, %v7149_v49  ;;  %v7169_v36 = vld [vmem:[%s7488_s3] ss:$0 sm:$0xff] }
 0x26e   : > { %v4390_v61 = vmul.f32 %v5820_v48, %v4357_v28  ;;  %vm4396_vm15 = vweird.f32 %v5820_v48 }
 0x26f   : > { %5821 = vrsqrt.f32 %v4358_v16  ;;  %4293 = vadd.xlane.f32.xlu0 %v4245_v32  ;;  %vm4397_vm1 = vmor %vm4395_vm0, %vm4396_vm15  ;;  %v7520_v32 = vmax.f32 %v6936_v41, 0.0  ;;  %vm4405_vm3 = vweird.f32 %v4358_v16 }
 0x270   : > { %v4391_v53 = vmul.f32 %v5820_v48, %v4390_v61  ;;  %v4129_v44 = vpop.xlane.xlu2 %4128 }
 0x271   : > { %v4182_v42 = vmul.f32 %v6900_v30, %v4129_v44 }
 0x272   : > { %v4392_v62 = vmul.f32 0.5, %v4391_v53  ;;  %v4266_v11 = vpop.xlane.xlu1 %4265 }
 0x273   : > { %v4327_v0 = vmul.f32 %v4266_v11, %v6900_v30  ;;  %v7173_v61 = vsub.f32 %v7520_v32, %v4182_v42  ;;  %v7178_v11 = vld [vmem:[%s7489_s4] ss:$0 sm:$0xff]  ;;  %v7521_v42 = vmax.f32 %v6951_v51, 0.0 }
 0x274   : > { %v4393_v23 = vsub.f32 1.5, %v4392_v62 }
 0x275   : > { %v5822_v39 = vpop.eup %5821  ;;  %v4359_v5 = vadd.f32 1e-05, %v4327_v0  ;;  %4289 = vadd.xlane.f32.xlu1 %v4243_v29 }
 0x276   : > { %v4394_v9 = vmul.f32 %v5820_v48, %v4393_v23  ;;  %v4400_v35 = vmul.f32 %v5822_v39, %v4358_v16  ;;  %vm4406_vm2 = vweird.f32 %v5822_v39 }
 0x277   : > { %5823 = vrsqrt.f32 %v4359_v5  ;;  %vm4407_vm4 = vmor %vm4405_vm3, %vm4406_vm2  ;;  %vm4415_vm6 = vweird.f32 %v4359_v5 }
 0x278   : > { %v4398_v53 = vsel %vm4397_vm1, %v5820_v48, %v4394_v9  ;;  %v4401_v44 = vmul.f32 %v5822_v39, %v4400_v35  ;;  %v4131_v62 = vpop.xlane.xlu0 %4130  ;;  %v4246_v35 = vmul.f32 %v7173_v61, %v7173_v61 }
 0x279   : > { %v4709_v28 = vmul.f32 %v4398_v53, %v6910_v47  ;;  %v4183_v0 = vmul.f32 %v6900_v30, %v4131_v62 }
 0x27a   : > { %v4402_v29 = vmul.f32 0.5, %v4401_v44  ;;  %v4268_v23 = vpop.xlane.xlu2 %4267 }
 0x27b   : > { %v4745_v41 = vmul.f32 %v7169_v36, %v4709_v28  ;;  %v7187_v48 = vsub.f32 %v7521_v42, %v4183_v0  ;;  %v4328_v9 = vmul.f32 %v4268_v23, %v6900_v30 }
 0x27c   : > { %v4403_v32 = vsub.f32 1.5, %v4402_v29 }
 0x27d   : > { %v5824_v31 = vpop.eup %5823  ;;  %v4781_v47 = vadd.f32 %v7178_v11, %v4745_v41  ;;  %v4360_v53 = vadd.f32 1e-05, %v4328_v9  ;;  %4295 = vadd.xlane.f32.xlu1 %v4246_v35  ;;  %v4247_v44 = vmul.f32 %v7187_v48, %v7187_v48 }
 0x27e   : > { %v4404_v62 = vmul.f32 %v5822_v39, %v4403_v32  ;;  %v4410_v51 = vmul.f32 %v5824_v31, %v4359_v5  ;;  %vm4416_vm5 = vweird.f32 %v5824_v31 }
 0x27f   : > { %4813 = vst [vmem:[%s7195_s9] sm:$0xff] %v4781_v47  ;;  %5825 = vrsqrt.f32 %v4360_v53  ;;  %4297 = vadd.xlane.f32.xlu2 %v4247_v44  ;;  %vm4417_vm7 = vmor %vm4415_vm6, %vm4416_vm5  ;;  %vm4425_vm9 = vweird.f32 %v4360_v53 }
 0x280   : > { %v4408_v28 = vsel %vm4407_vm4, %v5822_v39, %v4404_v62  ;;  %v4411_v0 = vmul.f32 %v5824_v31, %v4410_v51  ;;  %v4133_v29 = vpop.xlane.xlu1 %4132 }
 0x281   : > { %v4710_v23 = vmul.f32 %v4408_v28, %v6925_v55  ;;  %v4184_v41 = vmul.f32 %v6900_v30, %v4133_v29 }
 0x282   : > { %v4412_v42 = vmul.f32 0.5, %v4411_v0  ;;  %v4270_v9 = vpop.xlane.xlu0 %4269 }
 0x283   : > { %v4746_v16 = vmul.f32 %v7169_v36, %v4710_v23  ;;  %v7203_v35 = vsub.f32 %v4081_v24, %v4184_v41  ;;  %v4329_v32 = vmul.f32 %v4270_v9, %v6900_v30 }
 0x284   : > { %v4413_v47 = vsub.f32 1.5, %v4412_v42 }
 0x285   : > { %v5826_v39 = vpop.eup %5825  ;;  %v4782_v44 = vadd.f32 %v7178_v11, %v4746_v16  ;;  %v4361_v62 = vadd.f32 1e-05, %v4329_v32  ;;  %v4248_v55 = vmul.f32 %v7203_v35, %v7203_v35 }
 0x286   : > { %v4414_v51 = vmul.f32 %v5824_v31, %v4413_v47  ;;  %v4420_v28 = vmul.f32 %v5826_v39, %v4360_v53  ;;  %vm4426_vm8 = vweird.f32 %v5826_v39 }
 0x287   : > { %4814 = vst [vmem:[%s7195_s9 + $0x8] sm:$0xff] %v4782_v44  ;;  %5827 = vrsqrt.f32 %v4361_v62  ;;  %4299 = vadd.xlane.f32.xlu0 %v4248_v55  ;;  %vm4427_vm10 = vmor %vm4425_vm9, %vm4426_vm8  ;;  %vm4435_vm12 = vweird.f32 %v4361_v62 }
 0x288   : > { %v4418_v50 = vsel %vm4417_vm7, %v5824_v31, %v4414_v51  ;;  %v4421_v24 = vmul.f32 %v5826_v39, %v4420_v28  ;;  %v4135_v0 = vpop.xlane.xlu2 %4134 }
 0x289   : > { %v4711_v29 = vmul.f32 %v4418_v50, %v6940_v19  ;;  %v4185_v23 = vmul.f32 %v6900_v30, %v4135_v0 }
 0x28a   : > { %v4422_v41 = vmul.f32 0.5, %v4421_v24  ;;  %v4272_v42 = vpop.xlane.xlu1 %4271 }
 0x28b   : > { %v4747_v9 = vmul.f32 %v7169_v36, %v4711_v29  ;;  %v7215_v5 = vsub.f32 %v4082_v37, %v4185_v23  ;;  %v4330_v16 = vmul.f32 %v4272_v42, %v6900_v30 }
 0x28c   : > { %v4423_v32 = vsub.f32 1.5, %v4422_v41 }
 0x28d   : > { %v5828_v31 = vpop.eup %5827  ;;  %v4783_v47 = vadd.f32 %v7178_v11, %v4747_v9  ;;  %v4362_v44 = vadd.f32 1e-05, %v4330_v16  ;;  %v4249_v19 = vmul.f32 %v7215_v5, %v7215_v5 }
 0x28e   : > { %v4424_v55 = vmul.f32 %v5826_v39, %v4423_v32  ;;  %v4430_v51 = vmul.f32 %v5828_v31, %v4361_v62  ;;  %vm4436_vm11 = vweird.f32 %v5828_v31 }
 0x28f   : > { %4815 = vst [vmem:[%s7195_s9 + $0x10] sm:$0xff] %v4783_v47  ;;  %5829 = vrsqrt.f32 %v4362_v44  ;;  %4301 = vadd.xlane.f32.xlu1 %v4249_v19  ;;  %vm4437_vm13 = vmor %vm4435_vm12, %vm4436_vm11  ;;  %vm4445_vm15 = vweird.f32 %v4362_v44 }
 0x290   : > { %v4428_v27 = vsel %vm4427_vm10, %v5826_v39, %v4424_v55  ;;  %v4431_v37 = vmul.f32 %v5828_v31, %v4430_v51  ;;  %v4137_v28 = vpop.xlane.xlu0 %4136 }
 0x291   : > { %v4712_v50 = vmul.f32 %v4428_v27, %v6955_v58  ;;  %v4186_v24 = vmul.f32 %v6900_v30, %v4137_v28 }
 0x292   : > { %v4432_v0 = vmul.f32 0.5, %v4431_v37  ;;  %v4274_v29 = vpop.xlane.xlu2 %4273 }
 0x293   : > { %v4748_v23 = vmul.f32 %v7169_v36, %v4712_v50  ;;  %v7227_v53 = vsub.f32 %v4083_v54, %v4186_v24  ;;  %v4331_v41 = vmul.f32 %v4274_v29, %v6900_v30 }
 0x294   : > { %v4433_v42 = vsub.f32 1.5, %v4432_v0 }
 0x295   : > { %v5830_v39 = vpop.eup %5829  ;;  %v4784_v9 = vadd.f32 %v7178_v11, %v4748_v23  ;;  %v4363_v16 = vadd.f32 1e-05, %v4331_v41  ;;  %v4250_v58 = vmul.f32 %v7227_v53, %v7227_v53 }
 0x296   : > { %v4434_v32 = vmul.f32 %v5828_v31, %v4433_v42  ;;  %v4440_v47 = vmul.f32 %v5830_v39, %v4362_v44  ;;  %vm4446_vm14 = vweird.f32 %v5830_v39 }
 0x297   : > { %4816 = vst [vmem:[%s7195_s9 + $0x18] sm:$0xff] %v4784_v9  ;;  %5831 = vrsqrt.f32 %v4363_v16  ;;  %4303 = vadd.xlane.f32.xlu2 %v4250_v58  ;;  %vm4447_vm0 = vmor %vm4445_vm15, %vm4446_vm14  ;;  %vm4455_vm2 = vweird.f32 %v4363_v16 }
 0x298   : > { %v4438_v20 = vsel %vm4437_vm13, %v5828_v31, %v4434_v32  ;;  %v4441_v54 = vmul.f32 %v5830_v39, %v4440_v47  ;;  %v4139_v19 = vpop.xlane.xlu1 %4138 }
 0x299   : > { %v4713_v55 = vmul.f32 %v4438_v20, %v6970_v7  ;;  %v4187_v51 = vmul.f32 %v6900_v30, %v4139_v19 }
 0x29a   : > { %v4442_v27 = vmul.f32 0.5, %v4441_v54  ;;  %v4276_v37 = vpop.xlane.xlu0 %4275 }
 0x29b   : > { %v4749_v28 = vmul.f32 %v7169_v36, %v4713_v55  ;;  %v7239_v62 = vsub.f32 %v4084_v4, %v4187_v51  ;;  %v4332_v50 = vmul.f32 %v4276_v37, %v6900_v30 }
 0x29c   : > { %v4443_v24 = vsub.f32 1.5, %v4442_v27 }
 0x29d   : > { %v5832_v31 = vpop.eup %5831  ;;  %v4785_v0 = vadd.f32 %v7178_v11, %v4749_v28  ;;  %v4364_v29 = vadd.f32 1e-05, %v4332_v50  ;;  %v4251_v7 = vmul.f32 %v7239_v62, %v7239_v62 }
 0x29e   : > { %v4444_v23 = vmul.f32 %v5830_v39, %v4443_v24  ;;  %v4450_v41 = vmul.f32 %v5832_v31, %v4363_v16  ;;  %vm4456_vm1 = vweird.f32 %v5832_v31 }
 0x29f   : > { %4817 = vst [vmem:[%s7195_s9 + $0x20] sm:$0xff] %v4785_v0  ;;  %5833 = vrsqrt.f32 %v4364_v29  ;;  %4305 = vadd.xlane.f32.xlu0 %v4251_v7  ;;  %vm4457_vm3 = vmor %vm4455_vm2, %vm4456_vm1  ;;  %vm4465_vm5 = vweird.f32 %v4364_v29 }
 0x2a0   : > { %v4448_v17 = vsel %vm4447_vm0, %v5830_v39, %v4444_v23  ;;  %v4451_v4 = vmul.f32 %v5832_v31, %v4450_v41  ;;  %v4141_v42 = vpop.xlane.xlu2 %4140 }
 0x2a1   : > { %v4714_v9 = vmul.f32 %v4448_v17, %v6985_v14  ;;  %v4188_v58 = vmul.f32 %v6900_v30, %v4141_v42 }
 0x2a2   : > { %v4452_v32 = vmul.f32 0.5, %v4451_v4  ;;  %v4278_v47 = vpop.xlane.xlu1 %4277 }
 0x2a3   : > { %v4750_v20 = vmul.f32 %v7169_v36, %v4714_v9  ;;  %v7251_v44 = vsub.f32 %v4085_v25, %v4188_v58  ;;  %v4333_v54 = vmul.f32 %v4278_v47, %v6900_v30 }
 0x2a4   : > { %v4453_v19 = vsub.f32 1.5, %v4452_v32 }
 0x2a5   : > { %v5834_v39 = vpop.eup %5833  ;;  %v4786_v55 = vadd.f32 %v7178_v11, %v4750_v20  ;;  %v4365_v51 = vadd.f32 1e-05, %v4333_v54  ;;  %v4252_v14 = vmul.f32 %v7251_v44, %v7251_v44 }
 0x2a6   : > { %v4454_v27 = vmul.f32 %v5832_v31, %v4453_v19  ;;  %v4460_v37 = vmul.f32 %v5834_v39, %v4364_v29  ;;  %vm4466_vm4 = vweird.f32 %v5834_v39 }
 0x2a7   : > { %4818 = vst [vmem:[%s7195_s9 + $0x28] sm:$0xff] %v4786_v55  ;;  %5835 = vrsqrt.f32 %v4365_v51  ;;  %4307 = vadd.xlane.f32.xlu1 %v4252_v14  ;;  %vm4467_vm6 = vmor %vm4465_vm5, %vm4466_vm4  ;;  %vm4475_vm8 = vweird.f32 %v4365_v51 }
 0x2a8   : > { %v4458_v6 = vsel %vm4457_vm3, %v5832_v31, %v4454_v27  ;;  %v4461_v25 = vmul.f32 %v5834_v39, %v4460_v37  ;;  %v4143_v28 = vpop.xlane.xlu0 %4142 }
 0x2a9   : > { %v4715_v50 = vmul.f32 %v4458_v6, %v7000_v22  ;;  %v4189_v24 = vmul.f32 %v6900_v30, %v4143_v28 }
 0x2aa   : > { %v4462_v0 = vmul.f32 0.5, %v4461_v25  ;;  %v4280_v7 = vpop.xlane.xlu2 %4279 }
 0x2ab   : > { %v4751_v23 = vmul.f32 %v7169_v36, %v4715_v50  ;;  %v7263_v16 = vsub.f32 %v4086_v18, %v4189_v24  ;;  %v4334_v41 = vmul.f32 %v4280_v7, %v6900_v30 }
 0x2ac   : > { %v4463_v17 = vsub.f32 1.5, %v4462_v0 }
 0x2ad   : > { %v5836_v31 = vpop.eup %5835  ;;  %v4787_v4 = vadd.f32 %v7178_v11, %v4751_v23  ;;  %v4366_v42 = vadd.f32 1e-05, %v4334_v41  ;;  %v4253_v22 = vmul.f32 %v7263_v16, %v7263_v16 }
 0x2ae   : > { %v4464_v9 = vmul.f32 %v5834_v39, %v4463_v17  ;;  %v4470_v58 = vmul.f32 %v5836_v31, %v4365_v51  ;;  %vm4476_vm7 = vweird.f32 %v5836_v31 }
 0x2af   : > { %4819 = vst [vmem:[%s7195_s9 + $0x30] sm:$0xff] %v4787_v4  ;;  %5837 = vrsqrt.f32 %v4366_v42  ;;  %4309 = vadd.xlane.f32.xlu2 %v4253_v22  ;;  %vm4477_vm9 = vmor %vm4475_vm8, %vm4476_vm7  ;;  %vm4485_vm11 = vweird.f32 %v4366_v42 }
 0x2b0   : > { %v4468_v1 = vsel %vm4467_vm6, %v5834_v39, %v4464_v9  ;;  %v4471_v18 = vmul.f32 %v5836_v31, %v4470_v58  ;;  %v4145_v32 = vpop.xlane.xlu1 %4144 }
 0x2b1   : > { %v4716_v47 = vmul.f32 %v4468_v1, %v7015_v33  ;;  %v4190_v20 = vmul.f32 %v6900_v30, %v4145_v32 }
 0x2b2   : > { %v4472_v54 = vmul.f32 0.5, %v4471_v18  ;;  %v4282_v19 = vpop.xlane.xlu0 %4281 }
 0x2b3   : > { %v4752_v55 = vmul.f32 %v7169_v36, %v4716_v47  ;;  %v7275_v29 = vsub.f32 %v4087_v60, %v4190_v20  ;;  %v4335_v14 = vmul.f32 %v4282_v19, %v6900_v30 }
 0x2b4   : > { %v4473_v27 = vsub.f32 1.5, %v4472_v54 }
 0x2b5   : > { %v5838_v39 = vpop.eup %5837  ;;  %v4788_v37 = vadd.f32 %v7178_v11, %v4752_v55  ;;  %v4367_v6 = vadd.f32 1e-05, %v4335_v14  ;;  %v4254_v33 = vmul.f32 %v7275_v29, %v7275_v29 }
 0x2b6   : > { %v4474_v25 = vmul.f32 %v5836_v31, %v4473_v27  ;;  %v4480_v28 = vmul.f32 %v5838_v39, %v4366_v42  ;;  %vm4486_vm10 = vweird.f32 %v5838_v39 }
 0x2b7   : > { %4820 = vst [vmem:[%s7195_s9 + $0x38] sm:$0xff] %v4788_v37  ;;  %5839 = vrsqrt.f32 %v4367_v6  ;;  %4311 = vadd.xlane.f32.xlu0 %v4254_v33  ;;  %vm4487_vm12 = vmor %vm4485_vm11, %vm4486_vm10  ;;  %vm4495_vm14 = vweird.f32 %v4367_v6 }
 0x2b8   : > { %v4478_v12 = vsel %vm4477_vm9, %v5836_v31, %v4474_v25  ;;  %v4481_v60 = vmul.f32 %v5838_v39, %v4480_v28  ;;  %v4147_v50 = vpop.xlane.xlu2 %4146 }
 0x2b9   : > { %v4717_v24 = vmul.f32 %v4478_v12, %v7030_v8  ;;  %v4191_v0 = vmul.f32 %v6900_v30, %v4147_v50 }
 0x2ba   : > { %v4482_v7 = vmul.f32 0.5, %v4481_v60  ;;  %v4284_v23 = vpop.xlane.xlu1 %4283 }
 0x2bb   : > { %v4753_v41 = vmul.f32 %v7169_v36, %v4717_v24  ;;  %v7287_v51 = vsub.f32 %v4088_v52, %v4191_v0  ;;  %v4336_v17 = vmul.f32 %v4284_v23, %v6900_v30 }
 0x2bc   : > { %v4483_v4 = vsub.f32 1.5, %v4482_v7 }
 0x2bd   : > { %v5840_v31 = vpop.eup %5839  ;;  %v4789_v22 = vadd.f32 %v7178_v11, %v4753_v41  ;;  %v4368_v9 = vadd.f32 1e-05, %v4336_v17  ;;  %v4255_v8 = vmul.f32 %v7287_v51, %v7287_v51 }
 0x2be   : > { %v4484_v58 = vmul.f32 %v5838_v39, %v4483_v4  ;;  %v4490_v1 = vmul.f32 %v5840_v31, %v4367_v6  ;;  %vm4496_vm13 = vweird.f32 %v5840_v31 }
 0x2bf   : > { %4821 = vst [vmem:[%s7195_s9 + $0x40] sm:$0xff] %v4789_v22  ;;  %5841 = vrsqrt.f32 %v4368_v9  ;;  %4313 = vadd.xlane.f32.xlu1 %v4255_v8  ;;  %vm4497_vm15 = vmor %vm4495_vm14, %vm4496_vm13  ;;  %vm4505_vm1 = vweird.f32 %v4368_v9 }
 0x2c0   : > { %v4488_v3 = vsel %vm4487_vm12, %v5838_v39, %v4484_v58  ;;  %v4491_v52 = vmul.f32 %v5840_v31, %v4490_v1  ;;  %v4149_v18 = vpop.xlane.xlu0 %4148 }
 0x2c1   : > { %v4718_v32 = vmul.f32 %v4488_v3, %v7050_v45  ;;  %v4192_v47 = vmul.f32 %v6900_v30, %v4149_v18 }
 0x2c2   : > { %v4492_v20 = vmul.f32 0.5, %v4491_v52  ;;  %v4286_v54 = vpop.xlane.xlu2 %4285 }
 0x2c3   : > { %v4754_v19 = vmul.f32 %v7169_v36, %v4718_v32  ;;  %v7299_v42 = vsub.f32 %v4089_v21, %v4192_v47  ;;  %v4337_v55 = vmul.f32 %v4286_v54, %v6900_v30 }
 0x2c4   : > { %v4493_v14 = vsub.f32 1.5, %v4492_v20 }
 0x2c5   : > { %v5842_v27 = vpop.eup %5841  ;;  %v4790_v39 = vadd.f32 %v7178_v11, %v4754_v19  ;;  %v4369_v37 = vadd.f32 1e-05, %v4337_v55  ;;  %v4256_v45 = vmul.f32 %v7299_v42, %v7299_v42 }
 0x2c6   : > { %v4494_v33 = vmul.f32 %v5840_v31, %v4493_v14  ;;  %v4500_v25 = vmul.f32 %v5842_v27, %v4368_v9  ;;  %vm4506_vm0 = vweird.f32 %v5842_v27 }
 0x2c7   : > { %4822 = vst [vmem:[%s7195_s9 + $0x48] sm:$0xff] %v4790_v39  ;;  %5843 = vrsqrt.f32 %v4369_v37  ;;  %4315 = vadd.xlane.f32.xlu2 %v4256_v45  ;;  %vm4507_vm2 = vmor %vm4505_vm1, %vm4506_vm0  ;;  %vm4515_vm4 = vweird.f32 %v4369_v37 }
 0x2c8   : > { %v4498_v26 = vsel %vm4497_vm15, %v5840_v31, %v4494_v33  ;;  %v4501_v21 = vmul.f32 %v5842_v27, %v4500_v25  ;;  %v4151_v28 = vpop.xlane.xlu1 %4150 }
 0x2c9   : > { %v4719_v12 = vmul.f32 %v4498_v26, %v7065_v34  ;;  %v4193_v60 = vmul.f32 %v6900_v30, %v4151_v28 }
 0x2ca   : > { %v4502_v50 = vmul.f32 0.5, %v4501_v21  ;;  %v4288_v24 = vpop.xlane.xlu0 %4287 }
 0x2cb   : > { %v4755_v0 = vmul.f32 %v7169_v36, %v4719_v12  ;;  %v7311_v6 = vsub.f32 %v4090_v57, %v4193_v60  ;;  %v4338_v7 = vmul.f32 %v4288_v24, %v6900_v30 }
 0x2cc   : > { %v4503_v23 = vsub.f32 1.5, %v4502_v50 }
 0x2cd   : > { %v5844_v41 = vpop.eup %5843  ;;  %v4791_v17 = vadd.f32 %v7178_v11, %v4755_v0  ;;  %v4370_v4 = vadd.f32 1e-05, %v4338_v7  ;;  %v4257_v34 = vmul.f32 %v7311_v6, %v7311_v6  ;;  %v7522_v0 = vmax.f32 %v7144_v40, 0.0 }
 0x2ce   : > { %v4504_v31 = vmul.f32 %v5842_v27, %v4503_v23  ;;  %v4510_v22 = vmul.f32 %v5844_v41, %v4369_v37  ;;  %vm4516_vm3 = vweird.f32 %v5844_v41 }
 0x2cf   : > { %4823 = vst [vmem:[%s7195_s9 + $0x50] sm:$0xff] %v4791_v17  ;;  %5845 = vrsqrt.f32 %v4370_v4  ;;  %4317 = vadd.xlane.f32.xlu0 %v4257_v34  ;;  %vm4517_vm5 = vmor %vm4515_vm4, %vm4516_vm3  ;;  %vm4525_vm7 = vweird.f32 %v4370_v4 }
 0x2d0   : > { %v4508_v59 = vsel %vm4507_vm2, %v5842_v27, %v4504_v31  ;;  %v4511_v57 = vmul.f32 %v5844_v41, %v4510_v22  ;;  %v4153_v8 = vpop.xlane.xlu2 %4152 }
 0x2d1   : > { %v4720_v58 = vmul.f32 %v4508_v59, %v7080_v13  ;;  %v4194_v1 = vmul.f32 %v6900_v30, %v4153_v8 }
 0x2d2   : > { %v4512_v3 = vmul.f32 0.5, %v4511_v57 }
 0x2d3   : > { %v4756_v52 = vmul.f32 %v7169_v36, %v4720_v58  ;;  %v7323_v18 = vsub.f32 %v4091_v38, %v4194_v1 }
 0x2d4   : > { %v4513_v9 = vsub.f32 1.5, %v4512_v3 }
 0x2d5   : > { %v5846_v32 = vpop.eup %5845  ;;  %v4792_v47 = vadd.f32 %v7178_v11, %v4756_v52  ;;  %v4258_v20 = vmul.f32 %v7323_v18, %v7323_v18 }
 0x2d6   : > { %v4514_v54 = vmul.f32 %v5844_v41, %v4513_v9  ;;  %v4520_v13 = vmul.f32 %v5846_v32, %v4370_v4  ;;  %vm4526_vm6 = vweird.f32 %v5846_v32 }
 0x2d7   : > { %4824 = vst [vmem:[%s7195_s9 + $0x58] sm:$0xff] %v4792_v47  ;;  %4319 = vadd.xlane.f32.xlu1 %v4258_v20  ;;  %vm4527_vm8 = vmor %vm4525_vm7, %vm4526_vm6 }
 0x2d8   : > { %v4518_v19 = vsel %vm4517_vm5, %v5844_v41, %v4514_v54  ;;  %v4521_v55 = vmul.f32 %v5846_v32, %v4520_v13  ;;  %v4155_v46 = vpop.xlane.xlu0 %4154 }
 0x2d9   : > { %v4721_v38 = vmul.f32 %v4518_v19, %v7095_v15  ;;  %v4195_v14 = vmul.f32 %v6900_v30, %v4155_v46 }
 0x2da   : > { %v4522_v27 = vmul.f32 0.5, %v4521_v55  ;;  %v4292_v39 = vpop.xlane.xlu2 %4291 }
 0x2db   : > { %v4757_v45 = vmul.f32 %v7169_v36, %v4721_v38  ;;  %v7334_v33 = vsub.f32 %v4092_v63, %v4195_v14  ;;  %v4340_v37 = vmul.f32 %v4292_v39, %v6900_v30 }
 0x2dc   : > { %v4523_v25 = vsub.f32 1.5, %v4522_v27 }
 0x2dd   : > { %v4793_v26 = vadd.f32 %v7178_v11, %v4757_v45  ;;  %v4372_v21 = vadd.f32 1e-05, %v4340_v37  ;;  %v4259_v15 = vmul.f32 %v7334_v33, %v7334_v33 }
 0x2de   : > { %v4524_v28 = vmul.f32 %v5846_v32, %v4523_v25 }
 0x2df   : > { %4825 = vst [vmem:[%s7195_s9 + $0x60] sm:$0xff] %v4793_v26  ;;  %5847 = vrsqrt.f32 %v4372_v21  ;;  %4321 = vadd.xlane.f32.xlu2 %v4259_v15  ;;  %vm4545_vm10 = vweird.f32 %v4372_v21 }
 0x2e0   : > { %v4528_v43 = vsel %vm4527_vm8, %v5846_v32, %v4524_v28  ;;  %v4157_v63 = vpop.xlane.xlu1 %4156 }
 0x2e1   : > { %v4722_v12 = vmul.f32 %v4528_v43, %v7110_v10  ;;  %v4196_v60 = vmul.f32 %v6900_v30, %v4157_v63 }
 0x2e2   : > { %v4294_v50 = vpop.xlane.xlu0 %4293 }
 0x2e3   : > { %v4758_v24 = vmul.f32 %v7169_v36, %v4722_v12  ;;  %v7346_v7 = vsub.f32 %v7522_v0, %v4196_v60  ;;  %v4341_v23 = vmul.f32 %v4294_v50, %v6900_v30 }
 0x2e5   : > { %v5848_v41 = vpop.eup %5847  ;;  %v4794_v17 = vadd.f32 %v7178_v11, %v4758_v24  ;;  %v4373_v4 = vadd.f32 1e-05, %v4341_v23  ;;  %v4260_v34 = vmul.f32 %v7346_v7, %v7346_v7 }
 0x2e6   : > { %v4540_v31 = vmul.f32 %v5848_v41, %v4372_v21  ;;  %vm4546_vm9 = vweird.f32 %v5848_v41 }
 0x2e7   : > { %4826 = vst [vmem:[%s7195_s9 + $0x68] sm:$0xff] %v4794_v17  ;;  %5849 = vrsqrt.f32 %v4373_v4  ;;  %4323 = vadd.xlane.f32.xlu0 %v4260_v34  ;;  %vm4547_vm11 = vmor %vm4545_vm10, %vm4546_vm9  ;;  %vm4555_vm13 = vweird.f32 %v4373_v4 }
 0x2e8   : > { %v4541_v10 = vmul.f32 %v5848_v41, %v4540_v31  ;;  %v4290_v22 = vpop.xlane.xlu1 %4289 }
 0x2e9   : > { %v4339_v59 = vmul.f32 %v4290_v22, %v6900_v30 }
 0x2ea   : > { %v4542_v40 = vmul.f32 0.5, %v4541_v10 }
 0x2eb   : > { %v4371_v57 = vadd.f32 1e-05, %v4339_v59 }
 0x2ec   : > { %v4543_v8 = vsub.f32 1.5, %v4542_v40 }
 0x2ed   : > { %v5850_v58 = vpop.eup %5849  ;;  %5851 = vrsqrt.f32 %v4371_v57  ;;  %vm4535_vm0 = vweird.f32 %v4371_v57 }
 0x2ee   : > { %v4544_v1 = vmul.f32 %v5848_v41, %v4543_v8  ;;  %v4550_v3 = vmul.f32 %v5850_v58, %v4373_v4  ;;  %vm4556_vm12 = vweird.f32 %v5850_v58 }
 0x2ef   : > { %vm4557_vm14 = vmor %vm4555_vm13, %vm4556_vm12 }
 0x2f0   : > { %v4548_v52 = vsel %vm4547_vm11, %v5848_v41, %v4544_v1  ;;  %v4551_v9 = vmul.f32 %v5850_v58, %v4550_v3  ;;  %v4296_v32 = vpop.xlane.xlu1 %4295 }
 0x2f1   : > { %v4724_v47 = vmul.f32 %v4548_v52, %v7133_v2  ;;  %v4342_v20 = vmul.f32 %v4296_v32, %v6900_v30 }
 0x2f2   : > { %v4552_v54 = vmul.f32 0.5, %v4551_v9  ;;  %v4298_v13 = vpop.xlane.xlu2 %4297 }
 0x2f3   : > { %v5852_v19 = vpop.eup %5851  ;;  %v4760_v55 = vmul.f32 %v7169_v36, %v4724_v47  ;;  %v4374_v46 = vadd.f32 1e-05, %v4342_v20  ;;  %v4343_v38 = vmul.f32 %v4298_v13, %v6900_v30 }
 0x2f4   : > { %v4553_v14 = vsub.f32 1.5, %v4552_v54  ;;  %v4530_v27 = vmul.f32 %v5852_v19, %v4371_v57  ;;  %vm4536_vm15 = vweird.f32 %v5852_v19 }
 0x2f5   : > { %v4796_v39 = vadd.f32 %v7178_v11, %v4760_v55  ;;  %5853 = vrsqrt.f32 %v4374_v46  ;;  %v4375_v45 = vadd.f32 1e-05, %v4343_v38  ;;  %vm4537_vm1 = vmor %vm4535_vm0, %vm4536_vm15  ;;  %vm4565_vm3 = vweird.f32 %v4374_v46 }
 0x2f6   : > { %v4554_v37 = vmul.f32 %v5850_v58, %v4553_v14  ;;  %v4531_v2 = vmul.f32 %v5852_v19, %v4530_v27 }
 0x2f7   : > { %4828 = vst [vmem:[%s7195_s9 + $0x78] sm:$0xff] %v4796_v39  ;;  %5855 = vrsqrt.f32 %v4375_v45  ;;  %vm4575_vm6 = vweird.f32 %v4375_v45 }
 0x2f8   : > { %v4558_v25 = vsel %vm4557_vm14, %v5850_v58, %v4554_v37  ;;  %v4532_v26 = vmul.f32 0.5, %v4531_v2 }
 0x2f9   : > { %v4725_v21 = vmul.f32 %v4558_v25, %v7149_v49 }
 0x2fa   : > { %v4533_v15 = vsub.f32 1.5, %v4532_v26  ;;  %v4300_v28 = vpop.xlane.xlu0 %4299 }
 0x2fb   : > { %v5854_v43 = vpop.eup %5853  ;;  %v4761_v63 = vmul.f32 %v7169_v36, %v4725_v21  ;;  %v4344_v12 = vmul.f32 %v4300_v28, %v6900_v30 }
 0x2fc   : > { %v4534_v60 = vmul.f32 %v5852_v19, %v4533_v15  ;;  %v4560_v50 = vmul.f32 %v5854_v43, %v4374_v46  ;;  %vm4566_vm2 = vweird.f32 %v5854_v43 }
 0x2fd   : > { %v5856_v24 = vpop.eup %5855  ;;  %v4797_v0 = vadd.f32 %v7178_v11, %v4761_v63  ;;  %v4376_v23 = vadd.f32 1e-05, %v4344_v12  ;;  %vm4567_vm5 = vmor %vm4565_vm3, %vm4566_vm2 }
 0x2fe   : > { %v4538_v41 = vsel %vm4537_vm1, %v5852_v19, %v4534_v60  ;;  %v4561_v17 = vmul.f32 %v5854_v43, %v4560_v50  ;;  %v4570_v49 = vmul.f32 %v5856_v24, %v4375_v45  ;;  %vm4576_vm4 = vweird.f32 %v5856_v24 }
 0x2ff   : > { %4829 = vst [vmem:[%s7195_s9 + $0x80] sm:$0xff] %v4797_v0  ;;  %v4723_v4 = vmul.f32 %v4538_v41, %v7159_v56  ;;  %5857 = vrsqrt.f32 %v4376_v23  ;;  %vm4577_vm7 = vmor %vm4575_vm6, %vm4576_vm4  ;;  %vm4585_vm9 = vweird.f32 %v4376_v23 }
 0x300   : > { %v4562_v34 = vmul.f32 0.5, %v4561_v17  ;;  %v4571_v31 = vmul.f32 %v5856_v24, %v4570_v49 }
 0x301   : > { %v4759_v10 = vmul.f32 %v7169_v36, %v4723_v4 }
 0x302   : > { %v4563_v22 = vsub.f32 1.5, %v4562_v34  ;;  %v4572_v59 = vmul.f32 0.5, %v4571_v31  ;;  %v4302_v40 = vpop.xlane.xlu1 %4301 }
 0x303   : > { %v4795_v57 = vadd.f32 %v7178_v11, %v4759_v10  ;;  %v4345_v8 = vmul.f32 %v4302_v40, %v6900_v30 }
 0x304   : > { %v4564_v58 = vmul.f32 %v5854_v43, %v4563_v22  ;;  %v4573_v1 = vsub.f32 1.5, %v4572_v59 }
 0x305   : > { %v5858_v3 = vpop.eup %5857  ;;  %4827 = vst [vmem:[%s7195_s9 + $0x70] sm:$0xff] %v4795_v57  ;;  %v4377_v56 = vadd.f32 1e-05, %v4345_v8 }
 0x306   : > { %v4568_v52 = vsel %vm4567_vm5, %v5854_v43, %v4564_v58  ;;  %v4574_v9 = vmul.f32 %v5856_v24, %v4573_v1  ;;  %v4580_v32 = vmul.f32 %v5858_v3, %v4376_v23  ;;  %vm4586_vm8 = vweird.f32 %v5858_v3 }
 0x307   : > { %v4726_v47 = vmul.f32 %v4568_v52, %v7173_v61  ;;  %5859 = vrsqrt.f32 %v4377_v56  ;;  %vm4587_vm10 = vmor %vm4585_vm9, %vm4586_vm8  ;;  %vm4595_vm12 = vweird.f32 %v4377_v56 }
 0x308   : > { %v4578_v20 = vsel %vm4577_vm7, %v5856_v24, %v4574_v9  ;;  %v4581_v54 = vmul.f32 %v5858_v3, %v4580_v32 }
 0x309   : > { %v4762_v13 = vmul.f32 %v7169_v36, %v4726_v47  ;;  %v4727_v19 = vmul.f32 %v4578_v20, %v7187_v48 }
 0x30a   : > { %v4582_v55 = vmul.f32 0.5, %v4581_v54  ;;  %v4304_v46 = vpop.xlane.xlu2 %4303 }
 0x30b   : > { %v4798_v38 = vadd.f32 %v7178_v11, %v4762_v13  ;;  %v4763_v14 = vmul.f32 %v7169_v36, %v4727_v19  ;;  %v4346_v27 = vmul.f32 %v4304_v46, %v6900_v30 }
 0x30c   : > { %v4583_v39 = vsub.f32 1.5, %v4582_v55 }
 0x30d   : > { %v5860_v61 = vpop.eup %5859  ;;  %4830 = vst [vmem:[%s7195_s9 + $0x88] sm:$0xff] %v4798_v38  ;;  %v4799_v45 = vadd.f32 %v7178_v11, %v4763_v14  ;;  %v4378_v37 = vadd.f32 1e-05, %v4346_v27 }
 0x30e   : > { %v4584_v2 = vmul.f32 %v5858_v3, %v4583_v39  ;;  %v4590_v25 = vmul.f32 %v5860_v61, %v4377_v56  ;;  %vm4596_vm11 = vweird.f32 %v5860_v61 }
 0x30f   : > { %4831 = vst [vmem:[%s7195_s9 + $0x90] sm:$0xff] %v4799_v45  ;;  %5861 = vrsqrt.f32 %v4378_v37  ;;  %vm4597_vm13 = vmor %vm4595_vm12, %vm4596_vm11  ;;  %vm4605_vm15 = vweird.f32 %v4378_v37 }
 0x310   : > { %v4588_v48 = vsel %vm4587_vm10, %v5858_v3, %v4584_v2  ;;  %v4591_v26 = vmul.f32 %v5860_v61, %v4590_v25 }
 0x311   : > { %v4728_v21 = vmul.f32 %v4588_v48, %v7203_v35 }
 0x312   : > { %v4592_v15 = vmul.f32 0.5, %v4591_v26  ;;  %v4306_v28 = vpop.xlane.xlu0 %4305 }
 0x313   : > { %v4764_v43 = vmul.f32 %v7169_v36, %v4728_v21  ;;  %v4347_v63 = vmul.f32 %v4306_v28, %v6900_v30 }
 0x314   : > { %v4593_v12 = vsub.f32 1.5, %v4592_v15 }
 0x315   : > { %v5862_v60 = vpop.eup %5861  ;;  %v4800_v50 = vadd.f32 %v7178_v11, %v4764_v43  ;;  %v4379_v24 = vadd.f32 1e-05, %v4347_v63 }
 0x316   : > { %v4594_v0 = vmul.f32 %v5860_v61, %v4593_v12  ;;  %v4600_v23 = vmul.f32 %v5862_v60, %v4378_v37  ;;  %vm4606_vm14 = vweird.f32 %v5862_v60 }
 0x317   : > { %4832 = vst [vmem:[%s7195_s9 + $0x98] sm:$0xff] %v4800_v50  ;;  %5863 = vrsqrt.f32 %v4379_v24  ;;  %vm4607_vm0 = vmor %vm4605_vm15, %vm4606_vm14  ;;  %vm4615_vm2 = vweird.f32 %v4379_v24 }
 0x318   : > { %v4598_v35 = vsel %vm4597_vm13, %v5860_v61, %v4594_v0  ;;  %v4601_v41 = vmul.f32 %v5862_v60, %v4600_v23 }
 0x319   : > { %v4729_v17 = vmul.f32 %v4598_v35, %v7215_v5 }
 0x31a   : > { %v4602_v49 = vmul.f32 0.5, %v4601_v41  ;;  %v4308_v4 = vpop.xlane.xlu1 %4307 }
 0x31b   : > { %v4765_v34 = vmul.f32 %v7169_v36, %v4729_v17  ;;  %v4348_v31 = vmul.f32 %v4308_v4, %v6900_v30 }
 0x31c   : > { %v4603_v10 = vsub.f32 1.5, %v4602_v49  ;;  %v7408_v49 = vld [vmem:[%s7488_s3] ss:$0 sm:$0xff] }
 0x31d   : > { %v5864_v22 = vpop.eup %5863  ;;  %v4801_v59 = vadd.f32 %v7178_v11, %v4765_v34  ;;  %v4380_v40 = vadd.f32 1e-05, %v4348_v31 }
 0x31e   : > { %v4604_v57 = vmul.f32 %v5862_v60, %v4603_v10  ;;  %v4610_v8 = vmul.f32 %v5864_v22, %v4379_v24  ;;  %vm4616_vm1 = vweird.f32 %v5864_v22  ;;  %v7415_v10 = vld [vmem:[%s7489_s4] ss:$0 sm:$0xff] }
 0x31f   : > { %4833 = vst [vmem:[%s7195_s9 + $0xa0] sm:$0xff] %v4801_v59  ;;  %5865 = vrsqrt.f32 %v4380_v40  ;;  %vm4617_vm3 = vmor %vm4615_vm2, %vm4616_vm1  ;;  %vm4625_vm5 = vweird.f32 %v4380_v40 }
 0x320   : > { %v4608_v5 = vsel %vm4607_vm0, %v5862_v60, %v4604_v57  ;;  %v4611_v58 = vmul.f32 %v5864_v22, %v4610_v8 }
 0x321   : > { %v4730_v1 = vmul.f32 %v4608_v5, %v7227_v53 }
 0x322   : > { %v4612_v3 = vmul.f32 0.5, %v4611_v58  ;;  %v4310_v56 = vpop.xlane.xlu2 %4309 }
 0x323   : > { %v4766_v52 = vmul.f32 %v7169_v36, %v4730_v1  ;;  %v4349_v9 = vmul.f32 %v4310_v56, %v6900_v30 }
 0x324   : > { %v4613_v32 = vsub.f32 1.5, %v4612_v3 }
 0x325   : > { %v5866_v47 = vpop.eup %5865  ;;  %v4802_v20 = vadd.f32 %v7178_v11, %v4766_v52  ;;  %v4381_v54 = vadd.f32 1e-05, %v4349_v9 }
 0x326   : > { %v4614_v13 = vmul.f32 %v5864_v22, %v4613_v32  ;;  %v4620_v19 = vmul.f32 %v5866_v47, %v4380_v40  ;;  %vm4626_vm4 = vweird.f32 %v5866_v47 }
 0x327   : > { %4834 = vst [vmem:[%s7195_s9 + $0xa8] sm:$0xff] %v4802_v20  ;;  %5867 = vrsqrt.f32 %v4381_v54  ;;  %vm4627_vm6 = vmor %vm4625_vm5, %vm4626_vm4  ;;  %vm4635_vm8 = vweird.f32 %v4381_v54 }
 0x328   : > { %v4618_v53 = vsel %vm4617_vm3, %v5864_v22, %v4614_v13  ;;  %v4621_v55 = vmul.f32 %v5866_v47, %v4620_v19 }
 0x329   : > { %v4731_v46 = vmul.f32 %v4618_v53, %v7239_v62 }
 0x32a   : > { %v4622_v38 = vmul.f32 0.5, %v4621_v55  ;;  %v4312_v14 = vpop.xlane.xlu0 %4311 }
 0x32b   : > { %v4767_v27 = vmul.f32 %v7169_v36, %v4731_v46  ;;  %v4350_v39 = vmul.f32 %v4312_v14, %v6900_v30 }
 0x32c   : > { %v4623_v61 = vsub.f32 1.5, %v4622_v38 }
 0x32d   : > { %v5868_v45 = vpop.eup %5867  ;;  %v4803_v37 = vadd.f32 %v7178_v11, %v4767_v27  ;;  %v4382_v2 = vadd.f32 1e-05, %v4350_v39 }
 0x32e   : > { %v4624_v25 = vmul.f32 %v5866_v47, %v4623_v61  ;;  %v4630_v48 = vmul.f32 %v5868_v45, %v4381_v54  ;;  %vm4636_vm7 = vweird.f32 %v5868_v45 }
 0x32f   : > { %4835 = vst [vmem:[%s7195_s9 + $0xb0] sm:$0xff] %v4803_v37  ;;  %5869 = vrsqrt.f32 %v4382_v2  ;;  %vm4637_vm9 = vmor %vm4635_vm8, %vm4636_vm7  ;;  %vm4645_vm11 = vweird.f32 %v4382_v2 }
 0x330   : > { %v4628_v62 = vsel %vm4627_vm6, %v5866_v47, %v4624_v25  ;;  %v4631_v26 = vmul.f32 %v5868_v45, %v4630_v48 }
 0x331   : > { %v4732_v21 = vmul.f32 %v4628_v62, %v7251_v44 }
 0x332   : > { %v4632_v15 = vmul.f32 0.5, %v4631_v26  ;;  %v4314_v28 = vpop.xlane.xlu1 %4313 }
 0x333   : > { %v4768_v43 = vmul.f32 %v7169_v36, %v4732_v21  ;;  %v4351_v63 = vmul.f32 %v4314_v28, %v6900_v30 }
 0x334   : > { %v4633_v12 = vsub.f32 1.5, %v4632_v15 }
 0x335   : > { %v5870_v60 = vpop.eup %5869  ;;  %v4804_v50 = vadd.f32 %v7178_v11, %v4768_v43  ;;  %v4383_v24 = vadd.f32 1e-05, %v4351_v63 }
 0x336   : > { %v4634_v0 = vmul.f32 %v5868_v45, %v4633_v12  ;;  %v4640_v23 = vmul.f32 %v5870_v60, %v4382_v2  ;;  %vm4646_vm10 = vweird.f32 %v5870_v60 }
 0x337   : > { %4836 = vst [vmem:[%s7195_s9 + $0xb8] sm:$0xff] %v4804_v50  ;;  %5871 = vrsqrt.f32 %v4383_v24  ;;  %vm4647_vm12 = vmor %vm4645_vm11, %vm4646_vm10  ;;  %vm4655_vm14 = vweird.f32 %v4383_v24 }
 0x338   : > { %v4638_v35 = vsel %vm4637_vm9, %v5868_v45, %v4634_v0  ;;  %v4641_v44 = vmul.f32 %v5870_v60, %v4640_v23 }
 0x339   : > { %v4733_v41 = vmul.f32 %v4638_v35, %v7263_v16 }
 0x33a   : > { %v4642_v36 = vmul.f32 0.5, %v4641_v44  ;;  %v4316_v17 = vpop.xlane.xlu2 %4315 }
 0x33b   : > { %v4769_v11 = vmul.f32 %v7408_v49, %v4733_v41  ;;  %v4352_v4 = vmul.f32 %v4316_v17, %v6900_v30 }
 0x33c   : > { %v4643_v34 = vsub.f32 1.5, %v4642_v36 }
 0x33d   : > { %v5872_v31 = vpop.eup %5871  ;;  %v4805_v16 = vadd.f32 %v7415_v10, %v4769_v11  ;;  %v4384_v22 = vadd.f32 1e-05, %v4352_v4 }
 0x33e   : > { %v4644_v59 = vmul.f32 %v5870_v60, %v4643_v34  ;;  %v4650_v40 = vmul.f32 %v5872_v31, %v4383_v24  ;;  %vm4656_vm13 = vweird.f32 %v5872_v31 }
 0x33f   : > { %4837 = vst [vmem:[%s7195_s9 + $0xc0] sm:$0xff] %v4805_v16  ;;  %5873 = vrsqrt.f32 %v4384_v22  ;;  %vm4657_vm15 = vmor %vm4655_vm14, %vm4656_vm13  ;;  %vm4665_vm1 = vweird.f32 %v4384_v22 }
 0x340   : > { %v4648_v57 = vsel %vm4647_vm12, %v5870_v60, %v4644_v59  ;;  %v4651_v8 = vmul.f32 %v5872_v31, %v4650_v40 }
 0x341   : > { %v4734_v5 = vmul.f32 %v4648_v57, %v7275_v29 }
 0x342   : > { %v4652_v58 = vmul.f32 0.5, %v4651_v8  ;;  %v4318_v1 = vpop.xlane.xlu0 %4317 }
 0x343   : > { %v4770_v3 = vmul.f32 %v7408_v49, %v4734_v5  ;;  %v4353_v56 = vmul.f32 %v4318_v1, %v6900_v30 }
 0x344   : > { %v4653_v52 = vsub.f32 1.5, %v4652_v58 }
 0x345   : > { %v5874_v9 = vpop.eup %5873  ;;  %v4806_v32 = vadd.f32 %v7415_v10, %v4770_v3  ;;  %v4385_v47 = vadd.f32 1e-05, %v4353_v56 }
 0x346   : > { %v4654_v20 = vmul.f32 %v5872_v31, %v4653_v52  ;;  %v4660_v54 = vmul.f32 %v5874_v9, %v4384_v22  ;;  %vm4666_vm0 = vweird.f32 %v5874_v9 }
 0x347   : > { %4838 = vst [vmem:[%s7195_s9 + $0xc8] sm:$0xff] %v4806_v32  ;;  %5875 = vrsqrt.f32 %v4385_v47  ;;  %vm4667_vm2 = vmor %vm4665_vm1, %vm4666_vm0  ;;  %vm4675_vm4 = vweird.f32 %v4385_v47 }
 0x348   : > { %v4658_v29 = vsel %vm4657_vm15, %v5872_v31, %v4654_v20  ;;  %v4661_v13 = vmul.f32 %v5874_v9, %v4660_v54 }
 0x349   : > { %v4735_v19 = vmul.f32 %v4658_v29, %v7287_v51 }
 0x34a   : > { %v4662_v53 = vmul.f32 0.5, %v4661_v13  ;;  %v4320_v55 = vpop.xlane.xlu1 %4319 }
 0x34b   : > { %v4771_v46 = vmul.f32 %v7408_v49, %v4735_v19  ;;  %v4354_v38 = vmul.f32 %v4320_v55, %v6900_v30 }
 0x34c   : > { %v4663_v14 = vsub.f32 1.5, %v4662_v53 }
 0x34d   : > { %v5876_v27 = vpop.eup %5875  ;;  %v4807_v39 = vadd.f32 %v7415_v10, %v4771_v46  ;;  %v4386_v61 = vadd.f32 1e-05, %v4354_v38 }
 0x34e   : > { %v4664_v45 = vmul.f32 %v5874_v9, %v4663_v14  ;;  %v4670_v37 = vmul.f32 %v5876_v27, %v4385_v47  ;;  %vm4676_vm3 = vweird.f32 %v5876_v27 }
 0x34f   : > { %4839 = vst [vmem:[%s7195_s9 + $0xd0] sm:$0xff] %v4807_v39  ;;  %5877 = vrsqrt.f32 %v4386_v61  ;;  %vm4677_vm5 = vmor %vm4675_vm4, %vm4676_vm3  ;;  %vm4685_vm7 = vweird.f32 %v4386_v61 }
 0x350   : > { %v4668_v51 = vsel %vm4667_vm2, %v5874_v9, %v4664_v45  ;;  %v4671_v2 = vmul.f32 %v5876_v27, %v4670_v37 }
 0x351   : > { %v4736_v25 = vmul.f32 %v4668_v51, %v7299_v42 }
 0x352   : > { %v4672_v48 = vmul.f32 0.5, %v4671_v2  ;;  %v4322_v62 = vpop.xlane.xlu2 %4321 }
 0x353   : > { %v4772_v26 = vmul.f32 %v7408_v49, %v4736_v25  ;;  %v4355_v21 = vmul.f32 %v4322_v62, %v6900_v30 }
 0x354   : > { %v4673_v15 = vsub.f32 1.5, %v4672_v48 }
 0x355   : > { %v5878_v28 = vpop.eup %5877  ;;  %v4808_v43 = vadd.f32 %v7415_v10, %v4772_v26  ;;  %v4387_v63 = vadd.f32 1e-05, %v4355_v21 }
 0x356   : > { %v4674_v12 = vmul.f32 %v5876_v27, %v4673_v15  ;;  %v4680_v60 = vmul.f32 %v5878_v28, %v4386_v61  ;;  %vm4686_vm6 = vweird.f32 %v5878_v28 }
 0x357   : > { %4840 = vst [vmem:[%s7195_s9 + $0xd8] sm:$0xff] %v4808_v43  ;;  %5879 = vrsqrt.f32 %v4387_v63  ;;  %vm4687_vm8 = vmor %vm4685_vm7, %vm4686_vm6  ;;  %vm4695_vm10 = vweird.f32 %v4387_v63 }
 0x358   : > { %v4678_v42 = vsel %vm4677_vm5, %v5876_v27, %v4674_v12  ;;  %v4681_v50 = vmul.f32 %v5878_v28, %v4680_v60 }
 0x359   : > { %v4737_v24 = vmul.f32 %v4678_v42, %v7311_v6 }
 0x35a   : > { %v4682_v0 = vmul.f32 0.5, %v4681_v50  ;;  %v4324_v23 = vpop.xlane.xlu0 %4323 }
 0x35b   : > { %v4773_v35 = vmul.f32 %v7408_v49, %v4737_v24  ;;  %v4356_v44 = vmul.f32 %v4324_v23, %v6900_v30 }
 0x35c   : > { %v4683_v41 = vsub.f32 1.5, %v4682_v0 }
 0x35d   : > { %v5880_v36 = vpop.eup %5879  ;;  %v4809_v17 = vadd.f32 %v7415_v10, %v4773_v35  ;;  %v4388_v11 = vadd.f32 1e-05, %v4356_v44 }
 0x35e   : > { %v4684_v4 = vmul.f32 %v5878_v28, %v4683_v41  ;;  %v4690_v34 = vmul.f32 %v5880_v36, %v4387_v63  ;;  %vm4696_vm9 = vweird.f32 %v5880_v36 }
 0x35f   : > { %4841 = vst [vmem:[%s7195_s9 + $0xe0] sm:$0xff] %v4809_v17  ;;  %5881 = vrsqrt.f32 %v4388_v11  ;;  %vm4697_vm11 = vmor %vm4695_vm10, %vm4696_vm9  ;;  %vm4705_vm13 = vweird.f32 %v4388_v11 }
 0x360   : > { %v4688_v6 = vsel %vm4687_vm8, %v5878_v28, %v4684_v4  ;;  %v4691_v31 = vmul.f32 %v5880_v36, %v4690_v34 }
 0x361   : > { %v4738_v16 = vmul.f32 %v4688_v6, %v7323_v18 }
 0x362   : > { %v4692_v22 = vmul.f32 0.5, %v4691_v31 }
 0x363   : > { %v4774_v30 = vmul.f32 %v7408_v49, %v4738_v16 }
 0x364   : > { %v4693_v59 = vsub.f32 1.5, %v4692_v22 }
 0x365   : > { %v5882_v40 = vpop.eup %5881  ;;  %v4810_v57 = vadd.f32 %v7415_v10, %v4774_v30 }
 0x366   : > { %v4694_v8 = vmul.f32 %v5880_v36, %v4693_v59  ;;  %v4700_v5 = vmul.f32 %v5882_v40, %v4388_v11  ;;  %vm4706_vm12 = vweird.f32 %v5882_v40 }
 0x367   : > { %4842 = vst [vmem:[%s7195_s9 + $0xe8] sm:$0xff] %v4810_v57  ;;  %vm4707_vm14 = vmor %vm4705_vm13, %vm4706_vm12 }
 0x368   : > { %v4698_v58 = vsel %vm4697_vm11, %v5880_v36, %v4694_v8  ;;  %v4701_v1 = vmul.f32 %v5882_v40, %v4700_v5 }
 0x369   : > { %v4739_v18 = vmul.f32 %v4698_v58, %v7334_v33 }
 0x36a   : > { %v4702_v3 = vmul.f32 0.5, %v4701_v1 }
 0x36b   : > { %v4775_v56 = vmul.f32 %v7408_v49, %v4739_v18 }
 0x36c   : > { %v4703_v52 = vsub.f32 1.5, %v4702_v3 }
 0x36d   : > { %v4811_v9 = vadd.f32 %v7415_v10, %v4775_v56 }
 0x36e   : > { %v4704_v32 = vmul.f32 %v5882_v40, %v4703_v52 }
 0x36f   : > { %4843 = vst [vmem:[%s7195_s9 + $0xf0] sm:$0xff] %v4811_v9 }
 0x370   : > { %v4708_v33 = vsel %vm4707_vm14, %v5882_v40, %v4704_v32 }
 0x371   : > { %v4740_v47 = vmul.f32 %v4708_v33, %v7346_v7 }
 0x373   : > { %v4776_v20 = vmul.f32 %v7408_v49, %v4740_v47 }
 0x375   : > { %v4812_v54 = vadd.f32 %v7415_v10, %v4776_v20 }
 0x377   : > { %4844 = vst [vmem:[%s7195_s9 + $0xf8] sm:$0xff] %v4812_v54 }
 0x378   : > { %5915 = shalt.err (!%p5912_p3)
}
 0x379   : > { %s5954_s30 = smov 128   ;;  %s5955_s9 = smov 8  }
 0x37a   : > { %5771 = dma.vmem_to_hbm [thread:$0]  (%p6024_p5), %s4859_s23, 4096, %s4861_s22, %s4846_s25, %s5954_s30, %s5954_s30, %s5955_s9  }
 0x37b PF: > { %p5777_p4 = scmp.ge.s32.totalorder %s5950_s21, 2  ;;  %s4875_s13 = sand.u32 1, %s5938_s18  }
 0x37c   : > { %s4876_s14 = scalar_lea.sflag [#allocation6], %s4875_s13 }
 0x37d   : > { %p5774_p7 = pnand %p5777_p4, %p6028_p6 }
 0x37f   : > { %p5775_p8 = pneg %p5774_p7 }
 0x381   : > { %5933 = dma.done.wait (%p5775_p8), %s4876_s14, 4096  }
 0x382   : > { %5935 = vsyncadd (%p5775_p8), %s4876_s14, 4294963200  ;;  %p15_p9 = scmp.ge.s32.totalorder %s6011_s24, 4   ;;  %s7523_s18 = smov %s5942_s19 }
 0x383   : > { %s7524_s19 = smov %s5946_s20  ;;  %s7525_s20 = smov %s6022_s27 }
 0x384   : > { %s7526_s21 = smov %s6011_s24  ;;  %17 = sbr.rel (!%p15_p9) target bundleno = 3 (0x3), region = 83 }
 0x389   :  { %4882 = vsyncpa [#allocation6], 1 }
 0x38a   :  { %4884 = vsyncpa [#allocation6 + $0x1], 1 }

</bundles_post_ra>
